<compile_context>
chip_gen: v7x
topology: tpu7x:2x2x1
jax: 0.10.0
libtpu: 0.0.40
codegen_flags: <defaults>
</compile_context>

<pallas_src>
import jax
import jax.numpy as jnp
import numpy as np
from jax.experimental import pallas as pl
from jax.experimental.pallas import tpu as pltpu

EPS = 1e-5


def _residual_block_kernel(x_ref, w1_ref, w2_ref, o_ref):
    """Fused conv3x3(reflect) -> IN -> ReLU -> conv3x3(reflect) -> IN -> +x.

    x_ref : (1, H, W, C)  f32   one sample (NHWC block)
    w*_ref: (3, 3*C, C)   bf16  weights laid out as [dx, dy*C + cin, cout]
    o_ref : (1, H, W, C)  f32
    """
    _, H, W, C = o_ref.shape
    # Padded width rounded up to a sublane multiple so the (H, W_al) -> H*W_al
    # collapse ahead of the MXU dot is layout-preserving (no relayout copy).
    W_al = ((W + 2 + 7) // 8) * 8

    def reflect_pad(v):
        # (H, W, C) bf16 -> (H+2, W_al, C) bf16.  Columns [W+2, W_al) are zero
        # filler that never reaches a valid output window.  Done in bf16 so
        # the padded / 3x-duplicated slabs cost half the VMEM of f32.
        rows = jnp.concatenate([v[1:2], v, v[H - 2:H - 1]], axis=0)
        pieces = [rows[:, 1:2], rows, rows[:, W - 2:W - 1]]
        if W_al > W + 2:
            pieces.append(jnp.zeros((H + 2, W_al - (W + 2), C), v.dtype))
        return jnp.concatenate(pieces, axis=1)

    def conv3x3(v_bf16, w_ref):
        # v_bf16: (H, W, C) bf16.  Fuse the three dy taps along the channel
        # axis -> K = 3*C fat dots over the full padded width.
        pad = reflect_pad(v_bf16)                        # (H+2, W_al, C) bf16
        xcat = jnp.concatenate([pad[0:H], pad[1:H + 1], pad[2:H + 2]],
                               axis=-1)                  # (H, W_al, 3C) bf16
        xflat = xcat.reshape(H * W_al, 3 * C)
        out = None
        for dx in range(3):
            t = jnp.dot(xflat, w_ref[dx],
                        preferred_element_type=jnp.float32)
            t = t.reshape(H, W_al, C)
            # dx tap = shifted sublane window of the full-width dot output.
            # Kept as a slice (neutral vs. pltpu.roll while MXU-bound).
            win = t[:, dx:dx + W, :]
            out = win if out is None else out + win
        return out                                       # (H, W, C) f32

    def instance_norm(v):
        # Single pass: biased var = E[x^2] - mean^2 (matches PyTorch), clamped
        # so cancellation (worsened by bf16 conv operands) can't push the
        # variance negative and NaN the rsqrt.
        inv_hw = 1.0 / (H * W)
        s1 = jnp.sum(jnp.sum(v, axis=1, keepdims=True), axis=0, keepdims=True)
        s2 = jnp.sum(jnp.sum(v * v, axis=1, keepdims=True), axis=0,
                     keepdims=True)
        mean = s1 * inv_hw
        var = jnp.maximum(s2 * inv_hw - mean * mean, 0.0)
        return (v - mean) * jax.lax.rsqrt(var + EPS)

    x = x_ref[0]                                         # (H, W, C) f32
    xb = x.astype(jnp.bfloat16)                          # cast ONCE, pre-pad
    y = jnp.maximum(instance_norm(conv3x3(xb, w1_ref)), 0.0)
    z = instance_norm(conv3x3(y.astype(jnp.bfloat16), w2_ref))
    o_ref[0] = (z + x).astype(o_ref.dtype)


def _repack_weights(w_oihw):
    """(Cout, Cin, 3, 3) OIHW -> (3, 3*Cin, Cout) = [dx, dy*Cin + cin, cout]."""
    w = jnp.transpose(w_oihw, (3, 2, 1, 0))              # (dx, dy, Cin, Cout)
    kx, ky, cin, cout = w.shape
    return w.reshape(kx, ky * cin, cout).astype(jnp.bfloat16)


def _vmem_limit_bytes():
    """~3/4 of physical VMEM, capped at 100 MiB (96 MiB v5e/v6e, 48 MiB v7x)."""
    try:
        cap = pltpu.get_tpu_info().vmem_capacity_bytes
    except Exception:  # conservative fallback if the query is unavailable
        cap = 64 * 1024 * 1024
    return max(32 * 1024 * 1024, min(100 * 1024 * 1024, (cap * 3) // 4))


@jax.jit
def residual_block_forward_nhwc(x_nhwc, w1, b1, w2, b2):
    """Preferred entry point: x is (N, H, W, C) f32 channels-last (no layout
    round trips).  w*: (C, C, 3, 3) OIHW; b*: (C,).

    Conv biases are accepted for interface parity but dropped: a per-channel
    constant added before InstanceNorm cancels exactly in the mean subtraction.
    """
    del b1, b2
    x = x_nhwc.astype(jnp.float32)
    N, H, W, C = x.shape
    w1p = _repack_weights(w1)
    w2p = _repack_weights(w2)

    return pl.pallas_call(
        _residual_block_kernel,
        out_shape=jax.ShapeDtypeStruct((N, H, W, C), jnp.float32),
        grid=(N,),
        in_specs=[
            pl.BlockSpec((1, H, W, C), lambda n: (n, 0, 0, 0)),
            pl.BlockSpec((3, 3 * C, C), lambda n: (0, 0, 0)),
            pl.BlockSpec((3, 3 * C, C), lambda n: (0, 0, 0)),
        ],
        out_specs=pl.BlockSpec((1, H, W, C), lambda n: (n, 0, 0, 0)),
        compiler_params=pltpu.CompilerParams(
            dimension_semantics=("parallel",),
            vmem_limit_bytes=_vmem_limit_bytes(),
        ),
    )(x, w1p, w2p)


@jax.jit
def residual_block_forward(x_nchw, w1, b1, w2, b2):
    """PyTorch-parity wrapper: x is (N, C, H, W) like nn.Conv2d expects.

    The two transposes here are full HBM round trips; callers already in NHWC
    should use residual_block_forward_nhwc directly.
    """
    x = jnp.transpose(x_nchw, (0, 2, 3, 1))              # NCHW -> NHWC
    out = residual_block_forward_nhwc(x, w1, b1, w2, b2)
    return jnp.transpose(out, (0, 3, 1, 2))              # back to NCHW


def _reference(x, w1, b1, w2, b2):
    """Pure-JAX f32 reference matching the PyTorch module (bias included)."""
    def conv(h, w, b):
        hp = jnp.pad(h, ((0, 0), (0, 0), (1, 1), (1, 1)), mode="reflect")
        y = jax.lax.conv_general_dilated(
            hp, w, window_strides=(1, 1), padding="VALID",
            dimension_numbers=("NCHW", "OIHW", "NCHW"))
        return y + b[None, :, None, None]

    def inorm(h):
        m = jnp.mean(h, axis=(2, 3), keepdims=True)
        v = jnp.mean((h - m) ** 2, axis=(2, 3), keepdims=True)
        return (h - m) / jnp.sqrt(v + EPS)

    h = jax.nn.relu(inorm(conv(x, w1, b1)))
    return inorm(conv(h, w2, b2)) + x


if __name__ == "__main__":
    N, C, H, W = 2, 4, 16, 16  # in_channels == out_channels for the residual
    key = jax.random.PRNGKey(0)
    kx, kw1, kb1, kw2, kb2 = jax.random.split(key, 5)

    x = jax.random.normal(kx, (N, C, H, W), jnp.float32)
    w1 = jax.random.normal(kw1, (C, C, 3, 3), jnp.float32) * 0.1
    b1 = jax.random.normal(kb1, (C,), jnp.float32) * 0.1
    w2 = jax.random.normal(kw2, (C, C, 3, 3), jnp.float32) * 0.1
    b2 = jax.random.normal(kb2, (C,), jnp.float32) * 0.1

    out = jax.block_until_ready(residual_block_forward(x, w1, b1, w2, b2))
    ref = jax.block_until_ready(_reference(x, w1, b1, w2, b2))

    # bf16 MXU operands (f32 accumulation) trade a small absolute deviation
    # from the full-f32 reference for 2-4x MXU throughput; InstanceNorm's
    # divide-by-std can amplify it for near-constant maps, hence the loose
    # tolerance (known precision tradeoff, not a bug).
    np.testing.assert_allclose(np.asarray(out), np.asarray(ref),
                               rtol=5e-2, atol=5e-2)
    print("KERNEL_OK")
</pallas_src>

<mosaic_0001>
module attributes {stable_mosaic.version = 11 : i64} {
  func.func @_residual_block_kernel(%arg0: i32, %arg1: memref<1x16x16x4xf32, #tpu.memory_space<vmem>>, %arg2: memref<3x12x4xbf16, #tpu.memory_space<vmem>>, %arg3: memref<3x12x4xbf16, #tpu.memory_space<vmem>>, %arg4: memref<1x16x16x4xf32, #tpu.memory_space<vmem>>) attributes {dimension_semantics = [#tpu.dimension_semantics<parallel>], iteration_bounds = array<i64: 2>, scalar_prefetch = 0 : i64, scratch_operands = 0 : i64, tpu.core_type = #tpu.core_type<tc>, window_params = [{transform_indices = @transform_0, window_bounds = array<i64: 1, 16, 16, 4>}, {pipeline_mode = #tpu.pipeline_mode<synchronous>, transform_indices = @transform_1, window_bounds = array<i64: 3, 12, 4>}, {pipeline_mode = #tpu.pipeline_mode<synchronous>, transform_indices = @transform_2, window_bounds = array<i64: 3, 12, 4>}, {transform_indices = @transform_3, window_bounds = array<i64: 1, 16, 16, 4>}]} {
    %c0 = arith.constant 0 : index
    %c0_0 = arith.constant 0 : index
    %c0_1 = arith.constant 0 : index
    %c0_2 = arith.constant 0 : index
    %0 = vector.load %arg1[%c0, %c0_0, %c0_1, %c0_2] : memref<1x16x16x4xf32, #tpu.memory_space<vmem>>, vector<1x16x16x4xf32>
    %1 = vector.shape_cast %0 : vector<1x16x16x4xf32> to vector<16x16x4xf32>
    %2 = arith.truncf %1 : vector<16x16x4xf32> to vector<16x16x4xbf16>
    %3 = vector.extract_strided_slice %2 {offsets = [1, 0, 0], sizes = [1, 16, 4], strides = [1, 1, 1]} : vector<16x16x4xbf16> to vector<1x16x4xbf16>
    %4 = vector.extract_strided_slice %2 {offsets = [14, 0, 0], sizes = [1, 16, 4], strides = [1, 1, 1]} : vector<16x16x4xbf16> to vector<1x16x4xbf16>
    %5 = tpu.concatenate %3, %2, %4 in 0 : vector<1x16x4xbf16>, vector<16x16x4xbf16>, vector<1x16x4xbf16> -> vector<18x16x4xbf16>
    %6 = vector.extract_strided_slice %5 {offsets = [0, 1, 0], sizes = [18, 1, 4], strides = [1, 1, 1]} : vector<18x16x4xbf16> to vector<18x1x4xbf16>
    %7 = vector.extract_strided_slice %5 {offsets = [0, 14, 0], sizes = [18, 1, 4], strides = [1, 1, 1]} : vector<18x16x4xbf16> to vector<18x1x4xbf16>
    %cst = arith.constant 0.000000e+00 : bf16
    %8 = vector.broadcast %cst : bf16 to vector<18x6x4xbf16>
    %9 = tpu.concatenate %6, %5, %7, %8 in 1 : vector<18x1x4xbf16>, vector<18x16x4xbf16>, vector<18x1x4xbf16>, vector<18x6x4xbf16> -> vector<18x24x4xbf16>
    %10 = vector.extract_strided_slice %9 {offsets = [0, 0, 0], sizes = [16, 24, 4], strides = [1, 1, 1]} : vector<18x24x4xbf16> to vector<16x24x4xbf16>
    %11 = vector.extract_strided_slice %9 {offsets = [1, 0, 0], sizes = [16, 24, 4], strides = [1, 1, 1]} : vector<18x24x4xbf16> to vector<16x24x4xbf16>
    %12 = vector.extract_strided_slice %9 {offsets = [2, 0, 0], sizes = [16, 24, 4], strides = [1, 1, 1]} : vector<18x24x4xbf16> to vector<16x24x4xbf16>
    %13 = tpu.concatenate %10, %11, %12 in 2 : vector<16x24x4xbf16>, vector<16x24x4xbf16>, vector<16x24x4xbf16> -> vector<16x24x12xbf16>
    %14 = vector.shape_cast %13 : vector<16x24x12xbf16> to vector<384x12xbf16>
    %c0_3 = arith.constant 0 : index
    %c0_4 = arith.constant 0 : index
    %c0_5 = arith.constant 0 : index
    %15 = vector.load %arg2[%c0_3, %c0_4, %c0_5] : memref<3x12x4xbf16, #tpu.memory_space<vmem>>, vector<1x12x4xbf16>
    %16 = vector.shape_cast %15 : vector<1x12x4xbf16> to vector<12x4xbf16>
    %cst_6 = arith.constant dense<0.000000e+00> : vector<384x4xf32>
    %17 = tpu.matmul %14, %16, %cst_6 {dimension_numbers = #tpu.dot_dimension_numbers<[1], [0], [0], [1], [0, 0, 1, 1], [], []>} : vector<384x12xbf16>, vector<12x4xbf16>, vector<384x4xf32> -> vector<384x4xf32>
    %18 = vector.shape_cast %17 : vector<384x4xf32> to vector<16x24x4xf32>
    %19 = vector.extract_strided_slice %18 {offsets = [0, 0, 0], sizes = [16, 16, 4], strides = [1, 1, 1]} : vector<16x24x4xf32> to vector<16x16x4xf32>
    %c1 = arith.constant 1 : index
    %c0_7 = arith.constant 0 : index
    %c0_8 = arith.constant 0 : index
    %20 = vector.load %arg2[%c1, %c0_7, %c0_8] : memref<3x12x4xbf16, #tpu.memory_space<vmem>>, vector<1x12x4xbf16>
    %21 = vector.shape_cast %20 : vector<1x12x4xbf16> to vector<12x4xbf16>
    %cst_9 = arith.constant dense<0.000000e+00> : vector<384x4xf32>
    %22 = tpu.matmul %14, %21, %cst_9 {dimension_numbers = #tpu.dot_dimension_numbers<[1], [0], [0], [1], [0, 0, 1, 1], [], []>} : vector<384x12xbf16>, vector<12x4xbf16>, vector<384x4xf32> -> vector<384x4xf32>
    %23 = vector.shape_cast %22 : vector<384x4xf32> to vector<16x24x4xf32>
    %24 = vector.extract_strided_slice %23 {offsets = [0, 1, 0], sizes = [16, 16, 4], strides = [1, 1, 1]} : vector<16x24x4xf32> to vector<16x16x4xf32>
    %25 = arith.addf %19, %24 : vector<16x16x4xf32>
    %c2 = arith.constant 2 : index
    %c0_10 = arith.constant 0 : index
    %c0_11 = arith.constant 0 : index
    %26 = vector.load %arg2[%c2, %c0_10, %c0_11] : memref<3x12x4xbf16, #tpu.memory_space<vmem>>, vector<1x12x4xbf16>
    %27 = vector.shape_cast %26 : vector<1x12x4xbf16> to vector<12x4xbf16>
    %cst_12 = arith.constant dense<0.000000e+00> : vector<384x4xf32>
    %28 = tpu.matmul %14, %27, %cst_12 {dimension_numbers = #tpu.dot_dimension_numbers<[1], [0], [0], [1], [0, 0, 1, 1], [], []>} : vector<384x12xbf16>, vector<12x4xbf16>, vector<384x4xf32> -> vector<384x4xf32>
    %29 = vector.shape_cast %28 : vector<384x4xf32> to vector<16x24x4xf32>
    %30 = vector.extract_strided_slice %29 {offsets = [0, 2, 0], sizes = [16, 16, 4], strides = [1, 1, 1]} : vector<16x24x4xf32> to vector<16x16x4xf32>
    %31 = arith.addf %25, %30 : vector<16x16x4xf32>
    %cst_13 = arith.constant dense<0.000000e+00> : vector<16x4xf32>
    %32 = vector.multi_reduction <add>, %31, %cst_13 [1] : vector<16x16x4xf32> to vector<16x4xf32>
    %33 = vector.shape_cast %32 : vector<16x4xf32> to vector<16x1x4xf32>
    %cst_14 = arith.constant dense<0.000000e+00> : vector<1x4xf32>
    %34 = vector.multi_reduction <add>, %33, %cst_14 [0] : vector<16x1x4xf32> to vector<1x4xf32>
    %35 = vector.shape_cast %34 : vector<1x4xf32> to vector<1x1x4xf32>
    %36 = arith.mulf %31, %31 : vector<16x16x4xf32>
    %cst_15 = arith.constant dense<0.000000e+00> : vector<16x4xf32>
    %37 = vector.multi_reduction <add>, %36, %cst_15 [1] : vector<16x16x4xf32> to vector<16x4xf32>
    %38 = vector.shape_cast %37 : vector<16x4xf32> to vector<16x1x4xf32>
    %cst_16 = arith.constant dense<0.000000e+00> : vector<1x4xf32>
    %39 = vector.multi_reduction <add>, %38, %cst_16 [0] : vector<16x1x4xf32> to vector<1x4xf32>
    %40 = vector.shape_cast %39 : vector<1x4xf32> to vector<1x1x4xf32>
    %cst_17 = arith.constant 3.906250e-03 : f32
    %41 = vector.broadcast %cst_17 : f32 to vector<1x1x4xf32>
    %42 = arith.mulf %35, %41 : vector<1x1x4xf32>
    %cst_18 = arith.constant 3.906250e-03 : f32
    %43 = vector.broadcast %cst_18 : f32 to vector<1x1x4xf32>
    %44 = arith.mulf %40, %43 : vector<1x1x4xf32>
    %45 = arith.mulf %42, %42 : vector<1x1x4xf32>
    %46 = arith.subf %44, %45 : vector<1x1x4xf32>
    %cst_19 = arith.constant 0.000000e+00 : f32
    %47 = vector.broadcast %cst_19 : f32 to vector<1x1x4xf32>
    %48 = arith.maximumf %46, %47 : vector<1x1x4xf32>
    %49 = vector.broadcast %42 : vector<1x1x4xf32> to vector<16x16x4xf32>
    %50 = arith.subf %31, %49 : vector<16x16x4xf32>
    %cst_20 = arith.constant 9.99999974E-6 : f32
    %51 = vector.broadcast %cst_20 : f32 to vector<1x1x4xf32>
    %52 = arith.addf %48, %51 : vector<1x1x4xf32>
    %53 = math.rsqrt %52 : vector<1x1x4xf32>
    %54 = vector.broadcast %53 : vector<1x1x4xf32> to vector<16x16x4xf32>
    %55 = arith.mulf %50, %54 : vector<16x16x4xf32>
    %cst_21 = arith.constant 0.000000e+00 : f32
    %56 = vector.broadcast %cst_21 : f32 to vector<16x16x4xf32>
    %57 = arith.maximumf %55, %56 : vector<16x16x4xf32>
    %58 = arith.truncf %57 : vector<16x16x4xf32> to vector<16x16x4xbf16>
    %59 = vector.extract_strided_slice %58 {offsets = [1, 0, 0], sizes = [1, 16, 4], strides = [1, 1, 1]} : vector<16x16x4xbf16> to vector<1x16x4xbf16>
    %60 = vector.extract_strided_slice %58 {offsets = [14, 0, 0], sizes = [1, 16, 4], strides = [1, 1, 1]} : vector<16x16x4xbf16> to vector<1x16x4xbf16>
    %61 = tpu.concatenate %59, %58, %60 in 0 : vector<1x16x4xbf16>, vector<16x16x4xbf16>, vector<1x16x4xbf16> -> vector<18x16x4xbf16>
    %62 = vector.extract_strided_slice %61 {offsets = [0, 1, 0], sizes = [18, 1, 4], strides = [1, 1, 1]} : vector<18x16x4xbf16> to vector<18x1x4xbf16>
    %63 = vector.extract_strided_slice %61 {offsets = [0, 14, 0], sizes = [18, 1, 4], strides = [1, 1, 1]} : vector<18x16x4xbf16> to vector<18x1x4xbf16>
    %cst_22 = arith.constant 0.000000e+00 : bf16
    %64 = vector.broadcast %cst_22 : bf16 to vector<18x6x4xbf16>
    %65 = tpu.concatenate %62, %61, %63, %64 in 1 : vector<18x1x4xbf16>, vector<18x16x4xbf16>, vector<18x1x4xbf16>, vector<18x6x4xbf16> -> vector<18x24x4xbf16>
    %66 = vector.extract_strided_slice %65 {offsets = [0, 0, 0], sizes = [16, 24, 4], strides = [1, 1, 1]} : vector<18x24x4xbf16> to vector<16x24x4xbf16>
    %67 = vector.extract_strided_slice %65 {offsets = [1, 0, 0], sizes = [16, 24, 4], strides = [1, 1, 1]} : vector<18x24x4xbf16> to vector<16x24x4xbf16>
    %68 = vector.extract_strided_slice %65 {offsets = [2, 0, 0], sizes = [16, 24, 4], strides = [1, 1, 1]} : vector<18x24x4xbf16> to vector<16x24x4xbf16>
    %69 = tpu.concatenate %66, %67, %68 in 2 : vector<16x24x4xbf16>, vector<16x24x4xbf16>, vector<16x24x4xbf16> -> vector<16x24x12xbf16>
    %70 = vector.shape_cast %69 : vector<16x24x12xbf16> to vector<384x12xbf16>
    %c0_23 = arith.constant 0 : index
    %c0_24 = arith.constant 0 : index
    %c0_25 = arith.constant 0 : index
    %71 = vector.load %arg3[%c0_23, %c0_24, %c0_25] : memref<3x12x4xbf16, #tpu.memory_space<vmem>>, vector<1x12x4xbf16>
    %72 = vector.shape_cast %71 : vector<1x12x4xbf16> to vector<12x4xbf16>
    %cst_26 = arith.constant dense<0.000000e+00> : vector<384x4xf32>
    %73 = tpu.matmul %70, %72, %cst_26 {dimension_numbers = #tpu.dot_dimension_numbers<[1], [0], [0], [1], [0, 0, 1, 1], [], []>} : vector<384x12xbf16>, vector<12x4xbf16>, vector<384x4xf32> -> vector<384x4xf32>
    %74 = vector.shape_cast %73 : vector<384x4xf32> to vector<16x24x4xf32>
    %75 = vector.extract_strided_slice %74 {offsets = [0, 0, 0], sizes = [16, 16, 4], strides = [1, 1, 1]} : vector<16x24x4xf32> to vector<16x16x4xf32>
    %c1_27 = arith.constant 1 : index
    %c0_28 = arith.constant 0 : index
    %c0_29 = arith.constant 0 : index
    %76 = vector.load %arg3[%c1_27, %c0_28, %c0_29] : memref<3x12x4xbf16, #tpu.memory_space<vmem>>, vector<1x12x4xbf16>
    %77 = vector.shape_cast %76 : vector<1x12x4xbf16> to vector<12x4xbf16>
    %cst_30 = arith.constant dense<0.000000e+00> : vector<384x4xf32>
    %78 = tpu.matmul %70, %77, %cst_30 {dimension_numbers = #tpu.dot_dimension_numbers<[1], [0], [0], [1], [0, 0, 1, 1], [], []>} : vector<384x12xbf16>, vector<12x4xbf16>, vector<384x4xf32> -> vector<384x4xf32>
    %79 = vector.shape_cast %78 : vector<384x4xf32> to vector<16x24x4xf32>
    %80 = vector.extract_strided_slice %79 {offsets = [0, 1, 0], sizes = [16, 16, 4], strides = [1, 1, 1]} : vector<16x24x4xf32> to vector<16x16x4xf32>
    %81 = arith.addf %75, %80 : vector<16x16x4xf32>
    %c2_31 = arith.constant 2 : index
    %c0_32 = arith.constant 0 : index
    %c0_33 = arith.constant 0 : index
    %82 = vector.load %arg3[%c2_31, %c0_32, %c0_33] : memref<3x12x4xbf16, #tpu.memory_space<vmem>>, vector<1x12x4xbf16>
    %83 = vector.shape_cast %82 : vector<1x12x4xbf16> to vector<12x4xbf16>
    %cst_34 = arith.constant dense<0.000000e+00> : vector<384x4xf32>
    %84 = tpu.matmul %70, %83, %cst_34 {dimension_numbers = #tpu.dot_dimension_numbers<[1], [0], [0], [1], [0, 0, 1, 1], [], []>} : vector<384x12xbf16>, vector<12x4xbf16>, vector<384x4xf32> -> vector<384x4xf32>
    %85 = vector.shape_cast %84 : vector<384x4xf32> to vector<16x24x4xf32>
    %86 = vector.extract_strided_slice %85 {offsets = [0, 2, 0], sizes = [16, 16, 4], strides = [1, 1, 1]} : vector<16x24x4xf32> to vector<16x16x4xf32>
    %87 = arith.addf %81, %86 : vector<16x16x4xf32>
    %cst_35 = arith.constant dense<0.000000e+00> : vector<16x4xf32>
    %88 = vector.multi_reduction <add>, %87, %cst_35 [1] : vector<16x16x4xf32> to vector<16x4xf32>
    %89 = vector.shape_cast %88 : vector<16x4xf32> to vector<16x1x4xf32>
    %cst_36 = arith.constant dense<0.000000e+00> : vector<1x4xf32>
    %90 = vector.multi_reduction <add>, %89, %cst_36 [0] : vector<16x1x4xf32> to vector<1x4xf32>
    %91 = vector.shape_cast %90 : vector<1x4xf32> to vector<1x1x4xf32>
    %92 = arith.mulf %87, %87 : vector<16x16x4xf32>
    %cst_37 = arith.constant dense<0.000000e+00> : vector<16x4xf32>
    %93 = vector.multi_reduction <add>, %92, %cst_37 [1] : vector<16x16x4xf32> to vector<16x4xf32>
    %94 = vector.shape_cast %93 : vector<16x4xf32> to vector<16x1x4xf32>
    %cst_38 = arith.constant dense<0.000000e+00> : vector<1x4xf32>
    %95 = vector.multi_reduction <add>, %94, %cst_38 [0] : vector<16x1x4xf32> to vector<1x4xf32>
    %96 = vector.shape_cast %95 : vector<1x4xf32> to vector<1x1x4xf32>
    %cst_39 = arith.constant 3.906250e-03 : f32
    %97 = vector.broadcast %cst_39 : f32 to vector<1x1x4xf32>
    %98 = arith.mulf %91, %97 : vector<1x1x4xf32>
    %cst_40 = arith.constant 3.906250e-03 : f32
    %99 = vector.broadcast %cst_40 : f32 to vector<1x1x4xf32>
    %100 = arith.mulf %96, %99 : vector<1x1x4xf32>
    %101 = arith.mulf %98, %98 : vector<1x1x4xf32>
    %102 = arith.subf %100, %101 : vector<1x1x4xf32>
    %cst_41 = arith.constant 0.000000e+00 : f32
    %103 = vector.broadcast %cst_41 : f32 to vector<1x1x4xf32>
    %104 = arith.maximumf %102, %103 : vector<1x1x4xf32>
    %105 = vector.broadcast %98 : vector<1x1x4xf32> to vector<16x16x4xf32>
    %106 = arith.subf %87, %105 : vector<16x16x4xf32>
    %cst_42 = arith.constant 9.99999974E-6 : f32
    %107 = vector.broadcast %cst_42 : f32 to vector<1x1x4xf32>
    %108 = arith.addf %104, %107 : vector<1x1x4xf32>
    %109 = math.rsqrt %108 : vector<1x1x4xf32>
    %110 = vector.broadcast %109 : vector<1x1x4xf32> to vector<16x16x4xf32>
    %111 = arith.mulf %106, %110 : vector<16x16x4xf32>
    %112 = arith.addf %111, %1 : vector<16x16x4xf32>
    %c0_43 = arith.constant 0 : index
    %c0_44 = arith.constant 0 : index
    %c0_45 = arith.constant 0 : index
    %c0_46 = arith.constant 0 : index
    %113 = vector.load %arg4[%c0_43, %c0_44, %c0_45, %c0_46] : memref<1x16x16x4xf32, #tpu.memory_space<vmem>>, vector<1x16x16x4xf32>
    %114 = vector.shape_cast %113 : vector<1x16x16x4xf32> to vector<16x16x4xf32>
    %115 = vector.shape_cast %112 : vector<16x16x4xf32> to vector<1x16x16x4xf32>
    tpu.vector_store %arg4[%c0_43, %c0_44, %c0_45, %c0_46], %115 {strides = array<i32>} : memref<1x16x16x4xf32, #tpu.memory_space<vmem>>, vector<1x16x16x4xf32>,
    return
  }
  func.func @transform_0(%arg0: i32) -> (i32, i32, i32, i32) {
    %c0_i32 = arith.constant 0 : i32
    %c0_i32_0 = arith.constant 0 : i32
    %c0_i32_1 = arith.constant 0 : i32
    %c0_i32_2 = arith.constant 0 : i32
    return %arg0, %c0_i32, %c0_i32_0, %c0_i32_1 : i32, i32, i32, i32
  }
  func.func @transform_1(%arg0: i32) -> (i32, i32, i32) {
    %c0_i32 = arith.constant 0 : i32
    %c0_i32_0 = arith.constant 0 : i32
    %c0_i32_1 = arith.constant 0 : i32
    %c0_i32_2 = arith.constant 0 : i32
    return %c0_i32, %c0_i32_0, %c0_i32_1 : i32, i32, i32
  }
  func.func @transform_2(%arg0: i32) -> (i32, i32, i32) {
    %c0_i32 = arith.constant 0 : i32
    %c0_i32_0 = arith.constant 0 : i32
    %c0_i32_1 = arith.constant 0 : i32
    %c0_i32_2 = arith.constant 0 : i32
    return %c0_i32, %c0_i32_0, %c0_i32_1 : i32, i32, i32
  }
  func.func @transform_3(%arg0: i32) -> (i32, i32, i32, i32) {
    %c0_i32 = arith.constant 0 : i32
    %c0_i32_0 = arith.constant 0 : i32
    %c0_i32_1 = arith.constant 0 : i32
    %c0_i32_2 = arith.constant 0 : i32
    return %arg0, %c0_i32, %c0_i32_0, %c0_i32_1 : i32, i32, i32, i32
  }
}

</mosaic_0001>

<bundles_post_ra>
// kernel: residual_block_forward_nhwc.1
= control target key start
LH: loop header
LB: loop body
LE: loop exit
PB: predicated region body
PF: predicated region fallthrough
CT: control target
= control target key end

     0   :  { %s5636_s12 = smov 0   ;;  %s8304_s0 = inlined_call_operand.vmem [shape: f32[2,16,16,4], index: 0, kind: input, shape index: {}]   ;;  %s8305_s1 = inlined_call_operand.vmem [shape: bf16[3,12,4], index: 1, kind: input, shape index: {}]   ;;  %s8306_s2 = inlined_call_operand.vmem [shape: bf16[3,12,4], index: 2, kind: input, shape index: {}]   ;;  %s8307_s3 = inlined_call_operand.vmem [shape: f32[2,16,16,4], index: 3, kind: output, shape index: {}]  }
   0x1 LB: > { %s4911_s13 = sadd.s32 4294967295, %s5612_s12   ;;  %p4915_p0 = scmp.ge.s32.totalorder %s5612_s12, 1  ;;  %s5612_s12 = sphi %s5636_s12, %s13_s12  }
   0x2   : > { %p137_p1 = scmp.lt.s32.totalorder %s5612_s12, 3 }
   0x4   : > { %p138_p2 = pnand %p4915_p0, %p137_p1 }
   0x6   : > { %141 = sbr.rel (%p138_p2) target bundleno = 1319 (0x527), region = 32 }
   0xd   : > { %p161_p3 = scmp.lt.s32.totalorder %s4911_s13, 1  ;;  %vm412_vm0 = vcmask 1040384   ;;  %vm413_vm1 = vsmask.f32 256  ;;  %v8323_v13 = vmov 0  ;;  %s5614_s18 = smov 8  }
   0xe   : > { %vm5663_vm2 = vmand %vm412_vm0, %vm413_vm1  ;;  %s5615_s19 = smov 4   ;;  %v5564_v59 = vld [vmem:[%s8305_s1] sm:$0x3f]   ;;  %v5565_v63 = vld [vmem:[%s8305_s1 + $0x8] sm:$0x3f]   ;;  %vm964_vm3 = vcmask 1045504  }
   0xf   : > { %s8353_s13 = smov (!%p161_p3, %s4911_s13), 1  ;;  %v8324_v13 = vsel %vm5663_vm2, 4294967295, %v8323_v13  ;;  %5548 = vmatprep.subr.msk.bf16.mxu0 %vm964_vm3, %v5564_v59  ;;  %5549 = vmatprep.subr.msk.bf16.mxu1 %vm964_vm3, %v5565_v63  ;;  %vm637_vm4 = vcmask 31744   ;;  %vm717_vm5 = vcmask 64512   ;;  %vm891_vm6 = vcmask 97280  }
  0x10   : > { %s5096_s14 = sshll.u32 %s8353_s13, 8  ;;  %8325 = vst [vmem:[#allocation2_spill] sm:$0xff] %v8324_v13  ;;  %vm1461_vm7 = vcmask 1046528  }
  0x11   : > { %s5652_s17 = scalar_lea.vmem %s8304_s0, %s5096_s14  ;;  %s8183_s7 = scalar_lea.vmem %s8307_s3, %s5096_s14 }
  0x12   : > { %v174_v0 = vld [vmem:[%s5652_s17 + $0x10] sm:$0xff]  ;;  %v175_v1 = vld [vmem:[%s5652_s17 + $0x18] sm:$0xff]  ;;  %v172_v2 = vld [vmem:[%s5652_s17] sm:$0xff] }
  0x13   : > { %v205_v3 = vpack.c.bf16 %v175_v1, %v174_v0  ;;  %v173_v4 = vld [vmem:[%s5652_s17 + $0x8] sm:$0xff]  ;;  %v176_v5 = vld [vmem:[%s5652_s17 + $0x20] sm:$0xff]  ;;  %v178_v9 = vld [vmem:[%s5652_s17 + $0x30] sm:$0xff] }
  0x14   : > { %v177_v6 = vld [vmem:[%s5652_s17 + $0x28] sm:$0xff]  ;;  %v204_v7 = vpack.c.bf16 %v173_v4, %v172_v2  ;;  %v179_v10 = vld [vmem:[%s5652_s17 + $0x38] sm:$0xff]  ;;  %v180_v34 = vld [vmem:[%s5652_s17 + $0x40] sm:$0xff] }
  0x15   : > { %v206_v8 = vpack.c.bf16 %v177_v6, %v176_v5  ;;  %v221_v11 = vshrl.u32 %v205_v3, 16  ;;  %v285_v12 = vshll.u32 %v205_v3, 16  ;;  %v207_v20 = vpack.c.bf16 %v179_v10, %v178_v9  ;;  %v181_v35 = vld [vmem:[%s5652_s17 + $0x48] sm:$0xff]  ;;  %v182_v46 = vld [vmem:[%s5652_s17 + $0x50] sm:$0xff]  ;;  %v183_v47 = vld [vmem:[%s5652_s17 + $0x58] sm:$0xff] }
  0x16   : > { %v224_v14 = vshrl.u32 %v204_v7, 16  ;;  %v289_v15 = vshll.u32 %v204_v7, 16  ;;  %v208_v39 = vpack.c.bf16 %v181_v35, %v180_v34  ;;  %v209_v51 = vpack.c.bf16 %v183_v47, %v182_v46  ;;  %v184_v57 = vld [vmem:[%s5652_s17 + $0x60] sm:$0xff]  ;;  %v185_v58 = vld [vmem:[%s5652_s17 + $0x68] sm:$0xff]  ;;  %v186_v3 = vld [vmem:[%s5652_s17 + $0x70] sm:$0xff] }
  0x17   : > { %v227_v16 = vshrl.u32 %v206_v8, 16  ;;  %v293_v17 = vshll.u32 %v206_v8, 16  ;;  %v284_v18 = vrot.slane %v221_v11, 7  ;;  %v380_v19 = vrot.slane %v285_v12, 7  ;;  %v187_v7 = vld [vmem:[%s5652_s17 + $0x78] sm:$0xff]  ;;  %v190_v35 = vld [vmem:[%s5652_s17 + $0x90] sm:$0xff] }
  0x18   : > { %v288_v21 = vrot.slane %v224_v14, 7  ;;  %v381_v22 = vrot.slane %v289_v15, 7  ;;  %v230_v32 = vshrl.u32 %v207_v20, 16  ;;  %v297_v38 = vshll.u32 %v207_v20, 16  ;;  %v5759_v8 = vld [vmem:[%s8305_s1 + $0x10] sm:$0x3f]  }
  0x19   : > { %v292_v23 = vrot.slane %v227_v16, 7  ;;  %v382_v24 = vrot.slane %v293_v17, 7  ;;  %v431_v25 = vsel %vm5663_vm2, %v284_v18, %v380_v19  ;;  %v287_v33 = vor.u32 %v285_v12, %v284_v18 }
  0x1a   : > { %v5670_v26 = vsel %vm412_vm0, %v431_v25, 0  ;;  %v432_v27 = vsel %vm5663_vm2, %v288_v21, %v381_v22  ;;  %v291_v31 = vor.u32 %v289_v15, %v288_v21  ;;  %v296_v37 = vrot.slane %v230_v32, 7  ;;  %v188_v21 = vld [vmem:[%s5652_s17 + $0x80] sm:$0xff]  ;;  %v189_v22 = vld [vmem:[%s5652_s17 + $0x88] sm:$0xff] }
  0x1b   : > { %v433_v28 = vsel %vm5663_vm2, %v292_v23, %v382_v24  ;;  %579 = vrot.lane.b32.xlu1 %v5670_v26, %s5614_s18  ;;  %v5679_v29 = vsel %vm412_vm0, %v432_v27, 0  ;;  %v5698_v40 = vsel %vm5663_vm2, %v221_v11, %v287_v33  ;;  %v295_v41 = vor.u32 %v293_v17, %v292_v23 }
  0x1c   : > { %515 = vrot.lane.b32.xlu0 %v5679_v29, %s5615_s19  ;;  %v5684_v30 = vsel %vm412_vm0, %v433_v28, 0  ;;  %v5694_v36 = vsel %vm5663_vm2, %v224_v14, %v291_v31  ;;  %v299_v42 = vor.u32 %v297_v38, %v296_v37  ;;  %v233_v43 = vshrl.u32 %v208_v39, 16 }
  0x1d   : > { %v5706_v44 = vsel %vm5663_vm2, %v227_v16, %v295_v41  ;;  %v383_v45 = vrot.slane %v297_v38, 7  ;;  %v301_v50 = vshll.u32 %v208_v39, 16  ;;  %v236_v55 = vshrl.u32 %v209_v51, 16 }
  0x1e   : > { %v5716_v48 = vsel %vm5663_vm2, %v230_v32, %v299_v42  ;;  %v300_v49 = vrot.slane %v233_v43, 7  ;;  %v305_v62 = vshll.u32 %v209_v51, 16  ;;  %v210_v0 = vpack.c.bf16 %v185_v58, %v184_v57  ;;  %v193_v51 = vld [vmem:[%s5652_s17 + $0xa8] sm:$0xff] }
  0x1f   : > { %583 = vrot.lane.b32.xlu1 %v5684_v30, %s5614_s18  ;;  %v434_v52 = vsel %vm5663_vm2, %v296_v37, %v383_v45  ;;  %v384_v56 = vrot.slane %v301_v50, 7  ;;  %v304_v61 = vrot.slane %v236_v55, 7  ;;  %v966_v9 = vsel %vm964_vm3, %v5564_v59, 0  ;;  %v191_v37 = vld [vmem:[%s5652_s17 + $0x98] sm:$0xff] }
  0x20   : > { %519 = vrot.lane.b32.xlu0 %v5670_v26, %s5615_s19  ;;  %v5725_v53 = vsel %vm412_vm0, %v434_v52, 0  ;;  %v303_v54 = vor.u32 %v301_v50, %v300_v49  ;;  %v385_v5 = vrot.slane %v305_v62, 7  ;;  %v239_v6 = vshrl.u32 %v210_v0, 16  ;;  %5249 = vmatpush3.bf16.msra.mxu0 %v966_v9  ;;  %v192_v50 = vld [vmem:[%s5652_s17 + $0xa0] sm:$0xff] }
  0x21   : > { %v435_v1 = vsel %vm5663_vm2, %v300_v49, %v384_v56  ;;  %v307_v2 = vor.u32 %v305_v62, %v304_v61  ;;  %v1186_v10 = vsel %vm964_vm3, %v5565_v63, 0  ;;  %v211_v12 = vpack.c.bf16 %v187_v7, %v186_v3  ;;  %5550 = vmatprep.subr.msk.bf16.mxu0 %vm964_vm3, %v5759_v8  ;;  %v194_v63 = vld [vmem:[%s5652_s17 + $0xb0] sm:$0xff] }
  0x22   : > { %v5738_v60 = vsel %vm5663_vm2, %v233_v43, %v303_v54  ;;  %v5753_v4 = vsel %vm412_vm0, %v435_v1, 0  ;;  %5299 = vmatpush3.bf16.msra.mxu1 %v1186_v10  ;;  %v436_v14 = vsel %vm5663_vm2, %v304_v61, %v385_v5  ;;  %v308_v15 = vrot.slane %v239_v6, 7 }
  0x23   : > { %513 = vrot.lane.b32.xlu1 %v5694_v36, %s5615_s19  ;;  %v5769_v11 = vsel %vm5663_vm2, %v236_v55, %v307_v2  ;;  %v309_v16 = vshll.u32 %v210_v0, 16  ;;  %v5780_v17 = vsel %vm412_vm0, %v436_v14, 0  ;;  %v242_v18 = vshrl.u32 %v211_v12, 16  ;;  %v195_v0 = vld [vmem:[%s5652_s17 + $0xb8] sm:$0xff]  ;;  %v196_v14 = vld [vmem:[%s5652_s17 + $0xc0] sm:$0xff] }
  0x24   : > { %517 = vrot.lane.b32.xlu0 %v5698_v40, %s5615_s19  ;;  %v313_v24 = vshll.u32 %v211_v12, 16  ;;  %v212_v25 = vpack.c.bf16 %v189_v22, %v188_v21  ;;  %v213_v42 = vpack.c.bf16 %v191_v37, %v190_v35  ;;  %v214_v56 = vpack.c.bf16 %v193_v51, %v192_v50 }
  0x25   : > { %v311_v19 = vor.u32 %v309_v16, %v308_v15  ;;  %v386_v20 = vrot.slane %v309_v16, 7  ;;  %v312_v23 = vrot.slane %v242_v18, 7  ;;  %v215_v2 = vpack.c.bf16 %v195_v0, %v194_v63  ;;  %v202_v63 = vld [vmem:[%s5652_s17 + $0xf0] sm:$0xff]  ;;  %v203_v0 = vld [vmem:[%s5652_s17 + $0xf8] sm:$0xff] }
  0x26   : > { %v245_v33 = vshrl.u32 %v212_v25, 16  ;;  %v387_v34 = vrot.slane %v313_v24, 7  ;;  %v317_v41 = vshll.u32 %v212_v25, 16  ;;  %v248_v47 = vshrl.u32 %v213_v42, 16 }
  0x27   : > { %577 = vrot.lane.b32.xlu1 %v5698_v40, %s5614_s18  ;;  %v5790_v27 = vsel %vm5663_vm2, %v239_v6, %v311_v19  ;;  %v437_v28 = vsel %vm5663_vm2, %v308_v15, %v386_v20  ;;  %v315_v32 = vor.u32 %v313_v24, %v312_v23  ;;  %v321_v55 = vshll.u32 %v213_v42, 16  ;;  %v197_v15 = vld [vmem:[%s5652_s17 + $0xc8] sm:$0xff] }
  0x28   : > { %581 = vrot.lane.b32.xlu0 %v5706_v44, %s5614_s18  ;;  %v5799_v31 = vsel %vm412_vm0, %v437_v28, 0  ;;  %v316_v39 = vrot.slane %v245_v33, 7  ;;  %v438_v43 = vsel %vm5663_vm2, %v312_v23, %v387_v34  ;;  %v388_v49 = vrot.slane %v317_v41, 7  ;;  %v198_v28 = vld [vmem:[%s5652_s17 + $0xd0] sm:$0xff] }
  0x29   : > { %v5809_v38 = vsel %vm5663_vm2, %v242_v18, %v315_v32  ;;  %v5818_v45 = vsel %vm412_vm0, %v438_v43, 0  ;;  %v320_v54 = vrot.slane %v248_v47, 7  ;;  %v389_v61 = vrot.slane %v321_v55, 7  ;;  %v199_v32 = vld [vmem:[%s5652_s17 + $0xd8] sm:$0xff] }
  0x2a   : > { %v319_v46 = vor.u32 %v317_v41, %v316_v39  ;;  %v439_v57 = vsel %vm5663_vm2, %v316_v39, %v388_v49  ;;  %v251_v62 = vshrl.u32 %v214_v56, 16  ;;  %v325_v6 = vshll.u32 %v214_v56, 16  ;;  %v201_v49 = vld [vmem:[%s5652_s17 + $0xe8] sm:$0xff] }
  0x2b   : > { %585 = vrot.lane.b32.xlu1 %v5716_v48, %s5614_s18  ;;  %v323_v58 = vor.u32 %v321_v55, %v320_v54  ;;  %v5837_v59 = vsel %vm412_vm0, %v439_v57, 0  ;;  %v440_v3 = vsel %vm5663_vm2, %v320_v54, %v389_v61  ;;  %v254_v9 = vshrl.u32 %v215_v2, 16 }
  0x2c   : > { %521 = vrot.lane.b32.xlu0 %v5706_v44, %s5615_s19  ;;  %v5828_v52 = vsel %vm5663_vm2, %v245_v33, %v319_v46  ;;  %v324_v5 = vrot.slane %v251_v62, 7  ;;  %v5856_v7 = vsel %vm412_vm0, %v440_v3, 0  ;;  %v390_v12 = vrot.slane %v325_v6, 7 }
  0x2d   : > { %v5847_v1 = vsel %vm5663_vm2, %v248_v47, %v323_v58  ;;  %v328_v16 = vrot.slane %v254_v9, 7  ;;  %v329_v18 = vshll.u32 %v215_v2, 16  ;;  %v216_v19 = vpack.c.bf16 %v197_v15, %v196_v14  ;;  %v200_v47 = vld [vmem:[%s5652_s17 + $0xe0] sm:$0xff] }
  0x2e   : > { %v327_v10 = vor.u32 %v325_v6, %v324_v5  ;;  %v441_v21 = vsel %vm5663_vm2, %v324_v5, %v390_v12  ;;  %v217_v37 = vpack.c.bf16 %v199_v32, %v198_v28  ;;  %v218_v55 = vpack.c.bf16 %v201_v49, %v200_v47 }
  0x2f   : > { %527 = vrot.lane.b32.xlu1 %v5725_v53, %s5615_s19  ;;  %v5875_v22 = vsel %vm412_vm0, %v441_v21, 0  ;;  %v331_v23 = vor.u32 %v329_v18, %v328_v16  ;;  %v257_v24 = vshrl.u32 %v216_v19, 16  ;;  %v391_v25 = vrot.slane %v329_v18, 7 }
  0x30   : > { %525 = vrot.lane.b32.xlu0 %v5716_v48, %s5615_s19  ;;  %v5866_v20 = vsel %vm5663_vm2, %v251_v62, %v327_v10  ;;  %v333_v35 = vshll.u32 %v216_v19, 16  ;;  %v260_v43 = vshrl.u32 %v217_v37, 16  ;;  %v337_v54 = vshll.u32 %v217_v37, 16 }
  0x31   : > { %v5885_v33 = vsel %vm5663_vm2, %v254_v9, %v331_v23  ;;  %v332_v34 = vrot.slane %v257_v24, 7  ;;  %v442_v39 = vsel %vm5663_vm2, %v328_v16, %v391_v25  ;;  %v263_v62 = vshrl.u32 %v218_v55, 16 }
  0x32   : > { %v5894_v41 = vsel %vm412_vm0, %v442_v39, 0  ;;  %v392_v46 = vrot.slane %v333_v35, 7  ;;  %v336_v51 = vrot.slane %v260_v43, 7  ;;  %v393_v61 = vrot.slane %v337_v54, 7 }
  0x33   : > { %589 = vrot.lane.b32.xlu1 %v5738_v60, %s5614_s18  ;;  %v335_v42 = vor.u32 %v333_v35, %v332_v34  ;;  %v219_v3 = vpack.c.bf16 %v203_v0, %v202_v63  ;;  %v340_v6 = vrot.slane %v263_v62, 7  ;;  %v341_v9 = vshll.u32 %v218_v55, 16 }
  0x34   : > { %523 = vrot.lane.b32.xlu0 %v5684_v30, %s5615_s19  ;;  %v443_v56 = vsel %vm5663_vm2, %v332_v34, %v392_v46  ;;  %v339_v57 = vor.u32 %v337_v54, %v336_v51  ;;  %v444_v5 = vsel %vm5663_vm2, %v336_v51, %v393_v61 }
  0x35   : > { %v5904_v50 = vsel %vm5663_vm2, %v257_v24, %v335_v42  ;;  %v5913_v58 = vsel %vm412_vm0, %v443_v56, 0  ;;  %v5932_v10 = vsel %vm412_vm0, %v444_v5, 0  ;;  %v266_v12 = vshrl.u32 %v219_v3, 16 }
  0x36   : > { %v5923_v2 = vsel %vm5663_vm2, %v260_v43, %v339_v57  ;;  %v343_v14 = vor.u32 %v341_v9, %v340_v6  ;;  %v394_v15 = vrot.slane %v341_v9, 7  ;;  %v345_v18 = vshll.u32 %v219_v3, 16 }
  0x37   : > { %587 = vrot.lane.b32.xlu1 %v5725_v53, %s5614_s18  ;;  %v344_v16 = vrot.slane %v266_v12, 7 }
  0x38   : > { %591 = vrot.lane.b32.xlu0 %v5753_v4, %s5614_s18  ;;  %v5940_v19 = vsel %vm5663_vm2, %v263_v62, %v343_v14  ;;  %v445_v21 = vsel %vm5663_vm2, %v340_v6, %v394_v15  ;;  %v395_v25 = vrot.slane %v345_v18, 7 }
  0x39   : > { %v5949_v23 = vsel %vm412_vm0, %v445_v21, 0  ;;  %v347_v24 = vor.u32 %v345_v18, %v344_v16 }
  0x3a   : > { %v446_v32 = vsel %vm5663_vm2, %v344_v16, %v395_v25 }
  0x3b   : > { %533 = vrot.lane.b32.xlu1 %v5769_v11, %s5615_s19  ;;  %v430_v28 = vsel %vm5663_vm2, %v266_v12, %v347_v24  ;;  %v480_v34 = vsel %vm412_vm0, %v446_v32, 0 }
  0x3c   : > { %531 = vrot.lane.b32.xlu0 %v5753_v4, %s5615_s19 }
  0x3f   : > { %595 = vrot.lane.b32.xlu1 %v5780_v17, %s5614_s18 }
  0x40   : > { %529 = vrot.lane.b32.xlu0 %v5738_v60, %s5615_s19 }
  0x43   : > { %593 = vrot.lane.b32.xlu1 %v5769_v11, %s5614_s18 }
  0x44   : > { %597 = vrot.lane.b32.xlu0 %v5790_v27, %s5614_s18 }
  0x47   : > { %599 = vrot.lane.b32.xlu1 %v5799_v31, %s5614_s18 }
  0x48   : > { %535 = vrot.lane.b32.xlu0 %v5780_v17, %s5615_s19 }
  0x4b   : > { %601 = vrot.lane.b32.xlu1 %v5809_v38, %s5614_s18 }
  0x4c   : > { %537 = vrot.lane.b32.xlu0 %v5790_v27, %s5615_s19 }
  0x4f   : > { %543 = vrot.lane.b32.xlu1 %v5818_v45, %s5615_s19 }
  0x50   : > { %541 = vrot.lane.b32.xlu0 %v5809_v38, %s5615_s19 }
  0x53   : > { %605 = vrot.lane.b32.xlu1 %v5828_v52, %s5614_s18 }
  0x54   : > { %539 = vrot.lane.b32.xlu0 %v5799_v31, %s5615_s19 }
  0x57   : > { %603 = vrot.lane.b32.xlu1 %v5818_v45, %s5614_s18 }
  0x58   : > { %607 = vrot.lane.b32.xlu0 %v5837_v59, %s5614_s18 }
  0x5b   : > { %549 = vrot.lane.b32.xlu1 %v5847_v1, %s5615_s19 }
  0x5c   : > { %547 = vrot.lane.b32.xlu0 %v5837_v59, %s5615_s19 }
  0x5f   : > { %611 = vrot.lane.b32.xlu1 %v5856_v7, %s5614_s18 }
  0x60   : > { %545 = vrot.lane.b32.xlu0 %v5828_v52, %s5615_s19 }
  0x63   : > { %609 = vrot.lane.b32.xlu1 %v5847_v1, %s5614_s18 }
  0x64   : > { %613 = vrot.lane.b32.xlu0 %v5866_v20, %s5614_s18 }
  0x67   : > { %615 = vrot.lane.b32.xlu1 %v5875_v22, %s5614_s18 }
  0x68   : > { %551 = vrot.lane.b32.xlu0 %v5856_v7, %s5615_s19 }
  0x6b   : > { %617 = vrot.lane.b32.xlu1 %v5885_v33, %s5614_s18 }
  0x6c   : > { %553 = vrot.lane.b32.xlu0 %v5866_v20, %s5615_s19 }
  0x6f   : > { %559 = vrot.lane.b32.xlu1 %v5894_v41, %s5615_s19 }
  0x70   : > { %557 = vrot.lane.b32.xlu0 %v5885_v33, %s5615_s19 }
  0x73   : > { %621 = vrot.lane.b32.xlu1 %v5904_v50, %s5614_s18 }
  0x74   : > { %555 = vrot.lane.b32.xlu0 %v5875_v22, %s5615_s19 }
  0x77   : > { %619 = vrot.lane.b32.xlu1 %v5894_v41, %s5614_s18 }
  0x78   : > { %623 = vrot.lane.b32.xlu0 %v5913_v58, %s5614_s18 }
  0x7b   : > { %565 = vrot.lane.b32.xlu1 %v5923_v2, %s5615_s19 }
  0x7c   : > { %563 = vrot.lane.b32.xlu0 %v5913_v58, %s5615_s19 }
  0x7f   : > { %627 = vrot.lane.b32.xlu1 %v5932_v10, %s5614_s18 }
  0x80   : > { %561 = vrot.lane.b32.xlu0 %v5904_v50, %s5615_s19 }
  0x83   : > { %625 = vrot.lane.b32.xlu1 %v5923_v2, %s5614_s18 }
  0x84   : > { %629 = vrot.lane.b32.xlu0 %v5940_v19, %s5614_s18 }
  0x87   : > { %631 = vrot.lane.b32.xlu1 %v5949_v23, %s5614_s18 }
  0x88   : > { %567 = vrot.lane.b32.xlu0 %v5932_v10, %s5615_s19 }
  0x8b   : > { %633 = vrot.lane.b32.xlu1 %v430_v28, %s5614_s18 }
  0x8c   : > { %569 = vrot.lane.b32.xlu0 %v5940_v19, %s5615_s19 }
  0x8d   : > { %v580_v35 = vpop.permute.xlu1 %579 }
  0x8e   : > { %v516_v37 = vpop.permute.xlu0 %515 }
  0x8f   : > { %575 = vrot.lane.b32.xlu1 %v480_v34, %s5615_s19  ;;  %v642_v49 = vsel %vm637_vm4, %v5670_v26, %v516_v37 }
  0x90   : > { %573 = vrot.lane.b32.xlu0 %v430_v28, %s5615_s19 }
  0x91   : > { %v584_v39 = vpop.permute.xlu1 %583 }
  0x92   : > { %v520_v42 = vpop.permute.xlu0 %519 }
  0x93   : > { %635 = vrot.lane.b32.xlu1 %v480_v34, %s5614_s18  ;;  %v647_v46 = vsel %vm637_vm4, %v5679_v29, %v520_v42  ;;  %v721_v29 = vsel %vm717_vm5, %v642_v49, %v580_v35 }
  0x94   : > { %571 = vrot.lane.b32.xlu0 %v5949_v23, %s5615_s19  ;;  %v725_v51 = vsel %vm717_vm5, %v647_v46, %v584_v39 }
  0x95   : > { %v514_v43 = vpop.permute.xlu1 %513  ;;  %v817_v63 = vunpack.c.l.b16 %v725_v51 }
  0x96   : > { %v518_v47 = vpop.permute.xlu0 %517  ;;  %v640_v54 = vsel %vm637_vm4, %v5698_v40, %v514_v43 }
  0x97   : > { %v645_v56 = vsel %vm637_vm4, %v5694_v36, %v518_v47  ;;  %v1615_v36 = vsel %vm964_vm3, %v5759_v8, 0 }
  0x99   : > { %v578_v55 = vpop.permute.xlu1 %577 }
  0x9a   : > { %v582_v57 = vpop.permute.xlu0 %581  ;;  %v5978_v61 = vsel %vm717_vm5, %v640_v54, %v578_v55 }
  0x9b   : > { %v723_v62 = vsel %vm717_vm5, %v645_v56, %v582_v57  ;;  %5250 = vmatprep.mubr.msk.bf16.mxu0 %vm891_vm6, %v5978_v61  ;;  %5300 = vmatprep.mubr.msk.bf16.mxu1 %vm891_vm6, %v5978_v61 }
  0x9c   : > { %v816_v0 = vunpack.c.h.b16 %v723_v62  ;;  %v5986_v3 = vcombine.low %v721_v29, %v723_v62 }
  0x9d   : > { %v586_v5 = vpop.permute.xlu1 %585 }
  0x9e   : > { %v5990_v6 = vpack.c.b16 %v817_v63, %v816_v0  ;;  %v522_v9 = vpop.permute.xlu0 %521  ;;  %5251 = vmatmul.mubr.msk.bf16.vlgmr.msra.gmra.mrb[0].mxu0 %vm891_vm6, %v5986_v3  ;;  %5301 = vmatmul.mubr.msk.bf16.vlgmr.msra.gmra.mrb[0].mxu1 %vm891_vm6, %v5986_v3 }
  0x9f   : > { %5349 = vmatpush3.bf16.msra.mxu0 %v1615_v36  ;;  %v649_v8 = vsel %vm637_vm4, %v5698_v40, %v522_v9 }
  0xa0   : > { %5254 = vmatprep.mubr.msk.bf16.mxu0 %vm891_vm6, %v5990_v6  ;;  %5304 = vmatprep.mubr.msk.bf16.mxu1 %vm891_vm6, %v5990_v6  ;;  %v6003_v15 = vsel %vm717_vm5, %v649_v8, %v586_v5 }
  0xa1   : > { %v528_v12 = vpop.permute.xlu1 %527 }
  0xa2   : > { %v526_v14 = vpop.permute.xlu0 %525  ;;  %v656_v28 = vsel %vm637_vm4, %v5684_v30, %v528_v12 }
  0xa3   : > { %v654_v21 = vsel %vm637_vm4, %v5706_v44, %v526_v14 }
  0xa5   : > { %v590_v16 = vpop.permute.xlu1 %589 }
  0xa6   : > { %v524_v18 = vpop.permute.xlu0 %523  ;;  %5255 = vmatmul.mubr.msk.bf16.gmra.mrb[4].mxu0 %vm891_vm6, %v6003_v15  ;;  %5305 = vmatmul.mubr.msk.bf16.gmra.mrb[4].mxu1 %vm891_vm6, %v6003_v15  ;;  %v731_v40 = vsel %vm717_vm5, %v654_v21, %v590_v16 }
  0xa7   : > { %v651_v24 = vsel %vm637_vm4, %v5670_v26, %v524_v18  ;;  %v822_v39 = vunpack.c.h.b16 %v731_v40 }
  0xa9   : > { %v588_v25 = vpop.permute.xlu1 %587 }
  0xaa   : > { %v592_v32 = vpop.permute.xlu0 %591  ;;  %v729_v34 = vsel %vm717_vm5, %v651_v24, %v588_v25 }
  0xab   : > { %v733_v35 = vsel %vm717_vm5, %v656_v28, %v592_v32  ;;  %v6018_v37 = vcombine.low %v729_v34, %v731_v40 }
  0xac   : > { %v823_v42 = vunpack.c.l.b16 %v733_v35 }
  0xad   : > { %v534_v43 = vpop.permute.xlu1 %533  ;;  %5258 = vmatprep.mubr.msk.bf16.mxu0 %vm891_vm6, %v6018_v37  ;;  %5308 = vmatprep.mubr.msk.bf16.mxu1 %vm891_vm6, %v6018_v37 }
  0xae   : > { %v6024_v26 = vpack.c.b16 %v823_v42, %v822_v39  ;;  %v532_v44 = vpop.permute.xlu0 %531  ;;  %v664_v54 = vsel %vm637_vm4, %v5738_v60, %v534_v43 }
  0xaf   : > { %v661_v51 = vsel %vm637_vm4, %v5725_v53, %v532_v44 }
  0xb0   : > { %5259 = vmatmul.mubr.msk.bf16.gmra.mrb[8].mxu0 %vm891_vm6, %v6024_v26  ;;  %5309 = vmatmul.mubr.msk.bf16.gmra.mrb[8].mxu1 %vm891_vm6, %v6024_v26 }
  0xb1   : > { %v596_v30 = vpop.permute.xlu1 %595 }
  0xb2   : > { %v530_v46 = vpop.permute.xlu0 %529  ;;  %v737_v57 = vsel %vm717_vm5, %v661_v51, %v596_v30 }
  0xb3   : > { %v659_v47 = vsel %vm637_vm4, %v5716_v48, %v530_v46 }
  0xb5   : > { %v594_v49 = vpop.permute.xlu1 %593 }
  0xb6   : > { %v598_v55 = vpop.permute.xlu0 %597  ;;  %v6037_v56 = vsel %vm717_vm5, %v659_v47, %v594_v49 }
  0xb7   : > { %v739_v29 = vsel %vm717_vm5, %v664_v54, %v598_v55  ;;  %5262 = vmatprep.mubr.msk.bf16.mxu0 %vm891_vm6, %v6037_v56  ;;  %5312 = vmatprep.mubr.msk.bf16.mxu1 %vm891_vm6, %v6037_v56 }
  0xb8   : > { %v6045_v48 = vcombine.low %v737_v57, %v739_v29  ;;  %v828_v0 = vunpack.c.h.b16 %v739_v29 }
  0xb9   : > { %v600_v53 = vpop.permute.xlu1 %599 }
  0xba   : > { %v536_v62 = vpop.permute.xlu0 %535  ;;  %5263 = vmatmul.mubr.msk.bf16.gmra.mrb[12].mxu0 %vm891_vm6, %v6045_v48  ;;  %5313 = vmatmul.mubr.msk.bf16.gmra.mrb[12].mxu1 %vm891_vm6, %v6045_v48 }
  0xbb   : > { %v666_v60 = vsel %vm637_vm4, %v5753_v4, %v536_v62 }
  0xbc   : > { %v741_v63 = vsel %vm717_vm5, %v666_v60, %v600_v53 }
  0xbd   : > { %v829_v36 = vunpack.c.l.b16 %v741_v63  ;;  %v602_v5 = vpop.permute.xlu1 %601 }
  0xbe   : > { %v538_v9 = vpop.permute.xlu0 %537 }
  0xbf   : > { %v6054_v12 = vpack.c.b16 %v829_v36, %v828_v0  ;;  %v669_v8 = vsel %vm637_vm4, %v5769_v11, %v538_v9 }
  0xc0   : > { %v6059_v14 = vsel %vm717_vm5, %v669_v8, %v602_v5 }
  0xc1   : > { %5266 = vmatprep.mubr.msk.bf16.mxu0 %vm891_vm6, %v6054_v12  ;;  %5316 = vmatprep.mubr.msk.bf16.mxu1 %vm891_vm6, %v6054_v12  ;;  %v544_v4 = vpop.permute.xlu1 %543 }
  0xc2   : > { %v542_v16 = vpop.permute.xlu0 %541  ;;  %5267 = vmatmul.mubr.msk.bf16.gmra.mrb[16].mxu0 %vm891_vm6, %v6059_v14  ;;  %5317 = vmatmul.mubr.msk.bf16.gmra.mrb[16].mxu1 %vm891_vm6, %v6059_v14  ;;  %v676_v28 = vsel %vm637_vm4, %v5799_v31, %v544_v4 }
  0xc3   : > { %v674_v11 = vsel %vm637_vm4, %v5790_v27, %v542_v16 }
  0xc5   : > { %v606_v18 = vpop.permute.xlu1 %605 }
  0xc6   : > { %v540_v21 = vpop.permute.xlu0 %539  ;;  %v747_v40 = vsel %vm717_vm5, %v674_v11, %v606_v18 }
  0xc7   : > { %v671_v24 = vsel %vm637_vm4, %v5780_v17, %v540_v21  ;;  %v834_v42 = vunpack.c.h.b16 %v747_v40 }
  0xc9   : > { %v604_v25 = vpop.permute.xlu1 %603 }
  0xca   : > { %v608_v32 = vpop.permute.xlu0 %607  ;;  %v745_v34 = vsel %vm717_vm5, %v671_v24, %v604_v25 }
  0xcb   : > { %v749_v35 = vsel %vm717_vm5, %v676_v28, %v608_v32  ;;  %v6078_v39 = vcombine.low %v745_v34, %v747_v40 }
  0xcc   : > { %v835_v43 = vunpack.c.l.b16 %v749_v35 }
  0xcd   : > { %v550_v44 = vpop.permute.xlu1 %549  ;;  %5270 = vmatprep.mubr.msk.bf16.mxu0 %vm891_vm6, %v6078_v39  ;;  %5320 = vmatprep.mubr.msk.bf16.mxu1 %vm891_vm6, %v6078_v39 }
  0xce   : > { %v6084_v17 = vpack.c.b16 %v835_v43, %v834_v42  ;;  %v548_v27 = vpop.permute.xlu0 %547  ;;  %v684_v51 = vsel %vm637_vm4, %v5828_v52, %v550_v44 }
  0xcf   : > { %v681_v49 = vsel %vm637_vm4, %v5818_v45, %v548_v27 }
  0xd0   : > { %5271 = vmatmul.mubr.msk.bf16.gmra.mrb[20].mxu0 %vm891_vm6, %v6084_v17  ;;  %5321 = vmatmul.mubr.msk.bf16.gmra.mrb[20].mxu1 %vm891_vm6, %v6084_v17 }
  0xd1   : > { %v612_v31 = vpop.permute.xlu1 %611 }
  0xd2   : > { %v546_v30 = vpop.permute.xlu0 %545  ;;  %v753_v57 = vsel %vm717_vm5, %v681_v49, %v612_v31 }
  0xd3   : > { %v679_v46 = vsel %vm637_vm4, %v5809_v38, %v546_v30 }
  0xd5   : > { %v610_v47 = vpop.permute.xlu1 %609 }
  0xd6   : > { %v614_v54 = vpop.permute.xlu0 %613  ;;  %v6097_v55 = vsel %vm717_vm5, %v679_v46, %v610_v47 }
  0xd7   : > { %v755_v29 = vsel %vm717_vm5, %v684_v51, %v614_v54  ;;  %5274 = vmatprep.mubr.msk.bf16.mxu0 %vm891_vm6, %v6097_v55  ;;  %5324 = vmatprep.mubr.msk.bf16.mxu1 %vm891_vm6, %v6097_v55 }
  0xd8   : > { %v6105_v38 = vcombine.low %v753_v57, %v755_v29  ;;  %v840_v60 = vunpack.c.h.b16 %v755_v29 }
  0xd9   : > { %v616_v45 = vpop.permute.xlu1 %615 }
  0xda   : > { %v552_v53 = vpop.permute.xlu0 %551  ;;  %5275 = vmatmul.mubr.msk.bf16.gmra.mrb[24].mxu0 %vm891_vm6, %v6105_v38  ;;  %5325 = vmatmul.mubr.msk.bf16.gmra.mrb[24].mxu1 %vm891_vm6, %v6105_v38 }
  0xdb   : > { %v686_v52 = vsel %vm637_vm4, %v5837_v59, %v552_v53 }
  0xdc   : > { %v757_v62 = vsel %vm717_vm5, %v686_v52, %v616_v45 }
  0xdd   : > { %v841_v63 = vunpack.c.l.b16 %v757_v62  ;;  %v618_v0 = vpop.permute.xlu1 %617 }
  0xde   : > { %v554_v36 = vpop.permute.xlu0 %553 }
  0xdf   : > { %v6114_v5 = vpack.c.b16 %v841_v63, %v840_v60  ;;  %v689_v9 = vsel %vm637_vm4, %v5847_v1, %v554_v36 }
  0xe0   : > { %v6119_v8 = vsel %vm717_vm5, %v689_v9, %v618_v0 }
  0xe1   : > { %5278 = vmatprep.mubr.msk.bf16.mxu0 %vm891_vm6, %v6114_v5  ;;  %5328 = vmatprep.mubr.msk.bf16.mxu1 %vm891_vm6, %v6114_v5  ;;  %v560_v59 = vpop.permute.xlu1 %559 }
  0xe2   : > { %v558_v4 = vpop.permute.xlu0 %557  ;;  %5279 = vmatmul.mubr.msk.bf16.gmra.mrb[28].mxu0 %vm891_vm6, %v6119_v8  ;;  %5329 = vmatmul.mubr.msk.bf16.gmra.mrb[28].mxu1 %vm891_vm6, %v6119_v8  ;;  %v696_v40 = vsel %vm637_vm4, %v5875_v22, %v560_v59 }
  0xe3   : > { %v694_v1 = vsel %vm637_vm4, %v5866_v20, %v558_v4 }
  0xe5   : > { %v622_v16 = vpop.permute.xlu1 %621 }
  0xe6   : > { %v556_v18 = vpop.permute.xlu0 %555  ;;  %v763_v11 = vsel %vm717_vm5, %v694_v1, %v622_v16 }
  0xe7   : > { %v691_v21 = vsel %vm637_vm4, %v5856_v7, %v556_v18  ;;  %v846_v35 = vunpack.c.h.b16 %v763_v11 }
  0xe9   : > { %v620_v24 = vpop.permute.xlu1 %619 }
  0xea   : > { %v624_v25 = vpop.permute.xlu0 %623  ;;  %v761_v28 = vsel %vm717_vm5, %v691_v21, %v620_v24 }
  0xeb   : > { %v765_v32 = vsel %vm717_vm5, %v696_v40, %v624_v25  ;;  %v6138_v34 = vcombine.low %v761_v28, %v763_v11 }
  0xec   : > { %v847_v42 = vunpack.c.l.b16 %v765_v32 }
  0xed   : > { %v566_v43 = vpop.permute.xlu1 %565  ;;  %5282 = vmatprep.mubr.msk.bf16.mxu0 %vm891_vm6, %v6138_v34  ;;  %5332 = vmatprep.mubr.msk.bf16.mxu1 %vm891_vm6, %v6138_v34 }
  0xee   : > { %v6144_v7 = vpack.c.b16 %v847_v42, %v846_v35  ;;  %v564_v20 = vpop.permute.xlu0 %563  ;;  %v704_v46 = vsel %vm637_vm4, %v5904_v50, %v566_v43 }
  0xef   : > { %v701_v30 = vsel %vm637_vm4, %v5894_v41, %v564_v20 }
  0xf0   : > { %5283 = vmatmul.mubr.msk.bf16.gmra.mrb[32].mxu0 %vm891_vm6, %v6144_v7  ;;  %5333 = vmatmul.mubr.msk.bf16.gmra.mrb[32].mxu1 %vm891_vm6, %v6144_v7 }
  0xf1   : > { %v628_v22 = vpop.permute.xlu1 %627 }
  0xf2   : > { %v562_v44 = vpop.permute.xlu0 %561  ;;  %v769_v51 = vsel %vm717_vm5, %v701_v30, %v628_v22 }
  0xf3   : > { %v699_v27 = vsel %vm637_vm4, %v5885_v33, %v562_v44 }
  0xf5   : > { %v626_v31 = vpop.permute.xlu1 %625 }
  0xf6   : > { %v630_v47 = vpop.permute.xlu0 %629  ;;  %v767_v49 = vsel %vm717_vm5, %v699_v27, %v626_v31 }
  0xf7   : > { %v771_v54 = vsel %vm717_vm5, %v704_v46, %v630_v47  ;;  %5286 = vmatprep.mubr.msk.bf16.mxu0 %vm891_vm6, %v767_v49  ;;  %5336 = vmatprep.mubr.msk.bf16.mxu1 %vm891_vm6, %v767_v49 }
  0xf8   : > { %v4926_v57 = vcombine.low %v769_v51, %v771_v54  ;;  %v852_v45 = vunpack.c.h.b16 %v771_v54 }
  0xf9   : > { %v632_v33 = vpop.permute.xlu1 %631 }
  0xfa   : > { %v568_v29 = vpop.permute.xlu0 %567  ;;  %5287 = vmatmul.mubr.msk.bf16.gmra.mrb[36].mxu0 %vm891_vm6, %v4926_v57  ;;  %5337 = vmatmul.mubr.msk.bf16.gmra.mrb[36].mxu1 %vm891_vm6, %v4926_v57 }
  0xfb   : > { %v706_v41 = vsel %vm637_vm4, %v5913_v58, %v568_v29 }
  0xfc   : > { %v773_v50 = vsel %vm717_vm5, %v706_v41, %v632_v33 }
  0xfd   : > { %v853_v53 = vunpack.c.l.b16 %v773_v50  ;;  %v634_v52 = vpop.permute.xlu1 %633 }
  0xfe   : > { %v570_v62 = vpop.permute.xlu0 %569 }
  0xff   : > { %v882_v60 = vpack.c.b16 %v853_v53, %v852_v45  ;;  %v709_v63 = vsel %vm637_vm4, %v5923_v2, %v570_v62 }
 0x100   : > { %v775_v0 = vsel %vm717_vm5, %v709_v63, %v634_v52 }
 0x101   : > { %5290 = vmatprep.mubr.msk.bf16.mxu0 %vm891_vm6, %v882_v60  ;;  %5340 = vmatprep.mubr.msk.bf16.mxu1 %vm891_vm6, %v882_v60  ;;  %v576_v36 = vpop.permute.xlu1 %575 }
 0x102   : > { %v574_v9 = vpop.permute.xlu0 %573  ;;  %v716_v58 = vsel %vm637_vm4, %v5949_v23, %v576_v36  ;;  %5291 = vmatmul.mubr.msk.bf16.gmra.mrb[40].mxu0 %vm891_vm6, %v775_v0  ;;  %5341 = vmatmul.mubr.msk.bf16.gmra.mrb[40].mxu1 %vm891_vm6, %v775_v0 }
 0x103   : > { %v714_v59 = vsel %vm637_vm4, %v5940_v19, %v574_v9  ;;  %v779_v2 = vsel %vm717_vm5, %v716_v58, %v632_v33 }
 0x104   : > { %v778_v4 = vsel %vm717_vm5, %v714_v59, %v630_v47  ;;  %v859_v18 = vunpack.c.l.b16 %v779_v2 }
 0x105   : > { %v636_v16 = vpop.permute.xlu1 %635  ;;  %v858_v21 = vunpack.c.h.b16 %v778_v4 }
 0x106   : > { %v572_v1 = vpop.permute.xlu0 %571 }
 0x107   : > { %v711_v11 = vsel %vm637_vm4, %v5932_v10, %v572_v1  ;;  %v885_v40 = vpack.c.b16 %v859_v18, %v858_v21 }
 0x108   : > { %v777_v23 = vsel %vm717_vm5, %v711_v11, %v636_v16 }
 0x109   : > { %v4927_v24 = vcombine.low %v777_v23, %v778_v4 }
 0x10b   : > { %5294 = vmatprep.mubr.msk.bf16.mxu0 %vm891_vm6, %v4927_v24  ;;  %5344 = vmatprep.mubr.msk.bf16.mxu1 %vm891_vm6, %v4927_v24 }
 0x10c   : > { %5295 = vmatmul.mubr.msk.bf16.gmra.mrb[44].mxu0 %vm891_vm6, %v885_v40  ;;  %5345 = vmatmul.mubr.msk.bf16.gmra.mrb[44].mxu1 %vm891_vm6, %v885_v40 }
 0x10d   : > { %5350 = vmatprep.mubr.msk.bf16.mxu0 %vm891_vm6, %v5978_v61 }
 0x114   : > { %5351 = vmatmul.mubr.msk.bf16.vlgmr.msra.gmra.mrb[48].mxu0 %vm891_vm6, %v5986_v3 }
 0x115   : > { %5354 = vmatprep.mubr.msk.bf16.mxu0 %vm891_vm6, %v5990_v6 }
 0x11c   : > { %5355 = vmatmul.mubr.msk.bf16.gmra.mrb[52].mxu0 %vm891_vm6, %v6003_v15 }
 0x11d   : > { %5358 = vmatprep.mubr.msk.bf16.mxu0 %vm891_vm6, %v6018_v37 }
 0x124   : > { %5359 = vmatmul.mubr.msk.bf16.gmra.mrb[56].mxu0 %vm891_vm6, %v6024_v26 }
 0x125   : > { %5362 = vmatprep.mubr.msk.bf16.mxu0 %vm891_vm6, %v6037_v56 }
 0x12c   : > { %5363 = vmatmul.mubr.msk.bf16.gmra.mrb[60].mxu0 %vm891_vm6, %v6045_v48 }
 0x12d   : > { %5366 = vmatprep.mubr.msk.bf16.mxu0 %vm891_vm6, %v6054_v12 }
 0x134   : > { %5367 = vmatmul.mubr.msk.bf16.gmra.mrb[64].mxu0 %vm891_vm6, %v6059_v14 }
 0x135   : > { %5370 = vmatprep.mubr.msk.bf16.mxu0 %vm891_vm6, %v6078_v39 }
 0x13c   : > { %5371 = vmatmul.mubr.msk.bf16.gmra.mrb[68].mxu0 %vm891_vm6, %v6084_v17 }
 0x13d   : > { %5374 = vmatprep.mubr.msk.bf16.mxu0 %vm891_vm6, %v6097_v55 }
 0x144   : > { %5375 = vmatmul.mubr.msk.bf16.gmra.mrb[72].mxu0 %vm891_vm6, %v6105_v38 }
 0x145   : > { %5378 = vmatprep.mubr.msk.bf16.mxu0 %vm891_vm6, %v6114_v5 }
 0x14c   : > { %5379 = vmatmul.mubr.msk.bf16.gmra.mrb[76].mxu0 %vm891_vm6, %v6119_v8 }
 0x14d   : > { %5382 = vmatprep.mubr.msk.bf16.mxu0 %vm891_vm6, %v6138_v34 }
 0x154   : > { %5383 = vmatmul.mubr.msk.bf16.gmra.mrb[80].mxu0 %vm891_vm6, %v6144_v7 }
 0x155   : > { %5386 = vmatprep.mubr.msk.bf16.mxu0 %vm891_vm6, %v767_v49 }
 0x15c   : > { %5387 = vmatmul.mubr.msk.bf16.gmra.mrb[84].mxu0 %vm891_vm6, %v4926_v57 }
 0x15d   : > { %5390 = vmatprep.mubr.msk.bf16.mxu0 %vm891_vm6, %v882_v60 }
 0x164   : > { %5391 = vmatmul.mubr.msk.bf16.gmra.mrb[88].mxu0 %vm891_vm6, %v775_v0 }
 0x165   : > { %5394 = vmatprep.mubr.msk.bf16.mxu0 %vm891_vm6, %v4927_v24 }
 0x16c   : > { %5395 = vmatmul.mubr.msk.bf16.gmra.mrb[92].mxu0 %vm891_vm6, %v885_v40 }
 0x171   : > { %v5252_v10 = vpop.f32.mrb[0].mxu0  ;;  %v5302_v19 = vpop.f32.mrb[0].mxu1 }
 0x172   : > { %v1002_v61 = vpop.f32.mrb[1].mxu0  ;;  %v1222_v3 = vpop.f32.mrb[1].mxu1  ;;  %v1465_v56 = vrot.slane %v5302_v19, 1 }
 0x173   : > { %v5253_v6 = vpop.f32.mrb[2].mxu0  ;;  %v5303_v15 = vpop.f32.mrb[2].mxu1  ;;  %v1462_v48 = vrot.slane %v1222_v3, 1 }
 0x174   : > { %v1005_v37 = vpop.f32.mrb[3].mxu0  ;;  %v1225_v26 = vpop.f32.mrb[3].mxu1  ;;  %v1467_v28 = vrot.slane %v5303_v15, 1 }
 0x175   : > { %v1463_v12 = vrot.slane %v1225_v26, 1 }
 0x177   : > { %v1464_v14 = vsel %vm1461_vm7, %v1462_v48, %v1463_v12  ;;  %v1466_v39 = vsel %vm1461_vm7, %v1463_v12, %v1465_v56 }
 0x178   : > { %v6230_v17 = vadd.f32 %v1464_v14, %v1002_v61  ;;  %v6232_v55 = vadd.f32 %v1466_v39, %v1005_v37 }
 0x179   : > { %v5256_v38 = vpop.f32.mrb[4].mxu0  ;;  %v5306_v5 = vpop.f32.mrb[4].mxu1 }
 0x17a   : > { %v1017_v8 = vpop.f32.mrb[5].mxu0  ;;  %v1238_v25 = vpop.f32.mrb[5].mxu1  ;;  %v1472_v42 = vrot.slane %v5306_v5, 1 }
 0x17b   : > { %v1468_v32 = vrot.slane %v1238_v25, 1  ;;  %v5257_v34 = vpop.f32.mrb[6].mxu0  ;;  %v5307_v35 = vpop.f32.mrb[6].mxu1 }
 0x17c   : > { %v1473_v43 = vrot.slane %v5307_v35, 1  ;;  %v1020_v7 = vpop.f32.mrb[7].mxu0  ;;  %v1241_v20 = vpop.f32.mrb[7].mxu1 }
 0x17d   : > { %v1469_v22 = vsel %vm1461_vm7, %v1467_v28, %v1468_v32  ;;  %v1470_v44 = vrot.slane %v1241_v20, 1 }
 0x17e   : > { %v6235_v27 = vadd.f32 %v5253_v6, %v1469_v22  ;;  %v1474_v31 = vsel %vm1461_vm7, %v1472_v42, %v1473_v43 }
 0x17f   : > { %v6238_v30 = vadd.f32 %v5256_v38, %v1474_v31  ;;  %v1471_v46 = vsel %vm1461_vm7, %v1468_v32, %v1470_v44 }
 0x180   : > { %v6241_v47 = vadd.f32 %v1471_v46, %v1017_v8 }
 0x183   : > { %v5260_v49 = vpop.f32.mrb[8].mxu0  ;;  %v5310_v51 = vpop.f32.mrb[8].mxu1 }
 0x184   : > { %v1032_v54 = vpop.f32.mrb[9].mxu0  ;;  %v1254_v57 = vpop.f32.mrb[9].mxu1  ;;  %v1478_v50 = vrot.slane %v5310_v51, 1 }
 0x185   : > { %v1475_v33 = vrot.slane %v1254_v57, 1  ;;  %v5261_v29 = vpop.f32.mrb[10].mxu0  ;;  %v5311_v41 = vpop.f32.mrb[10].mxu1 }
 0x186   : > { %v1480_v45 = vrot.slane %v5311_v41, 1  ;;  %v1034_v53 = vpop.f32.mrb[11].mxu0  ;;  %v1257_v52 = vpop.f32.mrb[11].mxu1 }
 0x187   : > { %v1476_v62 = vsel %vm1461_vm7, %v1473_v43, %v1475_v33  ;;  %v1477_v60 = vrot.slane %v1257_v52, 1 }
 0x188   : > { %v6244_v63 = vadd.f32 %v5257_v34, %v1476_v62  ;;  %v1481_v0 = vsel %vm1461_vm7, %v1478_v50, %v1480_v45 }
 0x189   : > { %v6247_v36 = vadd.f32 %v5260_v49, %v1481_v0  ;;  %v1479_v9 = vsel %vm1461_vm7, %v1477_v60, %v1478_v50 }
 0x18a   : > { %v6250_v58 = vadd.f32 %v1479_v9, %v1034_v53 }
 0x18d   : > { %v5264_v59 = vpop.f32.mrb[12].mxu0  ;;  %v5314_v2 = vpop.f32.mrb[12].mxu1 }
 0x18e   : > { %v1046_v4 = vpop.f32.mrb[13].mxu0  ;;  %v1270_v16 = vpop.f32.mrb[13].mxu1  ;;  %v1485_v23 = vrot.slane %v5314_v2, 1 }
 0x18f   : > { %v5265_v18 = vpop.f32.mrb[14].mxu0  ;;  %v5315_v1 = vpop.f32.mrb[14].mxu1  ;;  %v1482_v24 = vrot.slane %v1270_v16, 1 }
 0x190   : > { %v1049_v21 = vpop.f32.mrb[15].mxu0  ;;  %v1273_v11 = vpop.f32.mrb[15].mxu1  ;;  %v1487_v56 = vrot.slane %v5315_v1, 1 }
 0x191   : > { %v1483_v40 = vrot.slane %v1273_v11, 1 }
 0x193   : > { %v1484_v10 = vsel %vm1461_vm7, %v1482_v24, %v1483_v40  ;;  %v1486_v19 = vsel %vm1461_vm7, %v1483_v40, %v1485_v23 }
 0x194   : > { %v6254_v61 = vadd.f32 %v1484_v10, %v1046_v4  ;;  %v6256_v3 = vadd.f32 %v1486_v19, %v1049_v21 }
 0x195   : > { %v5268_v6 = vpop.f32.mrb[16].mxu0  ;;  %v5318_v15 = vpop.f32.mrb[16].mxu1 }
 0x196   : > { %v1061_v37 = vpop.f32.mrb[17].mxu0  ;;  %v1286_v26 = vpop.f32.mrb[17].mxu1  ;;  %v1492_v39 = vrot.slane %v5318_v15, 1 }
 0x197   : > { %v1488_v48 = vrot.slane %v1286_v26, 1  ;;  %v5269_v12 = vpop.f32.mrb[18].mxu0  ;;  %v5319_v14 = vpop.f32.mrb[18].mxu1 }
 0x198   : > { %v1493_v38 = vrot.slane %v5319_v14, 1  ;;  %v1064_v5 = vpop.f32.mrb[19].mxu0  ;;  %v1289_v8 = vpop.f32.mrb[19].mxu1 }
 0x199   : > { %v1489_v25 = vsel %vm1461_vm7, %v1487_v56, %v1488_v48  ;;  %v1490_v28 = vrot.slane %v1289_v8, 1 }
 0x19a   : > { %v6259_v32 = vadd.f32 %v5265_v18, %v1489_v25  ;;  %v1494_v34 = vsel %vm1461_vm7, %v1492_v39, %v1493_v38 }
 0x19b   : > { %v6262_v35 = vadd.f32 %v5268_v6, %v1494_v34  ;;  %v1491_v42 = vsel %vm1461_vm7, %v1488_v48, %v1490_v28 }
 0x19c   : > { %v6265_v43 = vadd.f32 %v1491_v42, %v1061_v37 }
 0x1a3   : > { %v5272_v7 = vpop.f32.mrb[20].mxu0  ;;  %v5322_v20 = vpop.f32.mrb[20].mxu1 }
 0x1a4   : > { %v1076_v22 = vpop.f32.mrb[21].mxu0  ;;  %v1302_v44 = vpop.f32.mrb[21].mxu1  ;;  %v1498_v51 = vrot.slane %v5322_v20, 1 }
 0x1a5   : > { %v1495_v31 = vrot.slane %v1302_v44, 1  ;;  %v5273_v46 = vpop.f32.mrb[22].mxu0  ;;  %v5323_v49 = vpop.f32.mrb[22].mxu1 }
 0x1a6   : > { %v1500_v54 = vrot.slane %v5323_v49, 1  ;;  %v1078_v57 = vpop.f32.mrb[23].mxu0  ;;  %v1305_v33 = vpop.f32.mrb[23].mxu1 }
 0x1a7   : > { %v1496_v29 = vsel %vm1461_vm7, %v1493_v38, %v1495_v31  ;;  %v1497_v41 = vrot.slane %v1305_v33, 1 }
 0x1a8   : > { %v6268_v50 = vadd.f32 %v5269_v12, %v1496_v29  ;;  %v1501_v45 = vsel %vm1461_vm7, %v1498_v51, %v1500_v54 }
 0x1a9   : > { %v6271_v53 = vadd.f32 %v5272_v7, %v1501_v45  ;;  %v1499_v52 = vsel %vm1461_vm7, %v1497_v41, %v1498_v51 }
 0x1aa   : > { %v6274_v62 = vadd.f32 %v1499_v52, %v1078_v57 }
 0x1ad   : > { %v5276_v60 = vpop.f32.mrb[24].mxu0  ;;  %v5326_v0 = vpop.f32.mrb[24].mxu1 }
 0x1ae   : > { %v1090_v9 = vpop.f32.mrb[25].mxu0  ;;  %v1318_v59 = vpop.f32.mrb[25].mxu1  ;;  %v1505_v1 = vrot.slane %v5326_v0, 1 }
 0x1af   : > { %v5277_v2 = vpop.f32.mrb[26].mxu0  ;;  %v5327_v4 = vpop.f32.mrb[26].mxu1  ;;  %v1502_v21 = vrot.slane %v1318_v59, 1 }
 0x1b0   : > { %v1093_v16 = vpop.f32.mrb[27].mxu0  ;;  %v1321_v18 = vpop.f32.mrb[27].mxu1  ;;  %v1507_v26 = vrot.slane %v5327_v4, 1 }
 0x1b1   : > { %v1503_v11 = vrot.slane %v1321_v18, 1 }
 0x1b3   : > { %v1504_v23 = vsel %vm1461_vm7, %v1502_v21, %v1503_v11  ;;  %v1506_v24 = vsel %vm1461_vm7, %v1503_v11, %v1505_v1 }
 0x1b4   : > { %v6278_v40 = vadd.f32 %v1504_v23, %v1090_v9  ;;  %v6280_v10 = vadd.f32 %v1506_v24, %v1093_v16 }
 0x1b5   : > { %v5280_v19 = vpop.f32.mrb[28].mxu0  ;;  %v5330_v6 = vpop.f32.mrb[28].mxu1 }
 0x1b6   : > { %v1105_v15 = vpop.f32.mrb[29].mxu0  ;;  %v1334_v37 = vpop.f32.mrb[29].mxu1  ;;  %v1512_v14 = vrot.slane %v5330_v6, 1 }
 0x1b7   : > { %v1508_v56 = vrot.slane %v1334_v37, 1  ;;  %v5281_v48 = vpop.f32.mrb[30].mxu0  ;;  %v5331_v12 = vpop.f32.mrb[30].mxu1 }
 0x1b8   : > { %v1513_v39 = vrot.slane %v5331_v12, 1  ;;  %v1108_v38 = vpop.f32.mrb[31].mxu0  ;;  %v1337_v5 = vpop.f32.mrb[31].mxu1 }
 0x1b9   : > { %v1509_v8 = vsel %vm1461_vm7, %v1507_v26, %v1508_v56  ;;  %v1510_v25 = vrot.slane %v1337_v5, 1 }
 0x1ba   : > { %v6283_v28 = vadd.f32 %v5277_v2, %v1509_v8  ;;  %v1514_v34 = vsel %vm1461_vm7, %v1512_v14, %v1513_v39 }
 0x1bb   : > { %v6286_v42 = vadd.f32 %v5280_v19, %v1514_v34  ;;  %v1511_v7 = vsel %vm1461_vm7, %v1508_v56, %v1510_v25 }
 0x1bc   : > { %v6289_v20 = vadd.f32 %v1511_v7, %v1105_v15 }
 0x1c3   : > { %v5284_v22 = vpop.f32.mrb[32].mxu0  ;;  %v5334_v44 = vpop.f32.mrb[32].mxu1 }
 0x1c4   : > { %v1120_v31 = vpop.f32.mrb[33].mxu0  ;;  %v1350_v46 = vpop.f32.mrb[33].mxu1  ;;  %v1518_v57 = vrot.slane %v5334_v44, 1 }
 0x1c5   : > { %v1515_v49 = vrot.slane %v1350_v46, 1  ;;  %v5285_v51 = vpop.f32.mrb[34].mxu0  ;;  %v5335_v54 = vpop.f32.mrb[34].mxu1 }
 0x1c6   : > { %v1520_v33 = vrot.slane %v5335_v54, 1  ;;  %v1122_v29 = vpop.f32.mrb[35].mxu0  ;;  %v1353_v41 = vpop.f32.mrb[35].mxu1 }
 0x1c7   : > { %v1516_v45 = vsel %vm1461_vm7, %v1513_v39, %v1515_v49  ;;  %v1517_v52 = vrot.slane %v1353_v41, 1 }
 0x1c8   : > { %v6292_v60 = vadd.f32 %v5281_v48, %v1516_v45  ;;  %v1521_v0 = vsel %vm1461_vm7, %v1518_v57, %v1520_v33 }
 0x1c9   : > { %v6295_v9 = vadd.f32 %v5284_v22, %v1521_v0  ;;  %v1519_v59 = vsel %vm1461_vm7, %v1517_v52, %v1518_v57 }
 0x1ca   : > { %v6298_v2 = vadd.f32 %v1519_v59, %v1122_v29 }
 0x1cd   : > { %v5288_v4 = vpop.f32.mrb[36].mxu0  ;;  %v5338_v16 = vpop.f32.mrb[36].mxu1 }
 0x1ce   : > { %v1134_v18 = vpop.f32.mrb[37].mxu0  ;;  %v1366_v1 = vpop.f32.mrb[37].mxu1  ;;  %v1525_v19 = vrot.slane %v5338_v16, 1 }
 0x1cf   : > { %v5289_v21 = vpop.f32.mrb[38].mxu0  ;;  %v5339_v11 = vpop.f32.mrb[38].mxu1  ;;  %v1522_v6 = vrot.slane %v1366_v1, 1 }
 0x1d0   : > { %v1137_v23 = vpop.f32.mrb[39].mxu0  ;;  %v1369_v24 = vpop.f32.mrb[39].mxu1  ;;  %v1527_v5 = vrot.slane %v5339_v11, 1 }
 0x1d1   : > { %v1523_v15 = vrot.slane %v1369_v24, 1 }
 0x1d3   : > { %v1524_v37 = vsel %vm1461_vm7, %v1522_v6, %v1523_v15  ;;  %v1526_v26 = vsel %vm1461_vm7, %v1523_v15, %v1525_v19 }
 0x1d4   : > { %v6302_v56 = vadd.f32 %v1524_v37, %v1134_v18  ;;  %v6304_v48 = vadd.f32 %v1526_v26, %v1137_v23 }
 0x1d5   : > { %v5292_v12 = vpop.f32.mrb[40].mxu0  ;;  %v5342_v14 = vpop.f32.mrb[40].mxu1 }
 0x1d6   : > { %v1149_v39 = vpop.f32.mrb[41].mxu0  ;;  %v1382_v38 = vpop.f32.mrb[41].mxu1  ;;  %v1532_v7 = vrot.slane %v5342_v14, 1 }
 0x1d7   : > { %v1528_v8 = vrot.slane %v1382_v38, 1  ;;  %v5293_v25 = vpop.f32.mrb[42].mxu0  ;;  %v5343_v34 = vpop.f32.mrb[42].mxu1 }
 0x1d8   : > { %v1533_v22 = vrot.slane %v5343_v34, 1  ;;  %v1152_v44 = vpop.f32.mrb[43].mxu0  ;;  %v1385_v31 = vpop.f32.mrb[43].mxu1 }
 0x1d9   : > { %v1529_v46 = vsel %vm1461_vm7, %v1527_v5, %v1528_v8  ;;  %v1530_v49 = vrot.slane %v1385_v31, 1 }
 0x1da   : > { %v6307_v51 = vadd.f32 %v5289_v21, %v1529_v46  ;;  %v1534_v54 = vsel %vm1461_vm7, %v1532_v7, %v1533_v22 }
 0x1db   : > { %v6310_v57 = vadd.f32 %v5292_v12, %v1534_v54  ;;  %v1531_v33 = vsel %vm1461_vm7, %v1528_v8, %v1530_v49 }
 0x1dc   : > { %v6313_v29 = vadd.f32 %v1531_v33, %v1149_v39 }
 0x1df   : > { %v5296_v41 = vpop.f32.mrb[44].mxu0  ;;  %v5346_v45 = vpop.f32.mrb[44].mxu1 }
 0x1e0   : > { %v1164_v52 = vpop.f32.mrb[45].mxu0  ;;  %v1398_v0 = vpop.f32.mrb[45].mxu1  ;;  %v1538_v18 = vrot.slane %v5346_v45, 1 }
 0x1e1   : > { %v1535_v59 = vrot.slane %v1398_v0, 1  ;;  %v5297_v4 = vpop.f32.mrb[46].mxu0  ;;  %v5347_v16 = vpop.f32.mrb[46].mxu1 }
 0x1e2   : > { %v1540_v1 = vrot.slane %v5347_v16, 1  ;;  %v1166_v11 = vpop.f32.mrb[47].mxu0  ;;  %v1401_v21 = vpop.f32.mrb[47].mxu1 }
 0x1e3   : > { %v1536_v23 = vsel %vm1461_vm7, %v1533_v22, %v1535_v59  ;;  %v1537_v24 = vrot.slane %v1401_v21, 1 }
 0x1e4   : > { %v6316_v19 = vadd.f32 %v5293_v25, %v1536_v23  ;;  %v1541_v6 = vsel %vm1461_vm7, %v1538_v18, %v1540_v1 }
 0x1e5   : > { %v6319_v15 = vadd.f32 %v5296_v41, %v1541_v6  ;;  %v1539_v37 = vsel %vm1461_vm7, %v1537_v24, %v1538_v18 }
 0x1e6   : > { %v6322_v26 = vadd.f32 %v1539_v37, %v1166_v11 }
 0x1e7   : > { %v5352_v12 = vpop.f32.mrb[48].mxu0 }
 0x1e8   : > { %v1651_v14 = vpop.f32.mrb[49].mxu0  ;;  %v1893_v5 = vrot.slane %v5352_v12, 2 }
 0x1e9   : > { %v5353_v39 = vpop.f32.mrb[50].mxu0  ;;  %v1890_v8 = vrot.slane %v1651_v14, 2 }
 0x1ea   : > { %v1654_v38 = vpop.f32.mrb[51].mxu0  ;;  %v1895_v45 = vrot.slane %v5353_v39, 2 }
 0x1eb   : > { %v1891_v34 = vrot.slane %v1654_v38, 2 }
 0x1ed   : > { %v1892_v7 = vsel %vm964_vm3, %v1890_v8, %v1891_v34  ;;  %v1894_v25 = vsel %vm964_vm3, %v1891_v34, %v1893_v5 }
 0x1ee   : > { %v6327_v22 = vadd.f32 %v1892_v7, %v6230_v17  ;;  %v6330_v44 = vadd.f32 %v1894_v25, %v6232_v55 }
 0x1ef   : > { %v5356_v31 = vpop.f32.mrb[52].mxu0 }
 0x1f0   : > { %v2034_v46 = vsel %vm637_vm4, %v6327_v22, 0.0  ;;  %v2035_v49 = vsel %vm637_vm4, %v6330_v44, 0.0  ;;  %v2209_v54 = vmul.f32 %v6327_v22, %v6327_v22  ;;  %v2210_v33 = vmul.f32 %v6330_v44, %v6330_v44  ;;  %v1667_v41 = vpop.f32.mrb[53].mxu0 }
 0x1f1   : > { %v2036_v17 = vadd.f32 %v2035_v49, %v2034_v46  ;;  %v1896_v52 = vrot.slane %v1667_v41, 2  ;;  %v5357_v0 = vpop.f32.mrb[54].mxu0  ;;  %v1900_v4 = vrot.slane %v5356_v31, 2 }
 0x1f2   : > { %v2241_v55 = vsel %vm637_vm4, %v2209_v54, 0.0  ;;  %v2242_v59 = vsel %vm637_vm4, %v2210_v33, 0.0  ;;  %v1901_v16 = vrot.slane %v5357_v0, 2  ;;  %v1670_v18 = vpop.f32.mrb[55].mxu0 }
 0x1f3   : > { %v2037_v1 = vrot.slane %v2036_v17, 4  ;;  %v2243_v11 = vadd.f32 %v2242_v59, %v2241_v55  ;;  %v1897_v21 = vsel %vm964_vm3, %v1895_v45, %v1896_v52  ;;  %v1898_v23 = vrot.slane %v1670_v18, 2 }
 0x1f4   : > { %v6344_v24 = vadd.f32 %v1897_v21, %v6235_v27  ;;  %v1902_v6 = vsel %vm964_vm3, %v1900_v4, %v1901_v16 }
 0x1f5   : > { %v2038_v37 = vadd.f32 %v2037_v1, %v2036_v17  ;;  %v2244_v12 = vrot.slane %v2243_v11, 4  ;;  %v6348_v14 = vadd.f32 %v1902_v6, %v6238_v30  ;;  %v1899_v39 = vsel %vm964_vm3, %v1896_v52, %v1898_v23 }
 0x1f6   : > { %v2211_v38 = vmul.f32 %v6344_v24, %v6344_v24  ;;  %v6354_v5 = vadd.f32 %v1899_v39, %v6241_v47  ;;  %v2043_v27 = vsel %vm637_vm4, %v6344_v24, 0.0 }
 0x1f7   : > { %v2039_v8 = vrot.slane %v2038_v37, 2  ;;  %v2245_v34 = vadd.f32 %v2244_v12, %v2243_v11  ;;  %v5360_v7 = vpop.f32.mrb[56].mxu0  ;;  %v2213_v25 = vmul.f32 %v6348_v14, %v6348_v14 }
 0x1f8   : > { %v2044_v30 = vsel %vm637_vm4, %v6354_v5, 0.0  ;;  %v2212_v31 = vmul.f32 %v6354_v5, %v6354_v5  ;;  %v1683_v46 = vpop.f32.mrb[57].mxu0  ;;  %v2250_v47 = vsel %vm637_vm4, %v2211_v38, 0.0  ;;  %v1906_v17 = vrot.slane %v5360_v7, 2 }
 0x1f9   : > { %v2040_v49 = vadd.f32 %v2039_v8, %v2038_v37  ;;  %v2246_v54 = vrot.slane %v2245_v34, 2  ;;  %v2045_v33 = vadd.f32 %v2044_v30, %v2043_v27  ;;  %v5361_v41 = vpop.f32.mrb[58].mxu0  ;;  %v1903_v52 = vrot.slane %v1683_v46, 2 }
 0x1fa   : > { %v2251_v45 = vsel %vm637_vm4, %v2212_v31, 0.0  ;;  %v1908_v0 = vrot.slane %v5361_v41, 2  ;;  %v1686_v55 = vpop.f32.mrb[59].mxu0  ;;  %v2052_v38 = vsel %vm637_vm4, %v6348_v14, 0.0 }
 0x1fb   : > { %v2041_v59 = vrot.slane %v2040_v49, 1  ;;  %v2247_v4 = vadd.f32 %v2246_v54, %v2245_v34  ;;  %v2046_v18 = vrot.slane %v2045_v33, 4  ;;  %v2252_v1 = vadd.f32 %v2251_v45, %v2250_v47 }
 0x1fc   : > { %v1904_v11 = vsel %vm964_vm3, %v1901_v16, %v1903_v52  ;;  %v1909_v21 = vsel %vm964_vm3, %v1906_v17, %v1908_v0  ;;  %v1905_v23 = vrot.slane %v1686_v55, 2  ;;  %v2259_v16 = vsel %vm637_vm4, %v2213_v25, 0.0 }
 0x1fd   : > { %v2042_v6 = vadd.f32 %v2041_v59, %v2040_v49  ;;  %v2248_v37 = vrot.slane %v2247_v4, 1  ;;  %v2047_v12 = vadd.f32 %v2046_v18, %v2045_v33  ;;  %v2253_v39 = vrot.slane %v2252_v1, 4 }
 0x1fe   : > { %v6371_v8 = vadd.f32 %v1904_v11, %v6244_v63  ;;  %v6374_v7 = vadd.f32 %v1909_v21, %v6247_v36  ;;  %v1907_v34 = vsel %vm964_vm3, %v1905_v23, %v1906_v17 }
 0x1ff   : > { %v2249_v27 = vadd.f32 %v2248_v37, %v2247_v4  ;;  %v2048_v30 = vrot.slane %v2047_v12, 2  ;;  %v2254_v31 = vadd.f32 %v2253_v39, %v2252_v1  ;;  %v5364_v46 = vpop.f32.mrb[60].mxu0  ;;  %v2178_v49 = vsel %vm637_vm4, %v2042_v6, 0.0 }
 0x200   : > { %8326 = vst [vmem:[#allocation3_spill] sm:$0xff] %v6374_v7  ;;  %v2053_v54 = vsel %vm637_vm4, %v6371_v8, 0.0  ;;  %v2214_v63 = vmul.f32 %v6371_v8, %v6371_v8  ;;  %v2216_v36 = vmul.f32 %v6374_v7, %v6374_v7  ;;  %v1699_v47 = vpop.f32.mrb[61].mxu0  ;;  %v2062_v25 = vsel %vm637_vm4, %v6374_v7, 0.0 }
 0x201   : > { %v2049_v33 = vadd.f32 %v2048_v30, %v2047_v12  ;;  %v2255_v41 = vrot.slane %v2254_v31, 2  ;;  %v2054_v45 = vadd.f32 %v2053_v54, %v2052_v38  ;;  %v6387_v17 = vpop.f32.mrb[62].mxu0  ;;  %v2385_v52 = vsel %vm637_vm4, %v2249_v27, 0.0 }
 0x202   : > { %v2260_v0 = vsel %vm637_vm4, %v2214_v63, 0.0  ;;  %v2269_v55 = vsel %vm637_vm4, %v2216_v36, 0.0  ;;  %v6393_v59 = vadd.f32 %v1907_v34, %v6250_v58  ;;  %v1702_v4 = vpop.f32.mrb[63].mxu0  ;;  %v1913_v37 = vrot.slane %v5364_v46, 2 }
 0x203   : > { %v2050_v18 = vrot.slane %v2049_v33, 1  ;;  %v2256_v1 = vadd.f32 %v2255_v41, %v2254_v31  ;;  %v2055_v11 = vrot.slane %v2054_v45, 4  ;;  %v2261_v21 = vadd.f32 %v2260_v0, %v2259_v16 }
 0x204   : > { %v2061_v23 = vsel %vm637_vm4, %v6393_v59, 0.0  ;;  %v2215_v6 = vmul.f32 %v6393_v59, %v6393_v59  ;;  %v1910_v12 = vrot.slane %v1699_v47, 2  ;;  %v1915_v34 = vrot.slane %v6387_v17, 2 }
 0x205   : > { %v2051_v39 = vadd.f32 %v2050_v18, %v2049_v33  ;;  %v2257_v38 = vrot.slane %v2256_v1, 1  ;;  %v2056_v27 = vadd.f32 %v2055_v11, %v2054_v45  ;;  %v2262_v30 = vrot.slane %v2261_v21, 4 }
 0x206   : > { %v2063_v54 = vadd.f32 %v2062_v25, %v2061_v23  ;;  %v2268_v58 = vsel %vm637_vm4, %v2215_v6, 0.0  ;;  %v1911_v31 = vrot.slane %v1702_v4, 2 }
 0x207   : > { %v2179_v16 = vsel %vm637_vm4, %v2051_v39, 0.0  ;;  %v2258_v63 = vadd.f32 %v2257_v38, %v2256_v1  ;;  %v2057_v36 = vrot.slane %v2056_v27, 2  ;;  %v2263_v41 = vadd.f32 %v2262_v30, %v2261_v21  ;;  %v5368_v0 = vpop.f32.mrb[64].mxu0 }
 0x208   : > { %v2180_v13 = vadd.f32 %v2179_v16, %v2178_v49  ;;  %v2064_v7 = vrot.slane %v2063_v54, 4  ;;  %v2270_v46 = vadd.f32 %v2269_v55, %v2268_v58  ;;  %v1912_v47 = vsel %vm964_vm3, %v1910_v12, %v1911_v31  ;;  %v6403_v33 = vpop.f32.mrb[65].mxu0 }
 0x209   : > { %v2386_v45 = vsel %vm637_vm4, %v2258_v63, 0.0  ;;  %v2058_v25 = vadd.f32 %v2057_v36, %v2056_v27  ;;  %v2264_v18 = vrot.slane %v2263_v41, 2  ;;  %v1914_v17 = vsel %vm964_vm3, %v1911_v31, %v1913_v37  ;;  %v6407_v4 = vpop.f32.mrb[66].mxu0 }
 0x20a   : > { %v2387_v11 = vadd.f32 %v2386_v45, %v2385_v52  ;;  %v2065_v1 = vadd.f32 %v2064_v7, %v2063_v54  ;;  %v2271_v23 = vrot.slane %v2270_v46, 4  ;;  %v6410_v21 = vadd.f32 %v1912_v47, %v6254_v61  ;;  %v1718_v49 = vpop.f32.mrb[67].mxu0 }
 0x20b   : > { %v2059_v55 = vrot.slane %v2058_v25, 1  ;;  %v2265_v6 = vadd.f32 %v2264_v18, %v2263_v41  ;;  %v6413_v12 = vadd.f32 %v1914_v17, %v6256_v3  ;;  %v1920_v39 = vrot.slane %v5368_v0, 2 }
 0x20c   : > { %v2066_v38 = vrot.slane %v2065_v1, 2  ;;  %v2272_v27 = vadd.f32 %v2271_v23, %v2270_v46  ;;  %v2070_v37 = vsel %vm637_vm4, %v6410_v21, 0.0  ;;  %v2217_v52 = vmul.f32 %v6410_v21, %v6410_v21 }
 0x20d   : > { %v2060_v7 = vadd.f32 %v2059_v55, %v2058_v25  ;;  %v2266_v30 = vrot.slane %v2265_v6, 1  ;;  %v2071_v61 = vsel %vm637_vm4, %v6413_v12, 0.0  ;;  %v2218_v54 = vmul.f32 %v6413_v12, %v6413_v12 }
 0x20e   : > { %v2067_v58 = vadd.f32 %v2066_v38, %v2065_v1  ;;  %v2273_v3 = vrot.slane %v2272_v27, 2  ;;  %v2072_v31 = vadd.f32 %v2071_v61, %v2070_v37  ;;  %v2277_v16 = vsel %vm637_vm4, %v2217_v52, 0.0 }
 0x20f   : > { %v2181_v63 = vsel %vm637_vm4, %v2060_v7, 0.0  ;;  %v2267_v36 = vadd.f32 %v2266_v30, %v2265_v6  ;;  %v2278_v41 = vsel %vm637_vm4, %v2218_v54, 0.0  ;;  %v1916_v0 = vrot.slane %v6403_v33, 2  ;;  %v6427_v46 = vpop.f32.mrb[68].mxu0 }
 0x210   : > { %v2182_v47 = vadd.f32 %v2181_v63, %v2180_v13  ;;  %v2068_v45 = vrot.slane %v2067_v58, 1  ;;  %v2274_v25 = vadd.f32 %v2273_v3, %v2272_v27  ;;  %v2073_v18 = vrot.slane %v2072_v31, 4  ;;  %v1731_v17 = vpop.f32.mrb[69].mxu0 }
 0x211   : > { %v2388_v1 = vsel %vm637_vm4, %v2267_v36, 0.0  ;;  %v2279_v23 = vadd.f32 %v2278_v41, %v2277_v16  ;;  %v1917_v55 = vsel %vm964_vm3, %v1915_v34, %v1916_v0  ;;  %v1921_v38 = vrot.slane %v6407_v4, 2  ;;  %v5373_v37 = vpop.f32.mrb[70].mxu0 }
 0x212   : > { %v2389_v6 = vadd.f32 %v2388_v1, %v2387_v11  ;;  %v2069_v52 = vadd.f32 %v2068_v45, %v2067_v58  ;;  %v2275_v7 = vrot.slane %v2274_v25, 1  ;;  %v2074_v30 = vadd.f32 %v2073_v18, %v2072_v31  ;;  %v1734_v33 = vpop.f32.mrb[71].mxu0 }
 0x213   : > { %v2280_v61 = vrot.slane %v2279_v23, 4  ;;  %v6433_v13 = vadd.f32 %v1917_v55, %v6259_v32  ;;  %v1922_v27 = vsel %vm964_vm3, %v1920_v39, %v1921_v38  ;;  %v1918_v54 = vrot.slane %v1718_v49, 2 }
 0x214   : > { %v2183_v3 = vsel %vm637_vm4, %v2069_v52, 0.0  ;;  %v2276_v16 = vadd.f32 %v2275_v7, %v2274_v25  ;;  %v2075_v63 = vrot.slane %v2074_v30, 2  ;;  %v6438_v34 = vadd.f32 %v1922_v27, %v6262_v35 }
 0x215   : > { %v2184_v4 = vadd.f32 %v2183_v3, %v2182_v47  ;;  %v2281_v11 = vadd.f32 %v2280_v61, %v2279_v23  ;;  %v2219_v58 = vmul.f32 %v6433_v13, %v6433_v13  ;;  %v2079_v32 = vsel %vm637_vm4, %v6433_v13, 0.0 }
 0x216   : > { %v2390_v31 = vsel %vm637_vm4, %v2276_v16, 0.0  ;;  %v2076_v36 = vadd.f32 %v2075_v63, %v2074_v30  ;;  %v2221_v49 = vmul.f32 %v6438_v34, %v6438_v34  ;;  %v2088_v35 = vsel %vm637_vm4, %v6438_v34, 0.0 }
 0x217   : > { %v2391_v39 = vadd.f32 %v2390_v31, %v2389_v6  ;;  %v2282_v41 = vrot.slane %v2281_v11, 2  ;;  %v1919_v47 = vsel %vm964_vm3, %v1916_v0, %v1918_v54  ;;  %v5376_v45 = vpop.f32.mrb[72].mxu0  ;;  %v2286_v18 = vsel %vm637_vm4, %v2219_v58, 0.0 }
 0x218   : > { %v2077_v25 = vrot.slane %v2076_v36, 1  ;;  %v2295_v1 = vsel %vm637_vm4, %v2221_v49, 0.0  ;;  %v6453_v23 = vadd.f32 %v1919_v47, %v6265_v43  ;;  %v1747_v55 = vpop.f32.mrb[73].mxu0  ;;  %v1926_v7 = vrot.slane %v6427_v46, 2 }
 0x219   : > { %v2283_v52 = vadd.f32 %v2282_v41, %v2281_v11  ;;  %v1923_v6 = vrot.slane %v1731_v17, 2  ;;  %v1928_v30 = vrot.slane %v5373_v37, 2  ;;  %v6456_v61 = vpop.f32.mrb[74].mxu0  ;;  %v1925_v3 = vrot.slane %v1734_v33, 2 }
 0x21a   : > { %v2078_v27 = vadd.f32 %v2077_v25, %v2076_v36  ;;  %v2080_v0 = vsel %vm637_vm4, %v6453_v23, 0.0  ;;  %v2220_v54 = vmul.f32 %v6453_v23, %v6453_v23  ;;  %v1750_v16 = vpop.f32.mrb[75].mxu0  ;;  %v1933_v41 = vrot.slane %v5376_v45, 2 }
 0x21b   : > { %v2284_v63 = vrot.slane %v2283_v52, 1  ;;  %v2081_v43 = vadd.f32 %v2080_v0, %v2079_v32  ;;  %v1924_v58 = vsel %vm964_vm3, %v1921_v38, %v1923_v6  ;;  %v1929_v11 = vsel %vm964_vm3, %v1926_v7, %v1928_v30 }
 0x21c   : > { %v2185_v46 = vsel %vm637_vm4, %v2078_v27, 0.0  ;;  %v2287_v17 = vsel %vm637_vm4, %v2220_v54, 0.0  ;;  %v6467_v37 = vadd.f32 %v1924_v58, %v6268_v50  ;;  %v6470_v31 = vadd.f32 %v1929_v11, %v6271_v53 }
 0x21d   : > { %v2285_v36 = vadd.f32 %v2284_v63, %v2283_v52  ;;  %v2082_v49 = vrot.slane %v2081_v43, 4  ;;  %v2288_v33 = vadd.f32 %v2287_v17, %v2286_v18  ;;  %v6472_v47 = vadd.f32 %v2185_v46, %v2184_v4 }
 0x21e   : > { %8327 = vst [vmem:[#allocation4_spill] sm:$0xff] %v6470_v31  ;;  %v2089_v38 = vsel %vm637_vm4, %v6467_v37, 0.0  ;;  %v2222_v32 = vmul.f32 %v6467_v37, %v6467_v37  ;;  %v2224_v25 = vmul.f32 %v6470_v31, %v6470_v31  ;;  %v2098_v45 = vsel %vm637_vm4, %v6470_v31, 0.0 }
 0x21f   : > { %v2392_v50 = vsel %vm637_vm4, %v2285_v36, 0.0  ;;  %v2083_v6 = vadd.f32 %v2082_v49, %v2081_v43  ;;  %v2289_v53 = vrot.slane %v2288_v33, 4  ;;  %v2090_v30 = vadd.f32 %v2089_v38, %v2088_v35  ;;  %v6481_v52 = vpop.f32.mrb[76].mxu0 }
 0x220   : > { %v2393_v18 = vadd.f32 %v2392_v50, %v2391_v39  ;;  %v2296_v4 = vsel %vm637_vm4, %v2222_v32, 0.0  ;;  %v1927_v27 = vsel %vm964_vm3, %v1925_v3, %v1926_v7  ;;  %v6487_v0 = vpop.f32.mrb[77].mxu0  ;;  %v2305_v35 = vsel %vm637_vm4, %v2224_v25, 0.0 }
 0x221   : > { %v2084_v54 = vrot.slane %v2083_v6, 2  ;;  %v2290_v63 = vadd.f32 %v2289_v53, %v2288_v33  ;;  %v2091_v58 = vrot.slane %v2090_v30, 4  ;;  %v2297_v11 = vadd.f32 %v2296_v4, %v2295_v1  ;;  %v6489_v46 = vpop.f32.mrb[78].mxu0 }
 0x222   : > { %v6493_v43 = vadd.f32 %v1927_v27, %v6274_v62  ;;  %v1930_v39 = vrot.slane %v1747_v55, 2  ;;  %v1931_v17 = vrot.slane %v1750_v16, 2  ;;  %v6495_v36 = vpop.f32.mrb[79].mxu0 }
 0x223   : > { %v2085_v49 = vadd.f32 %v2084_v54, %v2083_v6  ;;  %v2291_v38 = vrot.slane %v2290_v63, 2  ;;  %v2092_v7 = vadd.f32 %v2091_v58, %v2090_v30  ;;  %v2298_v3 = vrot.slane %v2297_v11, 4 }
 0x224   : > { %v2097_v33 = vsel %vm637_vm4, %v6493_v43, 0.0  ;;  %v2223_v1 = vmul.f32 %v6493_v43, %v6493_v43  ;;  %v1932_v32 = vsel %vm964_vm3, %v1930_v39, %v1931_v17  ;;  %v1934_v25 = vsel %vm964_vm3, %v1931_v17, %v1933_v41 }
 0x225   : > { %v2086_v62 = vrot.slane %v2085_v49, 1  ;;  %v2292_v50 = vadd.f32 %v2291_v38, %v2290_v63  ;;  %v2093_v55 = vrot.slane %v2092_v7, 2  ;;  %v2299_v16 = vadd.f32 %v2298_v3, %v2297_v11 }
 0x226   : > { %v2099_v53 = vadd.f32 %v2098_v45, %v2097_v33  ;;  %v2304_v6 = vsel %vm637_vm4, %v2223_v1, 0.0  ;;  %v6505_v30 = vadd.f32 %v1932_v32, %v6278_v40  ;;  %v6508_v4 = vadd.f32 %v1934_v25, %v6280_v10 }
 0x227   : > { %v2087_v27 = vadd.f32 %v2086_v62, %v2085_v49  ;;  %v2293_v54 = vrot.slane %v2292_v50, 1  ;;  %v2094_v58 = vadd.f32 %v2093_v55, %v2092_v7  ;;  %v2300_v31 = vrot.slane %v2299_v16, 2  ;;  %v6510_v39 = vpop.f32.mrb[80].mxu0 }
 0x228   : > { %8328 = vst [vmem:[#allocation5_spill] sm:$0xff] %v6505_v30  ;;  %v2100_v41 = vrot.slane %v2099_v53, 4  ;;  %v2306_v17 = vadd.f32 %v2305_v35, %v2304_v6  ;;  %v2106_v63 = vsel %vm637_vm4, %v6505_v30, 0.0  ;;  %v2107_v45 = vsel %vm637_vm4, %v6508_v4, 0.0  ;;  %v6516_v11 = vpop.f32.mrb[81].mxu0 }
 0x229   : > { %v2187_v40 = vsel %vm637_vm4, %v2087_v27, 0.0  ;;  %v2294_v10 = vadd.f32 %v2293_v54, %v2292_v50  ;;  %v2095_v38 = vrot.slane %v2094_v58, 1  ;;  %v2301_v49 = vadd.f32 %v2300_v31, %v2299_v16  ;;  %v6519_v3 = vpop.f32.mrb[82].mxu0 }
 0x22a   : > { %v2101_v7 = vadd.f32 %v2100_v41, %v2099_v53  ;;  %v2307_v33 = vrot.slane %v2306_v17, 4  ;;  %v1935_v1 = vrot.slane %v6456_v61, 2  ;;  %v2108_v35 = vadd.f32 %v2107_v45, %v2106_v63  ;;  %v6522_v32 = vpop.f32.mrb[83].mxu0 }
 0x22b   : > { %v2394_v25 = vsel %vm637_vm4, %v2294_v10, 0.0  ;;  %v2096_v62 = vadd.f32 %v2095_v38, %v2094_v58  ;;  %v2302_v55 = vrot.slane %v2301_v49, 1  ;;  %v2225_v6 = vmul.f32 %v6505_v30, %v6505_v30 }
 0x22c   : > { %v2188_v50 = vadd.f32 %v2187_v40, %v6472_v47  ;;  %v2102_v27 = vrot.slane %v2101_v7, 2  ;;  %v2308_v31 = vadd.f32 %v2307_v33, %v2306_v17  ;;  %v2109_v16 = vrot.slane %v2108_v35, 4 }
 0x22d   : > { %v2395_v54 = vadd.f32 %v2394_v25, %v2393_v18  ;;  %v2189_v53 = vsel %vm637_vm4, %v2096_v62, 0.0  ;;  %v2303_v41 = vadd.f32 %v2302_v55, %v2301_v49  ;;  %v2226_v61 = vmul.f32 %v6508_v4, %v6508_v4 }
 0x22e   : > { %v2103_v63 = vadd.f32 %v2102_v27, %v2101_v7  ;;  %v2309_v45 = vrot.slane %v2308_v31, 2  ;;  %v2110_v10 = vadd.f32 %v2109_v16, %v2108_v35  ;;  %v2313_v58 = vsel %vm637_vm4, %v2225_v6, 0.0 }
 0x22f   : > { %v2190_v38 = vadd.f32 %v2189_v53, %v2188_v50  ;;  %v2396_v30 = vsel %vm637_vm4, %v2303_v41, 0.0  ;;  %v2314_v47 = vsel %vm637_vm4, %v2226_v61, 0.0  ;;  %v1936_v17 = vrot.slane %v6487_v0, 2  ;;  %v6535_v40 = vpop.f32.mrb[84].mxu0 }
 0x230   : > { %v2104_v18 = vrot.slane %v2103_v63, 1  ;;  %v2310_v33 = vadd.f32 %v2309_v45, %v2308_v31  ;;  %v2111_v49 = vrot.slane %v2110_v10, 2  ;;  %v1940_v25 = vrot.slane %v6481_v52, 2  ;;  %v6538_v62 = vpop.f32.mrb[85].mxu0 }
 0x231   : > { %v2315_v7 = vadd.f32 %v2314_v47, %v2313_v58  ;;  %v1937_v35 = vsel %vm964_vm3, %v1935_v1, %v1936_v17  ;;  %v1941_v55 = vrot.slane %v6489_v46, 2  ;;  %v1938_v6 = vrot.slane %v6495_v36, 2  ;;  %v6543_v50 = vpop.f32.mrb[86].mxu0 }
 0x232   : > { %v2105_v27 = vadd.f32 %v2104_v18, %v2103_v63  ;;  %v2311_v0 = vrot.slane %v2310_v33, 1  ;;  %v2112_v16 = vadd.f32 %v2111_v49, %v2110_v10  ;;  %v6546_v53 = vadd.f32 %v1937_v35, %v6283_v28  ;;  %v6548_v31 = vpop.f32.mrb[87].mxu0 }
 0x233   : > { %v2397_v52 = vadd.f32 %v2396_v30, %v2395_v54  ;;  %v2316_v41 = vrot.slane %v2315_v7, 4  ;;  %v1942_v61 = vsel %vm964_vm3, %v1940_v25, %v1941_v55  ;;  %v1939_v1 = vsel %vm964_vm3, %v1936_v17, %v1938_v6 }
 0x234   : > { %8329 = vst [vmem:[#allocation6_spill] sm:$0xff] %v6546_v53  ;;  %v2191_v46 = vsel %vm637_vm4, %v2105_v27, 0.0  ;;  %v2312_v45 = vadd.f32 %v2311_v0, %v2310_v33  ;;  %v2113_v36 = vrot.slane %v2112_v16, 1  ;;  %v1946_v58 = vrot.slane %v6510_v39, 2 }
 0x235   : > { %v2317_v63 = vadd.f32 %v2316_v41, %v2315_v7  ;;  %v2115_v10 = vsel %vm637_vm4, %v6546_v53, 0.0  ;;  %v2227_v28 = vmul.f32 %v6546_v53, %v6546_v53  ;;  %v6559_v30 = vadd.f32 %v1942_v61, %v6286_v42 }
 0x236   : > { %v2398_v54 = vsel %vm637_vm4, %v2312_v45, 0.0  ;;  %v2114_v47 = vadd.f32 %v2113_v36, %v2112_v16  ;;  %v6563_v17 = vadd.f32 %v1939_v1, %v6289_v20  ;;  %v1943_v18 = vrot.slane %v6516_v11, 2 }
 0x237   : > { %8330 = vst [vmem:[#allocation7_spill] sm:$0xff] %v6559_v30  ;;  %v2192_v33 = vadd.f32 %v2191_v46, %v2190_v38  ;;  %v2399_v39 = vadd.f32 %v2398_v54, %v2397_v52  ;;  %v2318_v49 = vrot.slane %v2317_v63, 2  ;;  %v2322_v25 = vsel %vm637_vm4, %v2227_v28, 0.0  ;;  %v6567_v7 = vpop.f32.mrb[88].mxu0 }
 0x238   : > { %8331 = vst [vmem:[#allocation8_spill] sm:$0xff] %v6563_v17  ;;  %v2193_v35 = vsel %vm637_vm4, %v2114_v47, 0.0  ;;  %v2229_v42 = vmul.f32 %v6559_v30, %v6559_v30  ;;  %v2116_v6 = vsel %vm637_vm4, %v6563_v17, 0.0  ;;  %v2228_v20 = vmul.f32 %v6563_v17, %v6563_v17  ;;  %v6576_v27 = vpop.f32.mrb[89].mxu0 }
 0x239   : > { %v2319_v11 = vadd.f32 %v2318_v49, %v2317_v63  ;;  %v2124_v38 = vsel %vm637_vm4, %v6559_v30, 0.0  ;;  %v2117_v0 = vadd.f32 %v2116_v6, %v2115_v10  ;;  %v1944_v16 = vsel %vm964_vm3, %v1941_v55, %v1943_v18  ;;  %v6581_v52 = vpop.f32.mrb[90].mxu0 }
 0x23a   : > { %v6583_v41 = vadd.f32 %v2193_v35, %v2192_v33  ;;  %v2323_v61 = vsel %vm637_vm4, %v2228_v20, 0.0  ;;  %v6587_v1 = vadd.f32 %v1944_v16, %v6292_v60  ;;  %v1948_v46 = vrot.slane %v6519_v3, 2  ;;  %v6590_v45 = vpop.f32.mrb[91].mxu0 }
 0x23b   : > { %v2320_v36 = vrot.slane %v2319_v11, 1  ;;  %v2118_v63 = vrot.slane %v2117_v0, 4  ;;  %v2324_v28 = vadd.f32 %v2323_v61, %v2322_v25  ;;  %v1945_v10 = vrot.slane %v6522_v32, 2 }
 0x23c   : > { %v2331_v55 = vsel %vm637_vm4, %v2229_v42, 0.0  ;;  %v2125_v54 = vsel %vm637_vm4, %v6587_v1, 0.0  ;;  %v2230_v47 = vmul.f32 %v6587_v1, %v6587_v1  ;;  %v1949_v60 = vsel %vm964_vm3, %v1946_v58, %v1948_v46 }
 0x23d   : > { %v2321_v18 = vadd.f32 %v2320_v36, %v2319_v11  ;;  %v2119_v33 = vadd.f32 %v2118_v63, %v2117_v0  ;;  %v2325_v3 = vrot.slane %v2324_v28, 4  ;;  %v2126_v49 = vadd.f32 %v2125_v54, %v2124_v38 }
 0x23e   : > { %v2332_v35 = vsel %vm637_vm4, %v2230_v47, 0.0  ;;  %v6601_v25 = vadd.f32 %v1949_v60, %v6295_v9  ;;  %v1947_v32 = vsel %vm964_vm3, %v1945_v10, %v1946_v58  ;;  %v1953_v42 = vrot.slane %v6535_v40, 2 }
 0x23f   : > { %v2400_v6 = vsel %vm637_vm4, %v2321_v18, 0.0  ;;  %v2120_v20 = vrot.slane %v2119_v33, 2  ;;  %v2326_v16 = vadd.f32 %v2325_v3, %v2324_v28  ;;  %v2127_v61 = vrot.slane %v2126_v49, 4  ;;  %v6606_v30 = vpop.f32.mrb[92].mxu0 }
 0x240   : > { %v2333_v11 = vadd.f32 %v2332_v35, %v2331_v55  ;;  %v2134_v38 = vsel %vm637_vm4, %v6601_v25, 0.0  ;;  %v2232_v0 = vmul.f32 %v6601_v25, %v6601_v25  ;;  %v1950_v9 = vrot.slane %v6538_v62, 2  ;;  %v6613_v46 = vpop.f32.mrb[93].mxu0 }
 0x241   : > { %v2121_v58 = vadd.f32 %v2120_v20, %v2119_v33  ;;  %v2327_v40 = vrot.slane %v2326_v16, 2  ;;  %v2128_v36 = vadd.f32 %v2127_v61, %v2126_v49  ;;  %v6616_v63 = vadd.f32 %v1947_v32, %v6298_v2  ;;  %v6618_v28 = vpop.f32.mrb[94].mxu0 }
 0x242   : > { %v2401_v10 = vadd.f32 %v2400_v6, %v2399_v39  ;;  %v2334_v55 = vrot.slane %v2333_v11, 4  ;;  %v2341_v54 = vsel %vm637_vm4, %v2232_v0, 0.0  ;;  %v1951_v47 = vrot.slane %v6548_v31, 2  ;;  %v6622_v60 = vpop.f32.mrb[95].mxu0 }
 0x243   : > { %v2122_v18 = vrot.slane %v2121_v58, 1  ;;  %v2328_v62 = vadd.f32 %v2327_v40, %v2326_v16  ;;  %v2129_v3 = vrot.slane %v2128_v36, 2  ;;  %v2133_v33 = vsel %vm637_vm4, %v6616_v63, 0.0 }
 0x244   : > { %v2335_v49 = vadd.f32 %v2334_v55, %v2333_v11  ;;  %v2135_v35 = vadd.f32 %v2134_v38, %v2133_v33  ;;  %v2231_v2 = vmul.f32 %v6616_v63, %v6616_v63  ;;  %v1952_v39 = vsel %vm964_vm3, %v1950_v9, %v1951_v47 }
 0x245   : > { %v2123_v32 = vadd.f32 %v2122_v18, %v2121_v58  ;;  %v2329_v6 = vrot.slane %v2328_v62, 1  ;;  %v2130_v20 = vadd.f32 %v2129_v3, %v2128_v36  ;;  %v1954_v31 = vsel %vm964_vm3, %v1951_v47, %v1953_v42 }
 0x246   : > { %v2336_v61 = vrot.slane %v2335_v49, 2  ;;  %v2136_v0 = vrot.slane %v2135_v35, 4  ;;  %v2340_v16 = vsel %vm637_vm4, %v2231_v2, 0.0  ;;  %v6632_v40 = vadd.f32 %v1952_v39, %v6302_v56 }
 0x247   : > { %v2195_v11 = vsel %vm637_vm4, %v2123_v32, 0.0  ;;  %v2330_v38 = vadd.f32 %v2329_v6, %v2328_v62  ;;  %v2131_v55 = vrot.slane %v2130_v20, 1  ;;  %v2342_v33 = vadd.f32 %v2341_v54, %v2340_v16 }
 0x248   : > { %v2337_v17 = vadd.f32 %v2336_v61, %v2335_v49  ;;  %v2137_v53 = vadd.f32 %v2136_v0, %v2135_v35  ;;  %v1955_v9 = vrot.slane %v6543_v50, 2  ;;  %v6637_v58 = vadd.f32 %v1954_v31, %v6304_v48 }
 0x249   : > { %v2402_v42 = vsel %vm637_vm4, %v2330_v38, 0.0  ;;  %v2132_v36 = vadd.f32 %v2131_v55, %v2130_v20  ;;  %v2343_v47 = vrot.slane %v2342_v33, 4  ;;  %v2142_v56 = vsel %vm637_vm4, %v6632_v40, 0.0 }
 0x24a   : > { %v2196_v18 = vadd.f32 %v2195_v11, %v6583_v41  ;;  %v2338_v3 = vrot.slane %v2337_v17, 1  ;;  %v2138_v62 = vrot.slane %v2137_v53, 2  ;;  %v2143_v54 = vsel %vm637_vm4, %v6637_v58, 0.0 }
 0x24b   : > { %v2197_v49 = vsel %vm637_vm4, %v2132_v36, 0.0  ;;  %v2344_v50 = vadd.f32 %v2343_v47, %v2342_v33  ;;  %v2144_v35 = vadd.f32 %v2143_v54, %v2142_v56  ;;  %v2233_v48 = vmul.f32 %v6632_v40, %v6632_v40 }
 0x24c   : > { %v2403_v2 = vadd.f32 %v2402_v42, %v2401_v10  ;;  %v2339_v39 = vadd.f32 %v2338_v3, %v2337_v17  ;;  %v2139_v32 = vadd.f32 %v2138_v62, %v2137_v53  ;;  %v2234_v6 = vmul.f32 %v6637_v58, %v6637_v58 }
 0x24d   : > { %v2198_v20 = vadd.f32 %v2197_v49, %v2196_v18  ;;  %v2345_v41 = vrot.slane %v2344_v50, 2  ;;  %v2145_v31 = vrot.slane %v2144_v35, 4  ;;  %v2349_v61 = vsel %vm637_vm4, %v2233_v48, 0.0 }
 0x24e   : > { %v2140_v0 = vrot.slane %v2139_v32, 1  ;;  %v2350_v16 = vsel %vm637_vm4, %v2234_v6, 0.0  ;;  %v1960_v11 = vrot.slane %v6567_v7, 2  ;;  %v1956_v38 = vrot.slane %v6576_v27, 2 }
 0x24f   : > { %v2404_v55 = vsel %vm637_vm4, %v2339_v39, 0.0  ;;  %v2346_v10 = vadd.f32 %v2345_v41, %v2344_v50  ;;  %v2146_v17 = vadd.f32 %v2145_v31, %v2144_v35  ;;  %v2351_v53 = vadd.f32 %v2350_v16, %v2349_v61 }
 0x250   : > { %v2141_v33 = vadd.f32 %v2140_v0, %v2139_v32  ;;  %v1957_v42 = vsel %vm964_vm3, %v1955_v9, %v1956_v38  ;;  %v1961_v36 = vrot.slane %v6581_v52, 2  ;;  %v1958_v47 = vrot.slane %v6590_v45, 2  ;;  %v5567_v52 = vld [vmem:[%s8306_s2] sm:$0x3f]  }
 0x251   : > { %v2347_v56 = vrot.slane %v2346_v10, 1  ;;  %v2147_v18 = vrot.slane %v2146_v17, 2  ;;  %v2352_v3 = vrot.slane %v2351_v53, 4  ;;  %v6659_v62 = vadd.f32 %v1957_v42, %v6307_v51  ;;  %5551 = vmatprep.subr.msk.bf16.mxu1 %vm964_vm3, %v5567_v52 }
 0x252   : > { %v2405_v7 = vadd.f32 %v2404_v55, %v2403_v2  ;;  %v2199_v27 = vsel %vm637_vm4, %v2141_v33, 0.0  ;;  %v1962_v54 = vsel %vm964_vm3, %v1960_v11, %v1961_v36  ;;  %v1959_v49 = vsel %vm964_vm3, %v1956_v38, %v1958_v47 }
 0x253   : > { %v2200_v50 = vadd.f32 %v2199_v27, %v2198_v20  ;;  %v2348_v35 = vadd.f32 %v2347_v56, %v2346_v10  ;;  %v2148_v9 = vadd.f32 %v2147_v18, %v2146_v17  ;;  %v2353_v48 = vadd.f32 %v2352_v3, %v2351_v53 }
 0x254   : > { %v2235_v45 = vmul.f32 %v6659_v62, %v6659_v62  ;;  %v6670_v51 = vadd.f32 %v1962_v54, %v6310_v57  ;;  %v6673_v2 = vadd.f32 %v1959_v49, %v6313_v29  ;;  %v1966_v39 = vrot.slane %v6606_v30, 2 }
 0x255   : > { %v2406_v32 = vsel %vm637_vm4, %v2348_v35, 0.0  ;;  %v2149_v6 = vrot.slane %v2148_v9, 1  ;;  %v2354_v20 = vrot.slane %v2353_v48, 2  ;;  %v1963_v41 = vrot.slane %v6613_v46, 2 }
 0x256   : > { %v2407_v31 = vadd.f32 %v2406_v32, %v2405_v7  ;;  %v2151_v61 = vsel %vm637_vm4, %v6659_v62, 0.0  ;;  %v2358_v57 = vsel %vm637_vm4, %v2235_v45, 0.0  ;;  %v2160_v29 = vsel %vm637_vm4, %v6670_v51, 0.0 }
 0x257   : > { %v2150_v0 = vadd.f32 %v2149_v6, %v2148_v9  ;;  %v2355_v16 = vadd.f32 %v2354_v20, %v2353_v48  ;;  %v2152_v30 = vsel %vm637_vm4, %v6673_v2, 0.0  ;;  %v2236_v11 = vmul.f32 %v6673_v2, %v6673_v2 }
 0x258   : > { %v2237_v46 = vmul.f32 %v6670_v51, %v6670_v51  ;;  %v2153_v38 = vadd.f32 %v2152_v30, %v2151_v61  ;;  %v1964_v55 = vsel %vm964_vm3, %v1961_v36, %v1963_v41  ;;  %v1968_v10 = vrot.slane %v6618_v28, 2 }
 0x259   : > { %v2201_v17 = vsel %vm637_vm4, %v2150_v0, 0.0  ;;  %v2356_v53 = vrot.slane %v2355_v16, 1  ;;  %v2359_v33 = vsel %vm637_vm4, %v2236_v11, 0.0  ;;  %v6695_v42 = vadd.f32 %v1964_v55, %v6316_v19 }
 0x25a   : > { %v2202_v47 = vadd.f32 %v2201_v17, %v2200_v50  ;;  %v2154_v56 = vrot.slane %v2153_v38, 4  ;;  %v2360_v18 = vadd.f32 %v2359_v33, %v2358_v57  ;;  %v1969_v3 = vsel %vm964_vm3, %v1966_v39, %v1968_v10 }
 0x25b   : > { %v2357_v7 = vadd.f32 %v2356_v53, %v2355_v16  ;;  %v2161_v27 = vsel %vm637_vm4, %v6695_v42, 0.0  ;;  %v2238_v28 = vmul.f32 %v6695_v42, %v6695_v42  ;;  %v6703_v36 = vadd.f32 %v1969_v3, %v6319_v15 }
 0x25c   : > { %v2155_v54 = vadd.f32 %v2154_v56, %v2153_v38  ;;  %v2361_v49 = vrot.slane %v2360_v18, 4  ;;  %v2162_v35 = vadd.f32 %v2161_v27, %v2160_v29  ;;  %v1965_v19 = vrot.slane %v6622_v60, 2 }
 0x25d   : > { %v2408_v50 = vsel %vm637_vm4, %v2357_v7, 0.0  ;;  %v2367_v9 = vsel %vm637_vm4, %v2237_v46, 0.0  ;;  %v2368_v48 = vsel %vm637_vm4, %v2238_v28, 0.0  ;;  %v2170_v45 = vsel %vm637_vm4, %v6703_v36, 0.0 }
 0x25e   : > { %v2409_v32 = vadd.f32 %v2408_v50, %v2407_v31  ;;  %v2156_v6 = vrot.slane %v2155_v54, 2  ;;  %v2362_v20 = vadd.f32 %v2361_v49, %v2360_v18  ;;  %v2163_v41 = vrot.slane %v2162_v35, 4 }
 0x25f   : > { %v2369_v15 = vadd.f32 %v2368_v48, %v2367_v9  ;;  %v2240_v61 = vmul.f32 %v6703_v36, %v6703_v36  ;;  %v1967_v57 = vsel %vm964_vm3, %v1965_v19, %v1966_v39  ;;  %v3272_v60 = vsel %vm964_vm3, %v5567_v52, 0 }
 0x260   : > { %v2157_v29 = vadd.f32 %v2156_v6, %v2155_v54  ;;  %v2363_v0 = vrot.slane %v2362_v20, 2  ;;  %v2164_v16 = vadd.f32 %v2163_v41, %v2162_v35  ;;  %v6716_v30 = vadd.f32 %v1967_v57, %v6322_v26  ;;  %5399 = vmatpush3.bf16.msra.mxu1 %v3272_v60 }
 0x261   : > { %v2370_v11 = vrot.slane %v2369_v15, 4  ;;  %v2377_v17 = vsel %vm637_vm4, %v2240_v61, 0.0 }
 0x262   : > { %v2158_v31 = vrot.slane %v2157_v29, 1  ;;  %v2364_v46 = vadd.f32 %v2363_v0, %v2362_v20  ;;  %v2165_v38 = vrot.slane %v2164_v16, 2  ;;  %v2169_v55 = vsel %vm637_vm4, %v6716_v30, 0.0 }
 0x263   : > { %v2371_v10 = vadd.f32 %v2370_v11, %v2369_v15  ;;  %v2171_v39 = vadd.f32 %v2170_v45, %v2169_v55  ;;  %v2239_v52 = vmul.f32 %v6716_v30, %v6716_v30 }
 0x264   : > { %v2159_v53 = vadd.f32 %v2158_v31, %v2157_v29  ;;  %v2365_v33 = vrot.slane %v2364_v46, 1  ;;  %v2166_v56 = vadd.f32 %v2165_v38, %v2164_v16 }
 0x265   : > { %v2372_v26 = vrot.slane %v2371_v10, 2  ;;  %v2172_v18 = vrot.slane %v2171_v39, 4  ;;  %v2376_v3 = vsel %vm637_vm4, %v2239_v52, 0.0 }
 0x266   : > { %v2203_v7 = vsel %vm637_vm4, %v2159_v53, 0.0  ;;  %v2366_v27 = vadd.f32 %v2365_v33, %v2364_v46  ;;  %v2167_v28 = vrot.slane %v2166_v56, 1  ;;  %v2378_v54 = vadd.f32 %v2377_v17, %v2376_v3 }
 0x267   : > { %v2204_v49 = vadd.f32 %v2203_v7, %v2202_v47  ;;  %v2373_v35 = vadd.f32 %v2372_v26, %v2371_v10  ;;  %v2173_v19 = vadd.f32 %v2172_v18, %v2171_v39 }
 0x268   : > { %v2410_v50 = vsel %vm637_vm4, %v2366_v27, 0.0  ;;  %v2168_v9 = vadd.f32 %v2167_v28, %v2166_v56  ;;  %v2379_v48 = vrot.slane %v2378_v54, 4 }
 0x269   : > { %v2411_v45 = vadd.f32 %v2410_v50, %v2409_v32  ;;  %v2374_v6 = vrot.slane %v2373_v35, 1  ;;  %v2174_v20 = vrot.slane %v2173_v19, 2 }
 0x26a   : > { %v2205_v41 = vsel %vm637_vm4, %v2168_v9, 0.0  ;;  %v2380_v15 = vadd.f32 %v2379_v48, %v2378_v54 }
 0x26b   : > { %v2206_v61 = vadd.f32 %v2205_v41, %v2204_v49  ;;  %v2375_v57 = vadd.f32 %v2374_v6, %v2373_v35  ;;  %v2175_v60 = vadd.f32 %v2174_v20, %v2173_v19 }
 0x26c   : > { %v2381_v29 = vrot.slane %v2380_v15, 2 }
 0x26d   : > { %v2412_v0 = vsel %vm637_vm4, %v2375_v57, 0.0  ;;  %v2176_v16 = vrot.slane %v2175_v60, 1 }
 0x26e   : > { %v2413_v47 = vadd.f32 %v2412_v0, %v2411_v45  ;;  %v2382_v11 = vadd.f32 %v2381_v29, %v2380_v15  ;;  %v8336_v15 = vld [vmem:[#allocation8_spill] sm:$0xff] }
 0x26f   : > { %v2177_v31 = vadd.f32 %v2176_v16, %v2175_v60 }
 0x270   : > { %v2383_v46 = vrot.slane %v2382_v11, 1 }
 0x271   : > { %v2207_v38 = vsel %vm637_vm4, %v2177_v31, 0.0 }
 0x272   : > { %v2208_v55 = vadd.f32 %v2207_v38, %v2206_v61  ;;  %v2384_v32 = vadd.f32 %v2383_v46, %v2382_v11  ;;  %v8337_v61 = vld [vmem:[#allocation7_spill] sm:$0xff] }
 0x274   : > { %v2414_v10 = vsel %vm637_vm4, %v2384_v32, 0.0  ;;  %v6730_v17 = vmul.f32 0.00390625, %v2208_v55 }
 0x275   : > { %v2415_v39 = vadd.f32 %v2414_v10, %v2413_v47 }
 0x276   : > { %v2418_v52 = vmul.f32 %v6730_v17, %v6730_v17  ;;  %v2451_v53 = vsub.f32 %v6716_v30, %v6730_v17  ;;  %v2442_v18 = vsub.f32 %v6587_v1, %v6730_v17  ;;  %v2443_v3 = vsub.f32 %v6616_v63, %v6730_v17 }
 0x277   : > { %v2417_v33 = vmul.f32 0.00390625, %v2415_v39  ;;  %v2444_v27 = vsub.f32 %v6601_v25, %v6730_v17  ;;  %v2445_v28 = vsub.f32 %v6632_v40, %v6730_v17  ;;  %v2446_v54 = vsub.f32 %v6637_v58, %v6730_v17 }
 0x278   : > { %v2447_v49 = vsub.f32 %v6659_v62, %v6730_v17  ;;  %v2448_v35 = vsub.f32 %v6673_v2, %v6730_v17  ;;  %v2449_v1 = vsub.f32 %v6670_v51, %v6730_v17  ;;  %v2450_v63 = vsub.f32 %v6695_v42, %v6730_v17 }
 0x279   : > { %v2419_v56 = vsub.f32 %v2417_v33, %v2418_v52  ;;  %v2452_v25 = vsub.f32 %v6703_v36, %v6730_v17  ;;  %v2421_v40 = vsub.f32 %v6327_v22, %v6730_v17  ;;  %v2422_v58 = vsub.f32 %v6330_v44, %v6730_v17  ;;  %v8332_v22 = vld [vmem:[#allocation3_spill] sm:$0xff] }
 0x27a   : > { %v2423_v62 = vsub.f32 %v6344_v24, %v6730_v17  ;;  %v2424_v2 = vsub.f32 %v6354_v5, %v6730_v17  ;;  %v2425_v19 = vsub.f32 %v6348_v14, %v6730_v17  ;;  %v2426_v50 = vsub.f32 %v6371_v8, %v6730_v17 }
 0x27b   : > { %v2420_v26 = vmax.f32 %v2419_v56, 0.0  ;;  %v2427_v9 = vsub.f32 %v6393_v59, %v6730_v17  ;;  %v2428_v48 = vsub.f32 %v8332_v22, %v6730_v17  ;;  %v2429_v44 = vsub.f32 %v6410_v21, %v6730_v17  ;;  %v8333_v21 = vld [vmem:[#allocation4_spill] sm:$0xff] }
 0x27c   : > { %v2430_v24 = vsub.f32 %v6413_v12, %v6730_v17  ;;  %v2431_v5 = vsub.f32 %v6433_v13, %v6730_v17  ;;  %v2432_v14 = vsub.f32 %v6453_v23, %v6730_v17  ;;  %v2433_v8 = vsub.f32 %v6438_v34, %v6730_v17  ;;  %v8334_v12 = vld [vmem:[#allocation5_spill] sm:$0xff]  ;;  %v8335_v23 = vld [vmem:[#allocation6_spill] sm:$0xff] }
 0x27d   : > { %v2453_v7 = vadd.f32 1e-05, %v2420_v26  ;;  %v2434_v59 = vsub.f32 %v6467_v37, %v6730_v17  ;;  %v2435_v45 = vsub.f32 %v6493_v43, %v6730_v17  ;;  %v2436_v6 = vsub.f32 %v8333_v21, %v6730_v17 }
 0x27e   : > { %v2437_v20 = vsub.f32 %v8334_v12, %v6730_v17  ;;  %v2438_v13 = vsub.f32 %v6508_v4, %v6730_v17  ;;  %v2439_v34 = vsub.f32 %v8335_v23, %v6730_v17  ;;  %v2440_v37 = vsub.f32 %v8336_v15, %v6730_v17 }
 0x27f   : > { %5570 = vrsqrt.f32 %v2453_v7  ;;  %v2441_v43 = vsub.f32 %v8337_v61, %v6730_v17 }
 0x289   : > { %v6790_v41 = vpop.eup %5570 }
 0x28a   : > { %v2457_v57 = vmul.f32 %v6790_v41, %v2423_v62  ;;  %v2458_v60 = vmul.f32 %v6790_v41, %v2424_v2  ;;  %v2455_v29 = vmul.f32 %v6790_v41, %v2421_v40  ;;  %v2456_v0 = vmul.f32 %v6790_v41, %v2422_v58 }
 0x28b   : > { %v2459_v16 = vmul.f32 %v6790_v41, %v2425_v19  ;;  %v2460_v4 = vmul.f32 %v6790_v41, %v2426_v50  ;;  %v2461_v47 = vmul.f32 %v6790_v41, %v2427_v9  ;;  %v2462_v11 = vmul.f32 %v6790_v41, %v2428_v48 }
 0x28c   : > { %v2489_v31 = vmax.f32 %v2457_v57, 0.0  ;;  %v2490_v46 = vmax.f32 %v2458_v60, 0.0  ;;  %v2463_v38 = vmul.f32 %v6790_v41, %v2429_v44  ;;  %v2464_v55 = vmul.f32 %v6790_v41, %v2430_v24 }
 0x28d   : > { %v2465_v32 = vmul.f32 %v6790_v41, %v2431_v5  ;;  %v2466_v10 = vmul.f32 %v6790_v41, %v2432_v14  ;;  %v2467_v39 = vmul.f32 %v6790_v41, %v2433_v8  ;;  %v2468_v52 = vmul.f32 %v6790_v41, %v2434_v59 }
 0x28e   : > { %v6814_v33 = vpack.c.bf16 %v2490_v46, %v2489_v31  ;;  %v2469_v56 = vmul.f32 %v6790_v41, %v2435_v45  ;;  %v2470_v26 = vmul.f32 %v6790_v41, %v2436_v6  ;;  %v6819_v7 = vmul.f32 %v6790_v41, %v2437_v20 }
 0x28f   : > { %v6822_v40 = vmul.f32 %v6790_v41, %v2438_v13  ;;  %v6825_v58 = vmul.f32 %v6790_v41, %v2439_v34  ;;  %v6828_v62 = vmul.f32 %v6790_v41, %v2440_v37  ;;  %v6831_v2 = vmul.f32 %v6790_v41, %v2441_v43 }
 0x290   : > { %v2536_v19 = vshrl.u32 %v6814_v33, 16  ;;  %v2600_v50 = vshll.u32 %v6814_v33, 16  ;;  %v6836_v9 = vmul.f32 %v6790_v41, %v2442_v18  ;;  %v6839_v22 = vmul.f32 %v6790_v41, %v2443_v3 }
 0x291   : > { %v6842_v48 = vmul.f32 %v6790_v41, %v2444_v27  ;;  %v6845_v44 = vmul.f32 %v6790_v41, %v2445_v28  ;;  %v6848_v24 = vmul.f32 %v6790_v41, %v2446_v54  ;;  %v6851_v5 = vmul.f32 %v6790_v41, %v2447_v49 }
 0x292   : > { %v6855_v14 = vrot.slane %v2536_v19, 7  ;;  %v2695_v18 = vrot.slane %v2600_v50, 7  ;;  %v6860_v3 = vmul.f32 %v6790_v41, %v2448_v35  ;;  %v2487_v27 = vmax.f32 %v2455_v29, 0.0 }
 0x293   : > { %v2488_v8 = vmax.f32 %v2456_v0, 0.0  ;;  %v2491_v45 = vmax.f32 %v2459_v16, 0.0  ;;  %v2492_v21 = vmax.f32 %v2460_v4, 0.0  ;;  %v2493_v6 = vmax.f32 %v2461_v47, 0.0 }
 0x294   : > { %v2743_v54 = vsel %vm5663_vm2, %v6855_v14, %v2695_v18  ;;  %v2494_v12 = vmax.f32 %v2462_v11, 0.0  ;;  %v2495_v35 = vmax.f32 %v2463_v38, 0.0  ;;  %v2496_v20 = vmax.f32 %v2464_v55, 0.0 }
 0x295   : > { %v6866_v59 = vsel %vm412_vm0, %v2743_v54, 0  ;;  %v6868_v49 = vpack.c.bf16 %v2488_v8, %v2487_v27  ;;  %v2497_v34 = vmax.f32 %v2465_v32, 0.0  ;;  %v2498_v15 = vmax.f32 %v2466_v10, 0.0 }
 0x296   : > { %2889 = vrot.lane.b32.xlu1 %v6866_v59, %s5614_s18  ;;  %v2499_v37 = vmax.f32 %v2467_v39, 0.0  ;;  %v2500_v61 = vmax.f32 %v2468_v52, 0.0  ;;  %v2501_v43 = vmax.f32 %v2469_v56, 0.0  ;;  %v2502_v57 = vmax.f32 %v2470_v26, 0.0 }
 0x297   : > { %v2539_v13 = vshrl.u32 %v6868_v49, 16  ;;  %v2604_v23 = vshll.u32 %v6868_v49, 16  ;;  %v6883_v16 = vpack.c.bf16 %v2492_v21, %v2491_v45  ;;  %v6885_v4 = vpack.c.bf16 %v2494_v12, %v2493_v6 }
 0x298   : > { %v6887_v47 = vpack.c.bf16 %v2496_v20, %v2495_v35  ;;  %v6892_v31 = vpack.c.bf16 %v2498_v15, %v2497_v34  ;;  %v6894_v46 = vpack.c.bf16 %v2500_v61, %v2499_v37  ;;  %v6896_v38 = vpack.c.bf16 %v2502_v57, %v2501_v43 }
 0x299   : > { %v6876_v60 = vrot.slane %v2539_v13, 7  ;;  %v2696_v29 = vrot.slane %v2604_v23, 7  ;;  %v2542_v55 = vshrl.u32 %v6883_v16, 16  ;;  %v2608_v32 = vshll.u32 %v6883_v16, 16 }
 0x29a   : > { %v2545_v10 = vshrl.u32 %v6885_v4, 16  ;;  %v2612_v39 = vshll.u32 %v6885_v4, 16  ;;  %v2548_v52 = vshrl.u32 %v6887_v47, 16  ;;  %v2616_v56 = vshll.u32 %v6887_v47, 16 }
 0x29b   : > { %v2744_v0 = vsel %vm5663_vm2, %v6876_v60, %v2696_v29  ;;  %v6908_v26 = vrot.slane %v2542_v55, 7  ;;  %v2697_v18 = vrot.slane %v2608_v32, 7  ;;  %v2503_v54 = vmax.f32 %v6819_v7, 0.0 }
 0x29c   : > { %v6890_v11 = vsel %vm412_vm0, %v2744_v0, 0  ;;  %v6914_v27 = vrot.slane %v2545_v10, 7  ;;  %v2698_v8 = vrot.slane %v2612_v39, 7  ;;  %v2504_v45 = vmax.f32 %v6822_v40, 0.0 }
 0x29d   : > { %2825 = vrot.lane.b32.xlu0 %v6890_v11, %s5615_s19  ;;  %v2745_v21 = vsel %vm5663_vm2, %v6908_v26, %v2697_v18  ;;  %v6927_v6 = vrot.slane %v2548_v52, 7  ;;  %v2699_v12 = vrot.slane %v2616_v56, 7  ;;  %v8317_v7 = vshrl.u32 %v6892_v31, 16 }
 0x29e   : > { %v6932_v35 = vsel %vm412_vm0, %v2745_v21, 0  ;;  %v2620_v40 = vshll.u32 %v6892_v31, 16  ;;  %v2746_v20 = vsel %vm5663_vm2, %v6914_v27, %v2698_v8  ;;  %v2505_v34 = vmax.f32 %v6825_v58, 0.0 }
 0x29f   : > { %2893 = vrot.lane.b32.xlu1 %v6932_v35, %s5614_s18  ;;  %v2506_v15 = vmax.f32 %v6828_v62, 0.0  ;;  %v2747_v37 = vsel %vm5663_vm2, %v6927_v6, %v2699_v12  ;;  %v6948_v61 = vpack.c.bf16 %v2504_v45, %v2503_v54  ;;  %v6951_v43 = vsel %vm412_vm0, %v2746_v20, 0 }
 0x2a0   : > { %v6955_v57 = vrot.slane %v8317_v7, 7  ;;  %v2700_v58 = vrot.slane %v2620_v40, 7  ;;  %v8316_v62 = vshrl.u32 %v6894_v46, 16  ;;  %v2507_v29 = vmax.f32 %v6831_v2, 0.0  ;;  %v5568_v7 = vld [vmem:[%s8306_s2 + $0x8] sm:$0x3f]  }
 0x2a1   : > { %2829 = vrot.lane.b32.xlu0 %v6866_v59, %s5615_s19  ;;  %v2508_v0 = vmax.f32 %v6836_v9, 0.0  ;;  %v2624_v18 = vshll.u32 %v6894_v46, 16  ;;  %v6966_v8 = vsel %vm412_vm0, %v2747_v37, 0  ;;  %v6968_v54 = vpack.c.bf16 %v2506_v15, %v2505_v34  ;;  %5552 = vmatprep.subr.msk.bf16.mxu0 %vm964_vm3, %v5568_v7 }
 0x2a2   : > { %v2509_v45 = vmax.f32 %v6839_v22, 0.0  ;;  %v2510_v21 = vmax.f32 %v6842_v48, 0.0  ;;  %v2511_v2 = vmax.f32 %v6845_v44, 0.0  ;;  %v2512_v9 = vmax.f32 %v6848_v24, 0.0 }
 0x2a3   : > { %2837 = vrot.lane.b32.xlu1 %v6951_v43, %s5615_s19  ;;  %v2748_v12 = vsel %vm5663_vm2, %v6955_v57, %v2700_v58  ;;  %v6981_v20 = vrot.slane %v8316_v62, 7  ;;  %v2701_v22 = vrot.slane %v2624_v18, 7  ;;  %v2557_v48 = vshrl.u32 %v6896_v38, 16 }
 0x2a4   : > { %v2628_v44 = vshll.u32 %v6896_v38, 16  ;;  %v6989_v34 = vpack.c.bf16 %v2508_v0, %v2507_v29  ;;  %v2513_v24 = vmax.f32 %v6851_v5, 0.0  ;;  %v2514_v15 = vmax.f32 %v6860_v3, 0.0 }
 0x2a5   : > { %2833 = vrot.lane.b32.xlu0 %v6932_v35, %s5615_s19  ;;  %v6996_v37 = vsel %vm412_vm0, %v2748_v12, 0  ;;  %v6998_v58 = vpack.c.bf16 %v2510_v21, %v2509_v45  ;;  %v7000_v62 = vpack.c.bf16 %v2512_v9, %v2511_v2  ;;  %v2749_v5 = vsel %vm5663_vm2, %v6981_v20, %v2701_v22 }
 0x2a6   : > { %v7012_v3 = vrot.slane %v2557_v48, 7  ;;  %v2702_v29 = vrot.slane %v2628_v44, 7  ;;  %v7019_v0 = vpack.c.bf16 %v2514_v15, %v2513_v24  ;;  %v7022_v45 = vsel %vm412_vm0, %v2749_v5, 0 }
 0x2a7   : > { %2897 = vrot.lane.b32.xlu1 %v6951_v43, %s5614_s18  ;;  %v2606_v2 = vor.u32 %v2604_v23, %v6876_v60  ;;  %v2483_v9 = vmul.f32 %v6790_v41, %v2449_v1  ;;  %v2560_v12 = vshrl.u32 %v6948_v61, 16  ;;  %v2632_v22 = vshll.u32 %v6948_v61, 16  ;;  %v7053_v1 = vld [vmem:[%s8306_s2 + $0x10] sm:$0x3f]  }
 0x2a8   : > { %v2750_v21 = vsel %vm5663_vm2, %v7012_v3, %v2702_v29  ;;  %v2602_v15 = vor.u32 %v2600_v50, %v6855_v14  ;;  %v2484_v51 = vmul.f32 %v6790_v41, %v2450_v63  ;;  %v2610_v23 = vor.u32 %v2608_v32, %v6908_v26  ;;  %5553 = vmatprep.subr.msk.bf16.mxu1 %vm964_vm3, %v7053_v1 }
 0x2a9   : > { %2901 = vrot.lane.b32.xlu0 %v6966_v8, %s5614_s18  ;;  %v7041_v24 = vsel %vm412_vm0, %v2750_v21, 0  ;;  %v2515_v60 = vmax.f32 %v2483_v9, 0.0  ;;  %v2485_v42 = vmul.f32 %v6790_v41, %v2451_v53  ;;  %v7068_v63 = vsel %vm5663_vm2, %v2539_v13, %v2606_v2 }
 0x2aa   : > { %v2516_v50 = vmax.f32 %v2484_v51, 0.0  ;;  %v2486_v14 = vmul.f32 %v6790_v41, %v2452_v25  ;;  %v3492_v32 = vsel %vm964_vm3, %v5568_v7, 0  ;;  %v2631_v30 = vrot.slane %v2560_v12, 7 }
 0x2ab   : > { %2905 = vrot.lane.b32.xlu1 %v6996_v37, %s5614_s18  ;;  %v2703_v53 = vrot.slane %v2632_v22, 7  ;;  %v2517_v49 = vmax.f32 %v2485_v42, 0.0  ;;  %5449 = vmatpush3.bf16.msra.mxu0 %v3492_v32  ;;  %v7087_v36 = vsel %vm5663_vm2, %v2536_v19, %v2602_v15  ;;  %v7097_v41 = vsel %vm5663_vm2, %v2542_v55, %v2610_v23 }
 0x2ac   : > { %v7089_v17 = vpack.c.bf16 %v2516_v50, %v2515_v60  ;;  %v2518_v25 = vmax.f32 %v2486_v14, 0.0  ;;  %v2614_v16 = vor.u32 %v2612_v39, %v6914_v27  ;;  %v2563_v55 = vshrl.u32 %v6968_v54, 16 }
 0x2ad   : > { %2841 = vrot.lane.b32.xlu0 %v6966_v8, %s5615_s19  ;;  %v2751_v33 = vsel %vm5663_vm2, %v2631_v30, %v2703_v53  ;;  %v2636_v26 = vshll.u32 %v6968_v54, 16  ;;  %v2618_v39 = vor.u32 %v2616_v56, %v6927_v6  ;;  %v2622_v47 = vor.u32 %v2620_v40, %v6955_v57 }
 0x2ae   : > { %v7099_v13 = vpack.c.bf16 %v2518_v25, %v2517_v49  ;;  %v7108_v19 = vsel %vm412_vm0, %v2751_v33, 0  ;;  %v7125_v7 = vsel %vm5663_vm2, %v2545_v10, %v2614_v16  ;;  %v2635_v27 = vrot.slane %v2563_v55, 7 }
 0x2af   : > { %2909 = vrot.lane.b32.xlu1 %v7022_v45, %s5614_s18  ;;  %v2704_v5 = vrot.slane %v2636_v26, 7  ;;  %v7138_v4 = vsel %vm5663_vm2, %v2548_v52, %v2618_v39  ;;  %v2566_v52 = vshrl.u32 %v6989_v34, 16  ;;  %v2640_v6 = vshll.u32 %v6989_v34, 16 }
 0x2b0   : > { %v2626_v54 = vor.u32 %v2624_v18, %v6981_v20  ;;  %v8339_v29 = vshrl.u32 %v6892_v31, 16  ;;  %v8340_v34 = vshrl.u32 %v6894_v46, 16  ;;  %v2630_v46 = vor.u32 %v2628_v44, %v7012_v3 }
 0x2b1   : > { %2845 = vrot.lane.b32.xlu0 %v6996_v37, %s5615_s19  ;;  %v2752_v10 = vsel %vm5663_vm2, %v2635_v27, %v2704_v5  ;;  %v2639_v40 = vrot.slane %v2566_v52, 7  ;;  %v2705_v57 = vrot.slane %v2640_v6, 7  ;;  %v2569_v20 = vshrl.u32 %v6998_v58, 16 }
 0x2b2   : > { %v7147_v56 = vsel %vm412_vm0, %v2752_v10, 0  ;;  %v7165_v21 = vsel %vm5663_vm2, %v8339_v29, %v2622_v47  ;;  %v7173_v2 = vsel %vm5663_vm2, %v8340_v34, %v2626_v54  ;;  %v2644_v9 = vshll.u32 %v6998_v58, 16 }
 0x2b3   : > { %2853 = vrot.lane.b32.xlu1 %v7041_v24, %s5615_s19  ;;  %v2753_v31 = vsel %vm5663_vm2, %v2639_v40, %v2705_v57  ;;  %v7199_v15 = vsel %vm5663_vm2, %v2557_v48, %v2630_v46  ;;  %v2634_v51 = vor.u32 %v2632_v22, %v2631_v30  ;;  %v2643_v44 = vrot.slane %v2569_v20, 7 }
 0x2b4   : > { %v7184_v18 = vsel %vm412_vm0, %v2753_v31, 0  ;;  %v2706_v3 = vrot.slane %v2644_v9, 7  ;;  %v2572_v58 = vshrl.u32 %v7000_v62, 16  ;;  %v2648_v22 = vshll.u32 %v7000_v62, 16 }
 0x2b5   : > { %2849 = vrot.lane.b32.xlu0 %v7022_v45, %s5615_s19  ;;  %v7211_v38 = vsel %vm5663_vm2, %v2560_v12, %v2634_v51  ;;  %v2638_v61 = vor.u32 %v2636_v26, %v2635_v27  ;;  %v2642_v12 = vor.u32 %v2640_v6, %v2639_v40  ;;  %v2646_v30 = vor.u32 %v2644_v9, %v2643_v44 }
 0x2b6   : > { %v2754_v48 = vsel %vm5663_vm2, %v2643_v44, %v2706_v3  ;;  %v2647_v60 = vrot.slane %v2572_v58, 7  ;;  %v2707_v42 = vrot.slane %v2648_v22, 7  ;;  %v2575_v53 = vshrl.u32 %v7019_v0, 16 }
 0x2b7   : > { %2827 = vrot.lane.b32.xlu1 %v7087_v36, %s5615_s19  ;;  %v7222_v23 = vsel %vm412_vm0, %v2754_v48, 0  ;;  %v7230_v50 = vsel %vm5663_vm2, %v2563_v55, %v2638_v61  ;;  %v7236_v62 = vsel %vm5663_vm2, %v2566_v52, %v2642_v12  ;;  %v2652_v49 = vshll.u32 %v7019_v0, 16 }
 0x2b8   : > { %v2755_v14 = vsel %vm5663_vm2, %v2647_v60, %v2707_v42  ;;  %v7257_v25 = vsel %vm5663_vm2, %v2569_v20, %v2646_v30  ;;  %v2650_v33 = vor.u32 %v2648_v22, %v2647_v60  ;;  %v2651_v16 = vrot.slane %v2575_v53, 7 }
 0x2b9   : > { %2823 = vrot.lane.b32.xlu0 %v7068_v63, %s5615_s19  ;;  %v7245_v32 = vsel %vm412_vm0, %v2755_v14, 0  ;;  %v2708_v55 = vrot.slane %v2652_v49, 7  ;;  %v2578_v26 = vshrl.u32 %v7089_v17, 16  ;;  %v2656_v47 = vshll.u32 %v7089_v17, 16 }
 0x2ba   : > { %v7266_v0 = vsel %vm5663_vm2, %v2572_v58, %v2650_v33  ;;  %v2654_v10 = vor.u32 %v2652_v49, %v2651_v16  ;;  %v2581_v54 = vshrl.u32 %v7099_v13, 16  ;;  %v2660_v34 = vshll.u32 %v7099_v13, 16 }
 0x2bb   : > { %2887 = vrot.lane.b32.xlu1 %v7087_v36, %s5614_s18  ;;  %v2756_v39 = vsel %vm5663_vm2, %v2651_v16, %v2708_v55  ;;  %v2655_v27 = vrot.slane %v2578_v26, 7  ;;  %v2709_v29 = vrot.slane %v2656_v47, 7 }
 0x2bc   : > { %v7275_v5 = vsel %vm412_vm0, %v2756_v39, 0  ;;  %v7284_v6 = vsel %vm5663_vm2, %v2575_v53, %v2654_v10  ;;  %v2659_v40 = vrot.slane %v2581_v54, 7  ;;  %v2710_v20 = vrot.slane %v2660_v34, 7 }
 0x2bd   : > { %2891 = vrot.lane.b32.xlu0 %v7097_v41, %s5614_s18  ;;  %v2658_v52 = vor.u32 %v2656_v47, %v2655_v27  ;;  %v2757_v57 = vsel %vm5663_vm2, %v2655_v27, %v2709_v29 }
 0x2be   : > { %v7303_v31 = vsel %vm412_vm0, %v2757_v57, 0  ;;  %v2662_v46 = vor.u32 %v2660_v34, %v2659_v40  ;;  %v2758_v44 = vsel %vm5663_vm2, %v2659_v40, %v2710_v20  ;;  %v3920_v20 = vsel %vm964_vm3, %v7053_v1, 0 }
 0x2bf   : > { %2913 = vrot.lane.b32.xlu1 %v7041_v24, %s5614_s18  ;;  %v7291_v17 = vsel %vm5663_vm2, %v2578_v26, %v2658_v52  ;;  %v2790_v3 = vsel %vm412_vm0, %v2758_v44, 0 }
 0x2c0   : > { %v2742_v9 = vsel %vm5663_vm2, %v2581_v54, %v2662_v46 }
 0x2c1   : > { %2917 = vrot.lane.b32.xlu0 %v7108_v19, %s5614_s18 }
 0x2c3   : > { %2895 = vrot.lane.b32.xlu1 %v7125_v7, %s5614_s18 }
 0x2c5   : > { %2831 = vrot.lane.b32.xlu0 %v7097_v41, %s5615_s19 }
 0x2c7   : > { %2899 = vrot.lane.b32.xlu1 %v7138_v4, %s5614_s18 }
 0x2c9   : > { %2835 = vrot.lane.b32.xlu0 %v7125_v7, %s5615_s19 }
 0x2cb   : > { %2921 = vrot.lane.b32.xlu1 %v7147_v56, %s5614_s18 }
 0x2cd   : > { %2857 = vrot.lane.b32.xlu0 %v7108_v19, %s5615_s19 }
 0x2cf   : > { %2843 = vrot.lane.b32.xlu1 %v7165_v21, %s5615_s19 }
 0x2d1   : > { %2839 = vrot.lane.b32.xlu0 %v7138_v4, %s5615_s19 }
 0x2d3   : > { %2903 = vrot.lane.b32.xlu1 %v7165_v21, %s5614_s18 }
 0x2d5   : > { %2907 = vrot.lane.b32.xlu0 %v7173_v2, %s5614_s18 }
 0x2d7   : > { %2925 = vrot.lane.b32.xlu1 %v7184_v18, %s5614_s18 }
 0x2d9   : > { %2861 = vrot.lane.b32.xlu0 %v7147_v56, %s5615_s19 }
 0x2db   : > { %2911 = vrot.lane.b32.xlu1 %v7199_v15, %s5614_s18 }
 0x2dd   : > { %2847 = vrot.lane.b32.xlu0 %v7173_v2, %s5615_s19 }
 0x2df   : > { %2915 = vrot.lane.b32.xlu1 %v7211_v38, %s5614_s18 }
 0x2e1   : > { %2851 = vrot.lane.b32.xlu0 %v7199_v15, %s5615_s19 }
 0x2e3   : > { %2869 = vrot.lane.b32.xlu1 %v7222_v23, %s5615_s19 }
 0x2e5   : > { %2865 = vrot.lane.b32.xlu0 %v7184_v18, %s5615_s19 }
 0x2e7   : > { %2859 = vrot.lane.b32.xlu1 %v7230_v50, %s5615_s19 }
 0x2e9   : > { %2855 = vrot.lane.b32.xlu0 %v7211_v38, %s5615_s19 }
 0x2eb   : > { %2919 = vrot.lane.b32.xlu1 %v7230_v50, %s5614_s18 }
 0x2ed   : > { %2923 = vrot.lane.b32.xlu0 %v7236_v62, %s5614_s18 }
 0x2ef   : > { %2929 = vrot.lane.b32.xlu1 %v7222_v23, %s5614_s18 }
 0x2f1   : > { %2933 = vrot.lane.b32.xlu0 %v7245_v32, %s5614_s18 }
 0x2f3   : > { %2927 = vrot.lane.b32.xlu1 %v7257_v25, %s5614_s18 }
 0x2f5   : > { %2863 = vrot.lane.b32.xlu0 %v7236_v62, %s5615_s19 }
 0x2f7   : > { %2931 = vrot.lane.b32.xlu1 %v7266_v0, %s5614_s18 }
 0x2f9   : > { %2867 = vrot.lane.b32.xlu0 %v7257_v25, %s5615_s19 }
 0x2fb   : > { %2937 = vrot.lane.b32.xlu1 %v7275_v5, %s5614_s18 }
 0x2fd   : > { %2873 = vrot.lane.b32.xlu0 %v7245_v32, %s5615_s19 }
 0x2ff   : > { %2875 = vrot.lane.b32.xlu1 %v7284_v6, %s5615_s19 }
 0x301   : > { %2871 = vrot.lane.b32.xlu0 %v7266_v0, %s5615_s19 }
 0x303   : > { %2935 = vrot.lane.b32.xlu1 %v7284_v6, %s5614_s18 }
 0x305   : > { %2939 = vrot.lane.b32.xlu0 %v7291_v17, %s5614_s18 }
 0x307   : > { %2941 = vrot.lane.b32.xlu1 %v7303_v31, %s5614_s18 }
 0x308   : > { %v2890_v13 = vpop.permute.xlu1 %2889 }
 0x309   : > { %2877 = vrot.lane.b32.xlu0 %v7275_v5, %s5615_s19 }
 0x30b   : > { %2943 = vrot.lane.b32.xlu1 %v2742_v9, %s5614_s18 }
 0x30d   : > { %2879 = vrot.lane.b32.xlu0 %v7291_v17, %s5615_s19 }
 0x30f   : > { %v2826_v51 = vpop.permute.xlu0 %2825  ;;  %2885 = vrot.lane.b32.xlu1 %v2790_v3, %s5615_s19 }
 0x310   : > { %v2951_v55 = vsel %vm637_vm4, %v6866_v59, %v2826_v51 }
 0x311   : > { %2883 = vrot.lane.b32.xlu0 %v2742_v9, %s5615_s19  ;;  %v2894_v58 = vpop.permute.xlu1 %2893  ;;  %v3029_v47 = vsel %vm717_vm5, %v2951_v55, %v2890_v13 }
 0x313   : > { %v2830_v48 = vpop.permute.xlu0 %2829  ;;  %2945 = vrot.lane.b32.xlu1 %v2790_v3, %s5614_s18 }
 0x314   : > { %v2956_v33 = vsel %vm637_vm4, %v6890_v11, %v2830_v48 }
 0x315   : > { %2881 = vrot.lane.b32.xlu0 %v7303_v31, %s5615_s19  ;;  %v2838_v61 = vpop.permute.xlu1 %2837  ;;  %v3033_v39 = vsel %vm717_vm5, %v2956_v33, %v2894_v58 }
 0x316   : > { %v3125_v54 = vunpack.c.l.b16 %v3033_v39  ;;  %v2965_v3 = vsel %vm637_vm4, %v6932_v35, %v2838_v61 }
 0x317   : > { %v2834_v22 = vpop.permute.xlu0 %2833 }
 0x319   : > { %v2898_v60 = vpop.permute.xlu1 %2897 }
 0x31b   : > { %v2902_v12 = vpop.permute.xlu0 %2901 }
 0x31c   : > { %v3041_v58 = vsel %vm717_vm5, %v2965_v3, %v2902_v12 }
 0x31d   : > { %v7320_v28 = vpop.permute.xlu1 %2905  ;;  %v3131_v61 = vunpack.c.l.b16 %v3041_v58 }
 0x31f   : > { %v2842_v42 = vpop.permute.xlu0 %2841 }
 0x321   : > { %v2910_v30 = vpop.permute.xlu1 %2909 }
 0x323   : > { %v2846_v14 = vpop.permute.xlu0 %2845 }
 0x325   : > { %v7324_v49 = vpop.permute.xlu1 %2853 }
 0x326   : > { %v2985_v3 = vsel %vm637_vm4, %v7022_v45, %v7324_v49 }
 0x327   : > { %v7322_v53 = vpop.permute.xlu0 %2849 }
 0x329   : > { %v2828_v26 = vpop.permute.xlu1 %2827 }
 0x32a   : > { %v2954_v27 = vsel %vm637_vm4, %v7068_v63, %v2828_v26 }
 0x32b   : > { %v2824_v16 = vpop.permute.xlu0 %2823 }
 0x32c   : > { %v2949_v29 = vsel %vm637_vm4, %v7087_v36, %v2824_v16 }
 0x32d   : > { %v2888_v11 = vpop.permute.xlu1 %2887 }
 0x32e   : > { %v7340_v34 = vsel %vm717_vm5, %v2949_v29, %v2888_v11 }
 0x32f   : > { %v2892_v10 = vpop.permute.xlu0 %2891  ;;  %5400 = vmatprep.mubr.msk.bf16.mxu1 %vm891_vm6, %v7340_v34  ;;  %5450 = vmatprep.mubr.msk.bf16.mxu0 %vm891_vm6, %v7340_v34 }
 0x330   : > { %v3031_v52 = vsel %vm717_vm5, %v2954_v27, %v2892_v10 }
 0x331   : > { %v3124_v40 = vunpack.c.h.b16 %v3031_v52  ;;  %v7337_v57 = vcombine.low %v3029_v47, %v3031_v52  ;;  %v7356_v9 = vpop.permute.xlu1 %2913 }
 0x333   : > { %v7342_v46 = vpack.c.b16 %v3125_v54, %v3124_v40  ;;  %v7348_v63 = vpop.permute.xlu0 %2917  ;;  %5401 = vmatmul.mubr.msk.bf16.vlgmr.msra.gmra.mrb[48].mxu1 %vm891_vm6, %v7337_v57  ;;  %5451 = vmatmul.mubr.msk.bf16.vlgmr.msra.gmra.mrb[96].mxu0 %vm891_vm6, %v7337_v57 }
 0x334   : > { %5499 = vmatpush3.bf16.msra.mxu1 %v3920_v20  ;;  %v3057_v58 = vsel %vm717_vm5, %v2985_v3, %v7348_v63 }
 0x335   : > { %5404 = vmatprep.mubr.msk.bf16.mxu1 %vm891_vm6, %v7342_v46  ;;  %5454 = vmatprep.mubr.msk.bf16.mxu0 %vm891_vm6, %v7342_v46  ;;  %v2896_v1 = vpop.permute.xlu1 %2895  ;;  %v3143_v63 = vunpack.c.l.b16 %v3057_v58 }
 0x337   : > { %v2832_v13 = vpop.permute.xlu0 %2831 }
 0x338   : > { %v2958_v51 = vsel %vm637_vm4, %v7087_v36, %v2832_v13  ;;  %v2960_v36 = vsel %vm637_vm4, %v6866_v59, %v2834_v22  ;;  %v2975_v59 = vsel %vm637_vm4, %v6966_v8, %v2846_v14 }
 0x339   : > { %v7365_v44 = vsel %vm717_vm5, %v2958_v51, %v2896_v1  ;;  %v2900_v16 = vpop.permute.xlu1 %2899  ;;  %v3037_v55 = vsel %vm717_vm5, %v2960_v36, %v2898_v60  ;;  %v2970_v60 = vsel %vm637_vm4, %v6951_v43, %v2842_v42  ;;  %v3049_v47 = vsel %vm717_vm5, %v2975_v59, %v2910_v30 }
 0x33a   : > { %v3045_v8 = vsel %vm717_vm5, %v2970_v60, %v7320_v28  ;;  %v3137_v29 = vunpack.c.l.b16 %v3049_v47 }
 0x33b   : > { %v2836_v48 = vpop.permute.xlu0 %2835  ;;  %5405 = vmatmul.mubr.msk.bf16.gmra.mrb[52].mxu1 %vm891_vm6, %v7365_v44  ;;  %5455 = vmatmul.mubr.msk.bf16.gmra.mrb[100].mxu0 %vm891_vm6, %v7365_v44 }
 0x33c   : > { %v2963_v33 = vsel %vm637_vm4, %v7097_v41, %v2836_v48 }
 0x33d   : > { %v3039_v35 = vsel %vm717_vm5, %v2963_v33, %v2900_v16  ;;  %v2922_v27 = vpop.permute.xlu1 %2921 }
 0x33e   : > { %v3130_v26 = vunpack.c.h.b16 %v3039_v35  ;;  %v7380_v12 = vcombine.low %v3037_v55, %v3039_v35 }
 0x33f   : > { %v2858_v39 = vpop.permute.xlu0 %2857 }
 0x340   : > { %v7382_v41 = vpack.c.b16 %v3131_v61, %v3130_v26  ;;  %5408 = vmatprep.mubr.msk.bf16.mxu1 %vm891_vm6, %v7380_v12  ;;  %5458 = vmatprep.mubr.msk.bf16.mxu0 %vm891_vm6, %v7380_v12 }
 0x341   : > { %v2844_v10 = vpop.permute.xlu1 %2843 }
 0x342   : > { %v2973_v52 = vsel %vm637_vm4, %v7138_v4, %v2844_v10 }
 0x343   : > { %v2840_v22 = vpop.permute.xlu0 %2839  ;;  %5409 = vmatmul.mubr.msk.bf16.gmra.mrb[56].mxu1 %vm891_vm6, %v7382_v41  ;;  %5459 = vmatmul.mubr.msk.bf16.gmra.mrb[104].mxu0 %vm891_vm6, %v7382_v41 }
 0x344   : > { %v2968_v11 = vsel %vm637_vm4, %v7125_v7, %v2840_v22 }
 0x345   : > { %v2904_v40 = vpop.permute.xlu1 %2903 }
 0x346   : > { %v7407_v43 = vsel %vm717_vm5, %v2968_v11, %v2904_v40 }
 0x347   : > { %v2908_v54 = vpop.permute.xlu0 %2907  ;;  %5412 = vmatprep.mubr.msk.bf16.mxu1 %vm891_vm6, %v7407_v43  ;;  %5462 = vmatprep.mubr.msk.bf16.mxu0 %vm891_vm6, %v7407_v43 }
 0x348   : > { %v3047_v14 = vsel %vm717_vm5, %v2973_v52, %v2908_v54 }
 0x349   : > { %v3136_v20 = vunpack.c.h.b16 %v3047_v14  ;;  %v7404_v13 = vcombine.low %v3045_v8, %v3047_v14  ;;  %v2926_v7 = vpop.permute.xlu1 %2925 }
 0x34b   : > { %v7409_v42 = vpack.c.b16 %v3137_v29, %v3136_v20  ;;  %v2862_v4 = vpop.permute.xlu0 %2861  ;;  %5413 = vmatmul.mubr.msk.bf16.gmra.mrb[60].mxu1 %vm891_vm6, %v7404_v13  ;;  %5463 = vmatmul.mubr.msk.bf16.gmra.mrb[108].mxu0 %vm891_vm6, %v7404_v13 }
 0x34d   : > { %5416 = vmatprep.mubr.msk.bf16.mxu1 %vm891_vm6, %v7409_v42  ;;  %5466 = vmatprep.mubr.msk.bf16.mxu0 %vm891_vm6, %v7409_v42  ;;  %v2912_v51 = vpop.permute.xlu1 %2911 }
 0x34f   : > { %v2848_v28 = vpop.permute.xlu0 %2847 }
 0x350   : > { %v2978_v30 = vsel %vm637_vm4, %v7165_v21, %v2848_v28  ;;  %v2980_v21 = vsel %vm637_vm4, %v6996_v37, %v7322_v53  ;;  %v2995_v37 = vsel %vm637_vm4, %v7108_v19, %v2862_v4 }
 0x351   : > { %v7426_v1 = vsel %vm717_vm5, %v2978_v30, %v2912_v51  ;;  %v2916_v36 = vpop.permute.xlu1 %2915  ;;  %v3053_v45 = vsel %vm717_vm5, %v2980_v21, %v7356_v9  ;;  %v2990_v9 = vsel %vm637_vm4, %v7041_v24, %v2858_v39  ;;  %v3065_v59 = vsel %vm717_vm5, %v2995_v37, %v2926_v7 }
 0x352   : > { %v3061_v10 = vsel %vm717_vm5, %v2990_v9, %v2922_v27  ;;  %v3149_v47 = vunpack.c.l.b16 %v3065_v59 }
 0x353   : > { %v2852_v48 = vpop.permute.xlu0 %2851  ;;  %5417 = vmatmul.mubr.msk.bf16.gmra.mrb[64].mxu1 %vm891_vm6, %v7426_v1  ;;  %5467 = vmatmul.mubr.msk.bf16.gmra.mrb[112].mxu0 %vm891_vm6, %v7426_v1 }
 0x354   : > { %v2983_v33 = vsel %vm637_vm4, %v7173_v2, %v2852_v48 }
 0x355   : > { %v3055_v49 = vsel %vm717_vm5, %v2983_v33, %v2916_v36  ;;  %v2870_v61 = vpop.permute.xlu1 %2869 }
 0x356   : > { %v3142_v16 = vunpack.c.h.b16 %v3055_v49  ;;  %v7445_v55 = vcombine.low %v3053_v45, %v3055_v49  ;;  %v3005_v20 = vsel %vm637_vm4, %v7184_v18, %v2870_v61 }
 0x357   : > { %v2866_v2 = vpop.permute.xlu0 %2865 }
 0x358   : > { %v7447_v35 = vpack.c.b16 %v3143_v63, %v3142_v16  ;;  %5420 = vmatprep.mubr.msk.bf16.mxu1 %vm891_vm6, %v7445_v55  ;;  %5470 = vmatprep.mubr.msk.bf16.mxu0 %vm891_vm6, %v7445_v55 }
 0x359   : > { %v2860_v26 = vpop.permute.xlu1 %2859 }
 0x35a   : > { %v2993_v22 = vsel %vm637_vm4, %v7211_v38, %v2860_v26 }
 0x35b   : > { %v2856_v53 = vpop.permute.xlu0 %2855  ;;  %5421 = vmatmul.mubr.msk.bf16.gmra.mrb[68].mxu1 %vm891_vm6, %v7447_v35  ;;  %5471 = vmatmul.mubr.msk.bf16.gmra.mrb[116].mxu0 %vm891_vm6, %v7447_v35 }
 0x35c   : > { %v2988_v52 = vsel %vm637_vm4, %v7199_v15, %v2856_v53 }
 0x35d   : > { %v2920_v54 = vpop.permute.xlu1 %2919 }
 0x35e   : > { %v7471_v24 = vsel %vm717_vm5, %v2988_v52, %v2920_v54 }
 0x35f   : > { %v2924_v60 = vpop.permute.xlu0 %2923  ;;  %5424 = vmatprep.mubr.msk.bf16.mxu1 %vm891_vm6, %v7471_v24  ;;  %5474 = vmatprep.mubr.msk.bf16.mxu0 %vm891_vm6, %v7471_v24 }
 0x360   : > { %v3063_v19 = vsel %vm717_vm5, %v2993_v22, %v2924_v60 }
 0x361   : > { %v3148_v8 = vunpack.c.h.b16 %v3063_v19  ;;  %v7468_v14 = vcombine.low %v3061_v10, %v3063_v19  ;;  %v2930_v15 = vpop.permute.xlu1 %2929 }
 0x363   : > { %v7473_v39 = vpack.c.b16 %v3149_v47, %v3148_v8  ;;  %v2934_v38 = vpop.permute.xlu0 %2933  ;;  %5425 = vmatmul.mubr.msk.bf16.gmra.mrb[72].mxu1 %vm891_vm6, %v7468_v14  ;;  %5475 = vmatmul.mubr.msk.bf16.gmra.mrb[120].mxu0 %vm891_vm6, %v7468_v14 }
 0x364   : > { %v3073_v7 = vsel %vm717_vm5, %v3005_v20, %v2934_v38 }
 0x365   : > { %5428 = vmatprep.mubr.msk.bf16.mxu1 %vm891_vm6, %v7473_v39  ;;  %5478 = vmatprep.mubr.msk.bf16.mxu0 %vm891_vm6, %v7473_v39  ;;  %v2928_v11 = vpop.permute.xlu1 %2927  ;;  %v3155_v3 = vunpack.c.l.b16 %v3073_v7 }
 0x367   : > { %v2864_v27 = vpop.permute.xlu0 %2863 }
 0x368   : > { %v2998_v29 = vsel %vm637_vm4, %v7230_v50, %v2864_v27  ;;  %v3000_v50 = vsel %vm637_vm4, %v7147_v56, %v2866_v2 }
 0x369   : > { %v7490_v40 = vsel %vm717_vm5, %v2998_v29, %v2928_v11  ;;  %v2932_v30 = vpop.permute.xlu1 %2931  ;;  %v3069_v51 = vsel %vm717_vm5, %v3000_v50, %v2930_v15 }
 0x36b   : > { %v2868_v4 = vpop.permute.xlu0 %2867  ;;  %5429 = vmatmul.mubr.msk.bf16.gmra.mrb[76].mxu1 %vm891_vm6, %v7490_v40  ;;  %5479 = vmatmul.mubr.msk.bf16.gmra.mrb[124].mxu0 %vm891_vm6, %v7490_v40 }
 0x36c   : > { %v3003_v28 = vsel %vm637_vm4, %v7236_v62, %v2868_v4 }
 0x36d   : > { %v3071_v18 = vsel %vm717_vm5, %v3003_v28, %v2932_v30  ;;  %v2938_v21 = vpop.permute.xlu1 %2937 }
 0x36e   : > { %v3154_v48 = vunpack.c.h.b16 %v3071_v18  ;;  %v7505_v58 = vcombine.low %v3069_v51, %v3071_v18 }
 0x36f   : > { %v2874_v33 = vpop.permute.xlu0 %2873 }
 0x370   : > { %v7507_v62 = vpack.c.b16 %v3155_v3, %v3154_v48  ;;  %5432 = vmatprep.mubr.msk.bf16.mxu1 %vm891_vm6, %v7505_v58  ;;  %5482 = vmatprep.mubr.msk.bf16.mxu0 %vm891_vm6, %v7505_v58  ;;  %v3010_v36 = vsel %vm637_vm4, %v7222_v23, %v2874_v33 }
 0x371   : > { %v2876_v45 = vpop.permute.xlu1 %2875  ;;  %v3077_v16 = vsel %vm717_vm5, %v3010_v36, %v2938_v21 }
 0x372   : > { %v3013_v49 = vsel %vm637_vm4, %v7266_v0, %v2876_v45 }
 0x373   : > { %v2872_v56 = vpop.permute.xlu0 %2871  ;;  %5433 = vmatmul.mubr.msk.bf16.gmra.mrb[80].mxu1 %vm891_vm6, %v7507_v62  ;;  %5483 = vmatmul.mubr.msk.bf16.gmra.mrb[128].mxu0 %vm891_vm6, %v7507_v62 }
 0x374   : > { %v3008_v61 = vsel %vm637_vm4, %v7257_v25, %v2872_v56 }
 0x375   : > { %v2936_v37 = vpop.permute.xlu1 %2935 }
 0x376   : > { %v3075_v9 = vsel %vm717_vm5, %v3008_v61, %v2936_v37 }
 0x377   : > { %v2940_v63 = vpop.permute.xlu0 %2939  ;;  %5436 = vmatprep.mubr.msk.bf16.mxu1 %vm891_vm6, %v3075_v9  ;;  %5486 = vmatprep.mubr.msk.bf16.mxu0 %vm891_vm6, %v3075_v9 }
 0x378   : > { %v3079_v2 = vsel %vm717_vm5, %v3013_v49, %v2940_v63 }
 0x379   : > { %v5013_v53 = vcombine.low %v3077_v16, %v3079_v2  ;;  %v2942_v26 = vpop.permute.xlu1 %2941  ;;  %v3160_v25 = vunpack.c.h.b16 %v3079_v2 }
 0x37b   : > { %v2878_v23 = vpop.permute.xlu0 %2877  ;;  %5437 = vmatmul.mubr.msk.bf16.gmra.mrb[84].mxu1 %vm891_vm6, %v5013_v53  ;;  %5487 = vmatmul.mubr.msk.bf16.gmra.mrb[132].mxu0 %vm891_vm6, %v5013_v53 }
 0x37c   : > { %v3015_v0 = vsel %vm637_vm4, %v7245_v32, %v2878_v23 }
 0x37d   : > { %v3081_v59 = vsel %vm717_vm5, %v3015_v0, %v2942_v26  ;;  %v2944_v47 = vpop.permute.xlu1 %2943 }
 0x37e   : > { %v3161_v22 = vunpack.c.l.b16 %v3081_v59 }
 0x37f   : > { %v2880_v60 = vpop.permute.xlu0 %2879 }
 0x380   : > { %v3018_v10 = vsel %vm637_vm4, %v7284_v6, %v2880_v60  ;;  %v3190_v19 = vpack.c.b16 %v3161_v22, %v3160_v25 }
 0x381   : > { %v3083_v52 = vsel %vm717_vm5, %v3018_v10, %v2944_v47  ;;  %v2886_v8 = vpop.permute.xlu1 %2885 }
 0x382   : > { %5440 = vmatprep.mubr.msk.bf16.mxu1 %vm891_vm6, %v3190_v19  ;;  %5490 = vmatprep.mubr.msk.bf16.mxu0 %vm891_vm6, %v3190_v19  ;;  %v3025_v6 = vsel %vm637_vm4, %v7303_v31, %v2886_v8 }
 0x383   : > { %v2884_v32 = vpop.permute.xlu0 %2883  ;;  %5441 = vmatmul.mubr.msk.bf16.gmra.mrb[88].mxu1 %vm891_vm6, %v3083_v52  ;;  %5491 = vmatmul.mubr.msk.bf16.gmra.mrb[136].mxu0 %vm891_vm6, %v3083_v52  ;;  %v3087_v15 = vsel %vm717_vm5, %v3025_v6, %v2942_v26 }
 0x384   : > { %v3023_v54 = vsel %vm637_vm4, %v7291_v17, %v2884_v32  ;;  %v3167_v29 = vunpack.c.l.b16 %v3087_v15 }
 0x385   : > { %v3086_v38 = vsel %vm717_vm5, %v3023_v54, %v2940_v63  ;;  %v2946_v4 = vpop.permute.xlu1 %2945 }
 0x386   : > { %v3166_v11 = vunpack.c.h.b16 %v3086_v38 }
 0x387   : > { %v2882_v27 = vpop.permute.xlu0 %2881 }
 0x388   : > { %v3020_v20 = vsel %vm637_vm4, %v7275_v5, %v2882_v27  ;;  %v3193_v28 = vpack.c.b16 %v3167_v29, %v3166_v11 }
 0x389   : > { %v3085_v17 = vsel %vm717_vm5, %v3020_v20, %v2946_v4 }
 0x38a   : > { %v5014_v7 = vcombine.low %v3085_v17, %v3086_v38 }
 0x38c   : > { %5444 = vmatprep.mubr.msk.bf16.mxu1 %vm891_vm6, %v5014_v7  ;;  %5494 = vmatprep.mubr.msk.bf16.mxu0 %vm891_vm6, %v5014_v7 }
 0x38d   : > { %5445 = vmatmul.mubr.msk.bf16.gmra.mrb[92].mxu1 %vm891_vm6, %v3193_v28  ;;  %5495 = vmatmul.mubr.msk.bf16.gmra.mrb[140].mxu0 %vm891_vm6, %v3193_v28 }
 0x38e   : > { %5500 = vmatprep.mubr.msk.bf16.mxu1 %vm891_vm6, %v7340_v34 }
 0x395   : > { %5501 = vmatmul.mubr.msk.bf16.vlgmr.msra.gmra.mrb[96].mxu1 %vm891_vm6, %v7337_v57 }
 0x396   : > { %5504 = vmatprep.mubr.msk.bf16.mxu1 %vm891_vm6, %v7342_v46 }
 0x39d   : > { %5505 = vmatmul.mubr.msk.bf16.gmra.mrb[100].mxu1 %vm891_vm6, %v7365_v44 }
 0x39e   : > { %5508 = vmatprep.mubr.msk.bf16.mxu1 %vm891_vm6, %v7380_v12 }
 0x3a5   : > { %5509 = vmatmul.mubr.msk.bf16.gmra.mrb[104].mxu1 %vm891_vm6, %v7382_v41 }
 0x3a6   : > { %5512 = vmatprep.mubr.msk.bf16.mxu1 %vm891_vm6, %v7407_v43 }
 0x3ad   : > { %5513 = vmatmul.mubr.msk.bf16.gmra.mrb[108].mxu1 %vm891_vm6, %v7404_v13 }
 0x3ae   : > { %5516 = vmatprep.mubr.msk.bf16.mxu1 %vm891_vm6, %v7409_v42 }
 0x3b5   : > { %5517 = vmatmul.mubr.msk.bf16.gmra.mrb[112].mxu1 %vm891_vm6, %v7426_v1 }
 0x3b6   : > { %5520 = vmatprep.mubr.msk.bf16.mxu1 %vm891_vm6, %v7445_v55 }
 0x3bd   : > { %5521 = vmatmul.mubr.msk.bf16.gmra.mrb[116].mxu1 %vm891_vm6, %v7447_v35 }
 0x3be   : > { %5524 = vmatprep.mubr.msk.bf16.mxu1 %vm891_vm6, %v7471_v24 }
 0x3c5   : > { %5525 = vmatmul.mubr.msk.bf16.gmra.mrb[120].mxu1 %vm891_vm6, %v7468_v14 }
 0x3c6   : > { %5528 = vmatprep.mubr.msk.bf16.mxu1 %vm891_vm6, %v7473_v39 }
 0x3cd   : > { %5529 = vmatmul.mubr.msk.bf16.gmra.mrb[124].mxu1 %vm891_vm6, %v7490_v40 }
 0x3ce   : > { %5532 = vmatprep.mubr.msk.bf16.mxu1 %vm891_vm6, %v7505_v58 }
 0x3d5   : > { %5533 = vmatmul.mubr.msk.bf16.gmra.mrb[128].mxu1 %vm891_vm6, %v7507_v62 }
 0x3d6   : > { %5536 = vmatprep.mubr.msk.bf16.mxu1 %vm891_vm6, %v3075_v9 }
 0x3dd   : > { %5537 = vmatmul.mubr.msk.bf16.gmra.mrb[132].mxu1 %vm891_vm6, %v5013_v53 }
 0x3de   : > { %5540 = vmatprep.mubr.msk.bf16.mxu1 %vm891_vm6, %v3190_v19 }
 0x3e5   : > { %5541 = vmatmul.mubr.msk.bf16.gmra.mrb[136].mxu1 %vm891_vm6, %v3083_v52 }
 0x3e6   : > { %5544 = vmatprep.mubr.msk.bf16.mxu1 %vm891_vm6, %v5014_v7 }
 0x3ed   : > { %5545 = vmatmul.mubr.msk.bf16.gmra.mrb[140].mxu1 %vm891_vm6, %v3193_v28 }
 0x406   : > { %v5402_v5 = vpop.f32.mrb[48].mxu1  ;;  %v5452_v31 = vpop.f32.mrb[96].mxu0 }
 0x407   : > { %v3308_v57 = vpop.f32.mrb[49].mxu1  ;;  %v3528_v34 = vpop.f32.mrb[97].mxu0  ;;  %v3770_v13 = vrot.slane %v5452_v31, 1 }
 0x408   : > { %v5403_v46 = vpop.f32.mrb[50].mxu1  ;;  %v5453_v44 = vpop.f32.mrb[98].mxu0  ;;  %v3767_v43 = vrot.slane %v3528_v34, 1 }
 0x409   : > { %v3311_v12 = vpop.f32.mrb[51].mxu1  ;;  %v3531_v41 = vpop.f32.mrb[99].mxu0  ;;  %v3772_v30 = vrot.slane %v5453_v44, 1 }
 0x40a   : > { %v3768_v42 = vrot.slane %v3531_v41, 1 }
 0x40c   : > { %v3769_v1 = vsel %vm1461_vm7, %v3767_v43, %v3768_v42  ;;  %v3771_v55 = vsel %vm1461_vm7, %v3768_v42, %v3770_v13 }
 0x40d   : > { %v7597_v35 = vadd.f32 %v3769_v1, %v3308_v57  ;;  %v7599_v14 = vadd.f32 %v3771_v55, %v3311_v12 }
 0x40e   : > { %v5406_v24 = vpop.f32.mrb[52].mxu1  ;;  %v5456_v39 = vpop.f32.mrb[100].mxu0 }
 0x40f   : > { %v3323_v40 = vpop.f32.mrb[53].mxu1  ;;  %v3544_v50 = vpop.f32.mrb[101].mxu0  ;;  %v3777_v48 = vrot.slane %v5456_v39, 1 }
 0x410   : > { %v3773_v51 = vrot.slane %v3544_v50, 1  ;;  %v5407_v18 = vpop.f32.mrb[54].mxu1  ;;  %v5457_v3 = vpop.f32.mrb[102].mxu0 }
 0x411   : > { %v3778_v58 = vrot.slane %v5457_v3, 1  ;;  %v3326_v33 = vpop.f32.mrb[55].mxu1  ;;  %v3547_v62 = vpop.f32.mrb[103].mxu0 }
 0x412   : > { %v3774_v21 = vsel %vm1461_vm7, %v3772_v30, %v3773_v51  ;;  %v3775_v56 = vrot.slane %v3547_v62, 1 }
 0x413   : > { %v7602_v36 = vadd.f32 %v5403_v46, %v3774_v21  ;;  %v3779_v45 = vsel %vm1461_vm7, %v3777_v48, %v3778_v58 }
 0x414   : > { %v7605_v49 = vadd.f32 %v5406_v24, %v3779_v45  ;;  %v3776_v63 = vsel %vm1461_vm7, %v3773_v51, %v3775_v56 }
 0x415   : > { %v7608_v16 = vadd.f32 %v3776_v63, %v3323_v40 }
 0x416   : > { %v5410_v2 = vpop.f32.mrb[56].mxu1  ;;  %v5460_v61 = vpop.f32.mrb[104].mxu0 }
 0x417   : > { %v3338_v37 = vpop.f32.mrb[57].mxu1  ;;  %v3560_v53 = vpop.f32.mrb[105].mxu0  ;;  %v3783_v26 = vrot.slane %v5460_v61, 1 }
 0x418   : > { %v3780_v9 = vrot.slane %v3560_v53, 1  ;;  %v5411_v23 = vpop.f32.mrb[58].mxu1  ;;  %v5461_v0 = vpop.f32.mrb[106].mxu0 }
 0x419   : > { %v3785_v59 = vrot.slane %v5461_v0, 1  ;;  %v3340_v25 = vpop.f32.mrb[59].mxu1  ;;  %v3563_v22 = vpop.f32.mrb[107].mxu0 }
 0x41a   : > { %v3781_v60 = vsel %vm1461_vm7, %v3778_v58, %v3780_v9  ;;  %v3782_v10 = vrot.slane %v3563_v22, 1 }
 0x41b   : > { %v7611_v19 = vadd.f32 %v5407_v18, %v3781_v60  ;;  %v3786_v47 = vsel %vm1461_vm7, %v3783_v26, %v3785_v59 }
 0x41c   : > { %v7614_v52 = vadd.f32 %v5410_v2, %v3786_v47  ;;  %v3784_v32 = vsel %vm1461_vm7, %v3782_v10, %v3783_v26 }
 0x41d   : > { %v7617_v54 = vadd.f32 %v3784_v32, %v3340_v25 }
 0x41e   : > { %v5414_v8 = vpop.f32.mrb[60].mxu1  ;;  %v5464_v38 = vpop.f32.mrb[108].mxu0 }
 0x41f   : > { %v3352_v6 = vpop.f32.mrb[61].mxu1  ;;  %v3576_v15 = vpop.f32.mrb[109].mxu0  ;;  %v3790_v4 = vrot.slane %v5464_v38, 1 }
 0x420   : > { %v5415_v27 = vpop.f32.mrb[62].mxu1  ;;  %v5465_v29 = vpop.f32.mrb[110].mxu0  ;;  %v3787_v17 = vrot.slane %v3576_v15, 1 }
 0x421   : > { %v3355_v11 = vpop.f32.mrb[63].mxu1  ;;  %v3579_v20 = vpop.f32.mrb[111].mxu0  ;;  %v3792_v41 = vrot.slane %v5465_v29, 1 }
 0x422   : > { %v3788_v7 = vrot.slane %v3579_v20, 1 }
 0x424   : > { %v3789_v28 = vsel %vm1461_vm7, %v3787_v17, %v3788_v7  ;;  %v3791_v5 = vsel %vm1461_vm7, %v3788_v7, %v3790_v4 }
 0x425   : > { %v7621_v31 = vadd.f32 %v3789_v28, %v3352_v6  ;;  %v7623_v57 = vadd.f32 %v3791_v5, %v3355_v11 }
 0x426   : > { %v5418_v34 = vpop.f32.mrb[64].mxu1  ;;  %v5468_v46 = vpop.f32.mrb[112].mxu0 }
 0x427   : > { %v3367_v44 = vpop.f32.mrb[65].mxu1  ;;  %v3592_v12 = vpop.f32.mrb[113].mxu0  ;;  %v3797_v1 = vrot.slane %v5468_v46, 1 }
 0x428   : > { %v3793_v13 = vrot.slane %v3592_v12, 1  ;;  %v5419_v43 = vpop.f32.mrb[66].mxu1  ;;  %v5469_v42 = vpop.f32.mrb[114].mxu0 }
 0x429   : > { %v3798_v55 = vrot.slane %v5469_v42, 1  ;;  %v3370_v24 = vpop.f32.mrb[67].mxu1  ;;  %v3595_v39 = vpop.f32.mrb[115].mxu0 }
 0x42a   : > { %v3794_v40 = vsel %vm1461_vm7, %v3792_v41, %v3793_v13  ;;  %v3795_v50 = vrot.slane %v3595_v39, 1 }
 0x42b   : > { %v7626_v30 = vadd.f32 %v5415_v27, %v3794_v40  ;;  %v3799_v51 = vsel %vm1461_vm7, %v3797_v1, %v3798_v55 }
 0x42c   : > { %v7629_v18 = vadd.f32 %v5418_v34, %v3799_v51  ;;  %v3796_v3 = vsel %vm1461_vm7, %v3793_v13, %v3795_v50 }
 0x42d   : > { %v7632_v48 = vadd.f32 %v3796_v3, %v3367_v44 }
 0x42e   : > { %v5422_v58 = vpop.f32.mrb[68].mxu1  ;;  %v5472_v33 = vpop.f32.mrb[116].mxu0 }
 0x42f   : > { %v3382_v62 = vpop.f32.mrb[69].mxu1  ;;  %v3608_v21 = vpop.f32.mrb[117].mxu0  ;;  %v3803_v2 = vrot.slane %v5472_v33, 1 }
 0x430   : > { %v3800_v56 = vrot.slane %v3608_v21, 1  ;;  %v5423_v45 = vpop.f32.mrb[70].mxu1  ;;  %v5473_v63 = vpop.f32.mrb[118].mxu0 }
 0x431   : > { %v3805_v61 = vrot.slane %v5473_v63, 1  ;;  %v3384_v37 = vpop.f32.mrb[71].mxu1  ;;  %v3611_v53 = vpop.f32.mrb[119].mxu0 }
 0x432   : > { %v3801_v9 = vsel %vm1461_vm7, %v3798_v55, %v3800_v56  ;;  %v3802_v23 = vrot.slane %v3611_v53, 1 }
 0x433   : > { %v7635_v0 = vadd.f32 %v5419_v43, %v3801_v9  ;;  %v3806_v26 = vsel %vm1461_vm7, %v3803_v2, %v3805_v61 }
 0x434   : > { %v7638_v59 = vadd.f32 %v5422_v58, %v3806_v26  ;;  %v3804_v25 = vsel %vm1461_vm7, %v3802_v23, %v3803_v2 }
 0x435   : > { %v7641_v22 = vadd.f32 %v3804_v25, %v3384_v37 }
 0x436   : > { %v5426_v60 = vpop.f32.mrb[72].mxu1  ;;  %v5476_v10 = vpop.f32.mrb[120].mxu0 }
 0x437   : > { %v3396_v47 = vpop.f32.mrb[73].mxu1  ;;  %v3624_v32 = vpop.f32.mrb[121].mxu0  ;;  %v3810_v27 = vrot.slane %v5476_v10, 1 }
 0x438   : > { %v5427_v8 = vpop.f32.mrb[74].mxu1  ;;  %v5477_v38 = vpop.f32.mrb[122].mxu0  ;;  %v3807_v29 = vrot.slane %v3624_v32, 1 }
 0x439   : > { %v3399_v6 = vpop.f32.mrb[75].mxu1  ;;  %v3627_v15 = vpop.f32.mrb[123].mxu0  ;;  %v3812_v44 = vrot.slane %v5477_v38, 1 }
 0x43a   : > { %v3808_v11 = vrot.slane %v3627_v15, 1 }
 0x43c   : > { %v3809_v20 = vsel %vm1461_vm7, %v3807_v29, %v3808_v11  ;;  %v3811_v4 = vsel %vm1461_vm7, %v3808_v11, %v3810_v27 }
 0x43d   : > { %v7645_v17 = vadd.f32 %v3809_v20, %v3396_v47  ;;  %v7647_v7 = vadd.f32 %v3811_v4, %v3399_v6 }
 0x43e   : > { %v5430_v28 = vpop.f32.mrb[76].mxu1  ;;  %v5480_v5 = vpop.f32.mrb[124].mxu0 }
 0x43f   : > { %v3411_v34 = vpop.f32.mrb[77].mxu1  ;;  %v3640_v46 = vpop.f32.mrb[125].mxu0  ;;  %v3817_v43 = vrot.slane %v5480_v5, 1 }
 0x440   : > { %v3813_v12 = vrot.slane %v3640_v46, 1  ;;  %v5431_v41 = vpop.f32.mrb[78].mxu1  ;;  %v5481_v13 = vpop.f32.mrb[126].mxu0 }
 0x441   : > { %v3818_v42 = vrot.slane %v5481_v13, 1  ;;  %v3414_v1 = vpop.f32.mrb[79].mxu1  ;;  %v3643_v55 = vpop.f32.mrb[127].mxu0 }
 0x442   : > { %v3814_v24 = vsel %vm1461_vm7, %v3812_v44, %v3813_v12  ;;  %v3815_v39 = vrot.slane %v3643_v55, 1 }
 0x443   : > { %v7650_v40 = vadd.f32 %v5427_v8, %v3814_v24  ;;  %v3819_v50 = vsel %vm1461_vm7, %v3817_v43, %v3818_v42 }
 0x444   : > { %v7653_v51 = vadd.f32 %v5430_v28, %v3819_v50  ;;  %v3816_v3 = vsel %vm1461_vm7, %v3813_v12, %v3815_v39 }
 0x445   : > { %v7656_v58 = vadd.f32 %v3816_v3, %v3411_v34 }
 0x446   : > { %v5434_v33 = vpop.f32.mrb[80].mxu1  ;;  %v5484_v62 = vpop.f32.mrb[128].mxu0 }
 0x447   : > { %v3426_v21 = vpop.f32.mrb[81].mxu1  ;;  %v3656_v56 = vpop.f32.mrb[129].mxu0  ;;  %v3823_v61 = vrot.slane %v5484_v62, 1 }
 0x448   : > { %v3820_v45 = vrot.slane %v3656_v56, 1  ;;  %v5435_v63 = vpop.f32.mrb[82].mxu1  ;;  %v5485_v2 = vpop.f32.mrb[130].mxu0 }
 0x449   : > { %v3825_v37 = vrot.slane %v5485_v2, 1  ;;  %v3428_v53 = vpop.f32.mrb[83].mxu1  ;;  %v3659_v9 = vpop.f32.mrb[131].mxu0 }
 0x44a   : > { %v3821_v23 = vsel %vm1461_vm7, %v3818_v42, %v3820_v45  ;;  %v3822_v26 = vrot.slane %v3659_v9, 1 }
 0x44b   : > { %v7659_v25 = vadd.f32 %v5431_v41, %v3821_v23  ;;  %v3826_v60 = vsel %vm1461_vm7, %v3823_v61, %v3825_v37 }
 0x44c   : > { %v7662_v10 = vadd.f32 %v5434_v33, %v3826_v60  ;;  %v3824_v47 = vsel %vm1461_vm7, %v3822_v26, %v3823_v61 }
 0x44d   : > { %v7665_v32 = vadd.f32 %v3824_v47, %v3428_v53 }
 0x44e   : > { %v5438_v8 = vpop.f32.mrb[84].mxu1  ;;  %v5488_v38 = vpop.f32.mrb[132].mxu0 }
 0x44f   : > { %v3440_v6 = vpop.f32.mrb[85].mxu1  ;;  %v3672_v15 = vpop.f32.mrb[133].mxu0  ;;  %v3830_v4 = vrot.slane %v5488_v38, 1 }
 0x450   : > { %v5439_v27 = vpop.f32.mrb[86].mxu1  ;;  %v5489_v29 = vpop.f32.mrb[134].mxu0  ;;  %v3827_v28 = vrot.slane %v3672_v15, 1 }
 0x451   : > { %v3443_v11 = vpop.f32.mrb[87].mxu1  ;;  %v3675_v20 = vpop.f32.mrb[135].mxu0  ;;  %v3832_v1 = vrot.slane %v5489_v29, 1 }
 0x452   : > { %v3828_v5 = vrot.slane %v3675_v20, 1 }
 0x454   : > { %v3829_v34 = vsel %vm1461_vm7, %v3827_v28, %v3828_v5  ;;  %v3831_v46 = vsel %vm1461_vm7, %v3828_v5, %v3830_v4 }
 0x455   : > { %v7669_v44 = vadd.f32 %v3829_v34, %v3440_v6  ;;  %v7671_v12 = vadd.f32 %v3831_v46, %v3443_v11 }
 0x456   : > { %v5442_v41 = vpop.f32.mrb[88].mxu1  ;;  %v5492_v13 = vpop.f32.mrb[136].mxu0 }
 0x457   : > { %v3455_v43 = vpop.f32.mrb[89].mxu1  ;;  %v3688_v42 = vpop.f32.mrb[137].mxu0  ;;  %v3837_v50 = vrot.slane %v5492_v13, 1 }
 0x458   : > { %v3833_v55 = vrot.slane %v3688_v42, 1  ;;  %v5443_v24 = vpop.f32.mrb[90].mxu1  ;;  %v5493_v39 = vpop.f32.mrb[138].mxu0 }
 0x459   : > { %v3838_v3 = vrot.slane %v5493_v39, 1  ;;  %v3458_v33 = vpop.f32.mrb[91].mxu1  ;;  %v3691_v62 = vpop.f32.mrb[139].mxu0 }
 0x45a   : > { %v3834_v21 = vsel %vm1461_vm7, %v3832_v1, %v3833_v55  ;;  %v3835_v56 = vrot.slane %v3691_v62, 1 }
 0x45b   : > { %v7674_v45 = vadd.f32 %v5439_v27, %v3834_v21  ;;  %v3839_v63 = vsel %vm1461_vm7, %v3837_v50, %v3838_v3 }
 0x45c   : > { %v7677_v2 = vadd.f32 %v5442_v41, %v3839_v63  ;;  %v3836_v61 = vsel %vm1461_vm7, %v3833_v55, %v3835_v56 }
 0x45d   : > { %v7680_v37 = vadd.f32 %v3836_v61, %v3455_v43 }
 0x460   : > { %v5446_v53 = vpop.f32.mrb[92].mxu1  ;;  %v5496_v9 = vpop.f32.mrb[140].mxu0 }
 0x461   : > { %v3470_v23 = vpop.f32.mrb[93].mxu1  ;;  %v3704_v26 = vpop.f32.mrb[141].mxu0  ;;  %v3843_v38 = vrot.slane %v5496_v9, 1 }
 0x462   : > { %v3840_v60 = vrot.slane %v3704_v26, 1  ;;  %v5447_v47 = vpop.f32.mrb[94].mxu1  ;;  %v5497_v8 = vpop.f32.mrb[142].mxu0 }
 0x463   : > { %v3845_v6 = vrot.slane %v5497_v8, 1  ;;  %v3472_v15 = vpop.f32.mrb[95].mxu1  ;;  %v3707_v27 = vpop.f32.mrb[143].mxu0 }
 0x464   : > { %v3841_v29 = vsel %vm1461_vm7, %v3838_v3, %v3840_v60  ;;  %v3842_v11 = vrot.slane %v3707_v27, 1 }
 0x465   : > { %v7683_v20 = vadd.f32 %v5443_v24, %v3841_v29  ;;  %v3846_v4 = vsel %vm1461_vm7, %v3843_v38, %v3845_v6 }
 0x466   : > { %v7686_v28 = vadd.f32 %v5446_v53, %v3846_v4  ;;  %v3844_v5 = vsel %vm1461_vm7, %v3842_v11, %v3843_v38 }
 0x467   : > { %v7689_v34 = vadd.f32 %v3844_v5, %v3472_v15 }
 0x468   : > { %v5502_v46 = vpop.f32.mrb[96].mxu1 }
 0x469   : > { %v3956_v41 = vpop.f32.mrb[97].mxu1  ;;  %v4198_v42 = vrot.slane %v5502_v46, 2 }
 0x46a   : > { %v5503_v13 = vpop.f32.mrb[98].mxu1  ;;  %v4195_v1 = vrot.slane %v3956_v41, 2 }
 0x46b   : > { %v3959_v43 = vpop.f32.mrb[99].mxu1  ;;  %v4200_v53 = vrot.slane %v5503_v13, 2 }
 0x46c   : > { %v4196_v55 = vrot.slane %v3959_v43, 2 }
 0x46e   : > { %v4197_v39 = vsel %vm964_vm3, %v4195_v1, %v4196_v55  ;;  %v4199_v24 = vsel %vm964_vm3, %v4196_v55, %v4198_v42 }
 0x46f   : > { %v7694_v50 = vadd.f32 %v4197_v39, %v7597_v35  ;;  %v7697_v3 = vadd.f32 %v4199_v24, %v7599_v14 }
 0x470   : > { %v5506_v33 = vpop.f32.mrb[100].mxu1 }
 0x471   : > { %8341 = vst [vmem:[#allocation3_spill] sm:$0xff] %v7694_v50  ;;  %8342 = vst [vmem:[#allocation4_spill] sm:$0xff] %v7697_v3  ;;  %v4339_v62 = vsel %vm637_vm4, %v7694_v50, 0.0  ;;  %v4340_v21 = vsel %vm637_vm4, %v7697_v3, 0.0  ;;  %v4514_v56 = vmul.f32 %v7694_v50, %v7694_v50  ;;  %v4515_v63 = vmul.f32 %v7697_v3, %v7697_v3  ;;  %v3972_v61 = vpop.f32.mrb[101].mxu1 }
 0x472   : > { %v4341_v35 = vadd.f32 %v4340_v21, %v4339_v62  ;;  %v4201_v9 = vrot.slane %v3972_v61, 2  ;;  %v5507_v23 = vpop.f32.mrb[102].mxu1  ;;  %v4205_v60 = vrot.slane %v5506_v33, 2 }
 0x473   : > { %v4546_v14 = vsel %vm637_vm4, %v4514_v56, 0.0  ;;  %v4547_v26 = vsel %vm637_vm4, %v4515_v63, 0.0  ;;  %v4206_v47 = vrot.slane %v5507_v23, 2  ;;  %v3975_v8 = vpop.f32.mrb[103].mxu1 }
 0x474   : > { %v4342_v38 = vrot.slane %v4341_v35, 4  ;;  %v4548_v6 = vadd.f32 %v4547_v26, %v4546_v14  ;;  %v4202_v15 = vsel %vm964_vm3, %v4200_v53, %v4201_v9  ;;  %v4203_v27 = vrot.slane %v3975_v8, 2 }
 0x475   : > { %v7711_v29 = vadd.f32 %v4202_v15, %v7602_v36  ;;  %v4207_v11 = vsel %vm964_vm3, %v4205_v60, %v4206_v47 }
 0x476   : > { %v4343_v4 = vadd.f32 %v4342_v38, %v4341_v35  ;;  %v4549_v5 = vrot.slane %v4548_v6, 4  ;;  %v7715_v46 = vadd.f32 %v4207_v11, %v7605_v49  ;;  %v4204_v41 = vsel %vm964_vm3, %v4201_v9, %v4203_v27 }
 0x477   : > { %8343 = vst [vmem:[#allocation5_spill] sm:$0xff] %v7711_v29  ;;  %v4516_v13 = vmul.f32 %v7711_v29, %v7711_v29  ;;  %v7721_v43 = vadd.f32 %v4204_v41, %v7608_v16  ;;  %v4348_v36 = vsel %vm637_vm4, %v7711_v29, 0.0 }
 0x478   : > { %v4344_v42 = vrot.slane %v4343_v4, 2  ;;  %v4550_v1 = vadd.f32 %v4549_v5, %v4548_v6  ;;  %v5510_v55 = vpop.f32.mrb[104].mxu1  ;;  %v4518_v39 = vmul.f32 %v7715_v46, %v7715_v46  ;;  %v4357_v41 = vsel %vm637_vm4, %v7715_v46, 0.0 }
 0x479   : > { %8344 = vst [vmem:[#allocation6_spill] sm:$0xff] %v7721_v43  ;;  %v4349_v49 = vsel %vm637_vm4, %v7721_v43, 0.0  ;;  %v4517_v24 = vmul.f32 %v7721_v43, %v7721_v43  ;;  %v3988_v33 = vpop.f32.mrb[105].mxu1  ;;  %v4555_v16 = vsel %vm637_vm4, %v4516_v13, 0.0  ;;  %v4211_v53 = vrot.slane %v5510_v55, 2 }
 0x47a   : > { %v4345_v62 = vadd.f32 %v4344_v42, %v4343_v4  ;;  %v4551_v21 = vrot.slane %v4550_v1, 2  ;;  %v4350_v56 = vadd.f32 %v4349_v49, %v4348_v36  ;;  %v5511_v63 = vpop.f32.mrb[106].mxu1  ;;  %v4208_v35 = vrot.slane %v3988_v33, 2 }
 0x47b   : > { %v4556_v61 = vsel %vm637_vm4, %v4517_v24, 0.0  ;;  %v4213_v9 = vrot.slane %v5511_v63, 2  ;;  %v3991_v23 = vpop.f32.mrb[107].mxu1 }
 0x47c   : > { %v4346_v14 = vrot.slane %v4345_v62, 1  ;;  %v4552_v26 = vadd.f32 %v4551_v21, %v4550_v1  ;;  %v4351_v60 = vrot.slane %v4350_v56, 4  ;;  %v4557_v8 = vadd.f32 %v4556_v61, %v4555_v16 }
 0x47d   : > { %v4209_v38 = vsel %vm964_vm3, %v4206_v47, %v4208_v35  ;;  %v4214_v6 = vsel %vm964_vm3, %v4211_v53, %v4213_v9  ;;  %v4210_v15 = vrot.slane %v3991_v23, 2  ;;  %v4564_v47 = vsel %vm637_vm4, %v4518_v39, 0.0 }
 0x47e   : > { %v4347_v27 = vadd.f32 %v4346_v14, %v4345_v62  ;;  %v4553_v11 = vrot.slane %v4552_v26, 1  ;;  %v4352_v4 = vadd.f32 %v4351_v60, %v4350_v56  ;;  %v4558_v5 = vrot.slane %v4557_v8, 4 }
 0x47f   : > { %v7738_v13 = vadd.f32 %v4209_v38, %v7611_v19  ;;  %v7741_v42 = vadd.f32 %v4214_v6, %v7614_v52  ;;  %v4212_v1 = vsel %vm964_vm3, %v4210_v15, %v4211_v53 }
 0x480   : > { %v4554_v55 = vadd.f32 %v4553_v11, %v4552_v26  ;;  %v4353_v36 = vrot.slane %v4352_v4, 2  ;;  %v4559_v49 = vadd.f32 %v4558_v5, %v4557_v8  ;;  %v5514_v24 = vpop.f32.mrb[108].mxu1  ;;  %v4483_v33 = vsel %vm637_vm4, %v4347_v27, 0.0 }
 0x481   : > { %v4358_v62 = vsel %vm637_vm4, %v7738_v13, 0.0  ;;  %v4519_v19 = vmul.f32 %v7738_v13, %v7738_v13  ;;  %v4521_v52 = vmul.f32 %v7741_v42, %v7741_v42  ;;  %v4004_v21 = vpop.f32.mrb[109].mxu1  ;;  %v4367_v39 = vsel %vm637_vm4, %v7741_v42, 0.0 }
 0x482   : > { %v4354_v16 = vadd.f32 %v4353_v36, %v4352_v4  ;;  %v4560_v56 = vrot.slane %v4559_v49, 2  ;;  %v4359_v63 = vadd.f32 %v4358_v62, %v4357_v41  ;;  %v7754_v61 = vpop.f32.mrb[110].mxu1  ;;  %v4690_v53 = vsel %vm637_vm4, %v4554_v55, 0.0 }
 0x483   : > { %v4565_v35 = vsel %vm637_vm4, %v4519_v19, 0.0  ;;  %v4574_v9 = vsel %vm637_vm4, %v4521_v52, 0.0  ;;  %v7760_v23 = vadd.f32 %v4212_v1, %v7617_v54  ;;  %v4007_v14 = vpop.f32.mrb[111].mxu1  ;;  %v4218_v27 = vrot.slane %v5514_v24, 2 }
 0x484   : > { %v4355_v26 = vrot.slane %v4354_v16, 1  ;;  %v4561_v60 = vadd.f32 %v4560_v56, %v4559_v49  ;;  %v4360_v8 = vrot.slane %v4359_v63, 4  ;;  %v4566_v38 = vadd.f32 %v4565_v35, %v4564_v47 }
 0x485   : > { %v4366_v6 = vsel %vm637_vm4, %v7760_v23, 0.0  ;;  %v4520_v15 = vmul.f32 %v7760_v23, %v7760_v23  ;;  %v4215_v11 = vrot.slane %v4004_v21, 2  ;;  %v4220_v1 = vrot.slane %v7754_v61, 2 }
 0x486   : > { %v4356_v4 = vadd.f32 %v4355_v26, %v4354_v16  ;;  %v4562_v5 = vrot.slane %v4561_v60, 1  ;;  %v4361_v41 = vadd.f32 %v4360_v8, %v4359_v63  ;;  %v4567_v55 = vrot.slane %v4566_v38, 4 }
 0x487   : > { %v4368_v36 = vadd.f32 %v4367_v39, %v4366_v6  ;;  %v4573_v54 = vsel %vm637_vm4, %v4520_v15, 0.0  ;;  %v4216_v49 = vrot.slane %v4007_v14, 2 }
 0x488   : > { %v4484_v47 = vsel %vm637_vm4, %v4356_v4, 0.0  ;;  %v4563_v62 = vadd.f32 %v4562_v5, %v4561_v60  ;;  %v4362_v19 = vrot.slane %v4361_v41, 2  ;;  %v4568_v52 = vadd.f32 %v4567_v55, %v4566_v38  ;;  %v5518_v56 = vpop.f32.mrb[112].mxu1 }
 0x489   : > { %v4485_v35 = vadd.f32 %v4484_v47, %v4483_v33  ;;  %v4369_v43 = vrot.slane %v4368_v36, 4  ;;  %v4575_v24 = vadd.f32 %v4574_v9, %v4573_v54  ;;  %v4217_v21 = vsel %vm964_vm3, %v4215_v11, %v4216_v49  ;;  %v7770_v16 = vpop.f32.mrb[113].mxu1 }
 0x48a   : > { %v4691_v63 = vsel %vm637_vm4, %v4563_v62, 0.0  ;;  %v4363_v39 = vadd.f32 %v4362_v19, %v4361_v41  ;;  %v4569_v26 = vrot.slane %v4568_v52, 2  ;;  %v4219_v61 = vsel %vm964_vm3, %v4216_v49, %v4218_v27  ;;  %v7774_v14 = vpop.f32.mrb[114].mxu1 }
 0x48b   : > { %v4692_v8 = vadd.f32 %v4691_v63, %v4690_v53  ;;  %v4370_v60 = vadd.f32 %v4369_v43, %v4368_v36  ;;  %v4576_v6 = vrot.slane %v4575_v24, 4  ;;  %v7777_v38 = vadd.f32 %v4217_v21, %v7621_v31  ;;  %v4023_v33 = vpop.f32.mrb[115].mxu1 }
 0x48c   : > { %v4364_v9 = vrot.slane %v4363_v39, 1  ;;  %v4570_v15 = vadd.f32 %v4569_v26, %v4568_v52  ;;  %v7780_v11 = vadd.f32 %v4219_v61, %v7623_v57  ;;  %v4225_v4 = vrot.slane %v5518_v56, 2 }
 0x48d   : > { %v4371_v5 = vrot.slane %v4370_v60, 2  ;;  %v4577_v41 = vadd.f32 %v4576_v6, %v4575_v24  ;;  %v4375_v27 = vsel %vm637_vm4, %v7777_v38, 0.0  ;;  %v4522_v53 = vmul.f32 %v7777_v38, %v7777_v38 }
 0x48e   : > { %v4365_v43 = vadd.f32 %v4364_v9, %v4363_v39  ;;  %v4571_v55 = vrot.slane %v4570_v15, 1  ;;  %v4376_v31 = vsel %vm637_vm4, %v7780_v11, 0.0  ;;  %v4523_v36 = vmul.f32 %v7780_v11, %v7780_v11 }
 0x48f   : > { %v4372_v54 = vadd.f32 %v4371_v5, %v4370_v60  ;;  %v4578_v57 = vrot.slane %v4577_v41, 2  ;;  %v4377_v49 = vadd.f32 %v4376_v31, %v4375_v27  ;;  %v4582_v47 = vsel %vm637_vm4, %v4522_v53, 0.0 }
 0x490   : > { %v4486_v62 = vsel %vm637_vm4, %v4365_v43, 0.0  ;;  %v4572_v19 = vadd.f32 %v4571_v55, %v4570_v15  ;;  %v4583_v52 = vsel %vm637_vm4, %v4523_v36, 0.0  ;;  %v4221_v56 = vrot.slane %v7770_v16, 2  ;;  %v7794_v24 = vpop.f32.mrb[116].mxu1 }
 0x491   : > { %v4487_v21 = vadd.f32 %v4486_v62, %v4485_v35  ;;  %v4373_v63 = vrot.slane %v4372_v54, 1  ;;  %v4579_v39 = vadd.f32 %v4578_v57, %v4577_v41  ;;  %v4378_v26 = vrot.slane %v4377_v49, 4  ;;  %v4036_v61 = vpop.f32.mrb[117].mxu1 }
 0x492   : > { %v4693_v60 = vsel %vm637_vm4, %v4572_v19, 0.0  ;;  %v4584_v6 = vadd.f32 %v4583_v52, %v4582_v47  ;;  %v4222_v9 = vsel %vm964_vm3, %v4220_v1, %v4221_v56  ;;  %v4226_v5 = vrot.slane %v7774_v14, 2  ;;  %v5523_v27 = vpop.f32.mrb[118].mxu1 }
 0x493   : > { %v4694_v15 = vadd.f32 %v4693_v60, %v4692_v8  ;;  %v4374_v53 = vadd.f32 %v4373_v63, %v4372_v54  ;;  %v4580_v43 = vrot.slane %v4579_v39, 1  ;;  %v4379_v55 = vadd.f32 %v4378_v26, %v4377_v49  ;;  %v7799_v16 = vpop.f32.mrb[119].mxu1 }
 0x494   : > { %v4585_v31 = vrot.slane %v4584_v6, 4  ;;  %v7802_v35 = vadd.f32 %v4222_v9, %v7626_v30  ;;  %v4227_v41 = vsel %vm964_vm3, %v4225_v4, %v4226_v5  ;;  %v4223_v36 = vrot.slane %v4023_v33, 2 }
 0x495   : > { %v4488_v57 = vsel %vm637_vm4, %v4374_v53, 0.0  ;;  %v4581_v47 = vadd.f32 %v4580_v43, %v4579_v39  ;;  %v4380_v1 = vrot.slane %v4379_v55, 2  ;;  %v7807_v14 = vadd.f32 %v4227_v41, %v7629_v18 }
 0x496   : > { %v4489_v8 = vadd.f32 %v4488_v57, %v4487_v21  ;;  %v4586_v54 = vadd.f32 %v4585_v31, %v4584_v6  ;;  %v4384_v49 = vsel %vm637_vm4, %v7802_v35, 0.0  ;;  %v4524_v62 = vmul.f32 %v7802_v35, %v7802_v35 }
 0x497   : > { %v4695_v30 = vsel %vm637_vm4, %v4581_v47, 0.0  ;;  %v4381_v19 = vadd.f32 %v4380_v1, %v4379_v55  ;;  %v4393_v33 = vsel %vm637_vm4, %v7807_v14, 0.0  ;;  %v4526_v4 = vmul.f32 %v7807_v14, %v7807_v14 }
 0x498   : > { %v4696_v52 = vadd.f32 %v4695_v30, %v4694_v15  ;;  %v4587_v18 = vrot.slane %v4586_v54, 2  ;;  %v4591_v21 = vsel %vm637_vm4, %v4524_v62, 0.0  ;;  %v4224_v63 = vsel %vm964_vm3, %v4221_v56, %v4223_v36  ;;  %v5526_v39 = vpop.f32.mrb[120].mxu1 }
 0x499   : > { %v4382_v26 = vrot.slane %v4381_v19, 1  ;;  %v4600_v60 = vsel %vm637_vm4, %v4526_v4, 0.0  ;;  %v7822_v6 = vadd.f32 %v4224_v63, %v7632_v48  ;;  %v4231_v9 = vrot.slane %v7794_v24, 2  ;;  %v4052_v53 = vpop.f32.mrb[121].mxu1 }
 0x49a   : > { %v4588_v43 = vadd.f32 %v4587_v18, %v4586_v54  ;;  %v4228_v55 = vrot.slane %v4036_v61, 2  ;;  %v4233_v31 = vrot.slane %v5523_v27, 2  ;;  %v4230_v15 = vrot.slane %v7799_v16, 2  ;;  %v7826_v41 = vpop.f32.mrb[122].mxu1 }
 0x49b   : > { %v4383_v57 = vadd.f32 %v4382_v26, %v4381_v19  ;;  %v4385_v56 = vsel %vm637_vm4, %v7822_v6, 0.0  ;;  %v4525_v36 = vmul.f32 %v7822_v6, %v7822_v6  ;;  %v4238_v47 = vrot.slane %v5526_v39, 2  ;;  %v4055_v48 = vpop.f32.mrb[123].mxu1 }
 0x49c   : > { %v4589_v1 = vrot.slane %v4588_v43, 1  ;;  %v4386_v62 = vadd.f32 %v4385_v56, %v4384_v49  ;;  %v4229_v24 = vsel %vm964_vm3, %v4226_v5, %v4228_v55  ;;  %v4234_v61 = vsel %vm964_vm3, %v4231_v9, %v4233_v31 }
 0x49d   : > { %v4490_v27 = vsel %vm637_vm4, %v4383_v57, 0.0  ;;  %v4592_v16 = vsel %vm637_vm4, %v4525_v36, 0.0  ;;  %v7837_v54 = vadd.f32 %v4229_v24, %v7635_v0  ;;  %v7840_v30 = vadd.f32 %v4234_v61, %v7638_v59 }
 0x49e   : > { %v4491_v19 = vadd.f32 %v4490_v27, %v4489_v8  ;;  %v4590_v4 = vadd.f32 %v4589_v1, %v4588_v43  ;;  %v4387_v18 = vrot.slane %v4386_v62, 4  ;;  %v4593_v63 = vadd.f32 %v4592_v16, %v4591_v21 }
 0x49f   : > { %v4394_v49 = vsel %vm637_vm4, %v7837_v54, 0.0  ;;  %v4527_v5 = vmul.f32 %v7837_v54, %v7837_v54  ;;  %v4403_v39 = vsel %vm637_vm4, %v7840_v30, 0.0  ;;  %v4529_v0 = vmul.f32 %v7840_v30, %v7840_v30 }
 0x4a0   : > { %v4697_v26 = vsel %vm637_vm4, %v4590_v4, 0.0  ;;  %v4388_v59 = vadd.f32 %v4387_v18, %v4386_v62  ;;  %v4594_v55 = vrot.slane %v4593_v63, 4  ;;  %v4395_v8 = vadd.f32 %v4394_v49, %v4393_v33  ;;  %v7851_v43 = vpop.f32.mrb[124].mxu1 }
 0x4a1   : > { %v4698_v21 = vadd.f32 %v4697_v26, %v4696_v52  ;;  %v4601_v31 = vsel %vm637_vm4, %v4527_v5, 0.0  ;;  %v4610_v57 = vsel %vm637_vm4, %v4529_v0, 0.0  ;;  %v4232_v56 = vsel %vm964_vm3, %v4230_v15, %v4231_v9  ;;  %v7856_v36 = vpop.f32.mrb[125].mxu1 }
 0x4a2   : > { %v4389_v1 = vrot.slane %v4388_v59, 2  ;;  %v4595_v24 = vadd.f32 %v4594_v55, %v4593_v63  ;;  %v4396_v61 = vrot.slane %v4395_v8, 4  ;;  %v4602_v27 = vadd.f32 %v4601_v31, %v4600_v60  ;;  %v7858_v16 = vpop.f32.mrb[126].mxu1 }
 0x4a3   : > { %v7861_v62 = vadd.f32 %v4232_v56, %v7641_v22  ;;  %v4235_v33 = vrot.slane %v4052_v53, 2  ;;  %v4236_v4 = vrot.slane %v4055_v48, 2  ;;  %v7864_v18 = vpop.f32.mrb[127].mxu1 }
 0x4a4   : > { %v4390_v49 = vadd.f32 %v4389_v1, %v4388_v59  ;;  %v4596_v5 = vrot.slane %v4595_v24, 2  ;;  %v4397_v9 = vadd.f32 %v4396_v61, %v4395_v8  ;;  %v4603_v15 = vrot.slane %v4602_v27, 4 }
 0x4a5   : > { %v4402_v63 = vsel %vm637_vm4, %v7861_v62, 0.0  ;;  %v4528_v60 = vmul.f32 %v7861_v62, %v7861_v62  ;;  %v4237_v0 = vsel %vm964_vm3, %v4235_v33, %v4236_v4  ;;  %v4239_v22 = vsel %vm964_vm3, %v4236_v4, %v4238_v47 }
 0x4a6   : > { %v4391_v53 = vrot.slane %v4390_v49, 1  ;;  %v4597_v26 = vadd.f32 %v4596_v5, %v4595_v24  ;;  %v4398_v55 = vrot.slane %v4397_v9, 2  ;;  %v4604_v48 = vadd.f32 %v4603_v15, %v4602_v27 }
 0x4a7   : > { %v4404_v31 = vadd.f32 %v4403_v39, %v4402_v63  ;;  %v4609_v59 = vsel %vm637_vm4, %v4528_v60, 0.0  ;;  %v7874_v8 = vadd.f32 %v4237_v0, %v7645_v17  ;;  %v7877_v56 = vadd.f32 %v4239_v22, %v7647_v7 }
 0x4a8   : > { %v4392_v1 = vadd.f32 %v4391_v53, %v4390_v49  ;;  %v4598_v61 = vrot.slane %v4597_v26, 1  ;;  %v4399_v52 = vadd.f32 %v4398_v55, %v4397_v9  ;;  %v4605_v29 = vrot.slane %v4604_v48, 2  ;;  %v7879_v33 = vpop.f32.mrb[128].mxu1 }
 0x4a9   : > { %v4405_v47 = vrot.slane %v4404_v31, 4  ;;  %v4611_v4 = vadd.f32 %v4610_v57, %v4609_v59  ;;  %v4411_v24 = vsel %vm637_vm4, %v7874_v8, 0.0  ;;  %v4412_v39 = vsel %vm637_vm4, %v7877_v56, 0.0  ;;  %v7885_v27 = vpop.f32.mrb[129].mxu1 }
 0x4aa   : > { %v4492_v17 = vsel %vm637_vm4, %v4392_v1, 0.0  ;;  %v4599_v7 = vadd.f32 %v4598_v61, %v4597_v26  ;;  %v4400_v5 = vrot.slane %v4399_v52, 1  ;;  %v4606_v49 = vadd.f32 %v4605_v29, %v4604_v48  ;;  %v7888_v15 = vpop.f32.mrb[130].mxu1 }
 0x4ab   : > { %v4493_v9 = vadd.f32 %v4492_v17, %v4491_v19  ;;  %v4406_v63 = vadd.f32 %v4405_v47, %v4404_v31  ;;  %v4612_v60 = vrot.slane %v4611_v4, 4  ;;  %v4413_v0 = vadd.f32 %v4412_v39, %v4411_v24  ;;  %v7890_v57 = vpop.f32.mrb[131].mxu1 }
 0x4ac   : > { %v4699_v22 = vsel %vm637_vm4, %v4599_v7, 0.0  ;;  %v4401_v53 = vadd.f32 %v4400_v5, %v4399_v52  ;;  %v4607_v55 = vrot.slane %v4606_v49, 1  ;;  %v4530_v59 = vmul.f32 %v7874_v8, %v7874_v8 }
 0x4ad   : > { %v4700_v3 = vadd.f32 %v4699_v22, %v4698_v21  ;;  %v4407_v1 = vrot.slane %v4406_v63, 2  ;;  %v4613_v26 = vadd.f32 %v4612_v60, %v4611_v4  ;;  %v4414_v61 = vrot.slane %v4413_v0, 4 }
 0x4ae   : > { %v4494_v29 = vsel %vm637_vm4, %v4401_v53, 0.0  ;;  %v4608_v48 = vadd.f32 %v4607_v55, %v4606_v49  ;;  %v4531_v19 = vmul.f32 %v7877_v56, %v7877_v56  ;;  %v4618_v31 = vsel %vm637_vm4, %v4530_v59, 0.0 }
 0x4af   : > { %v4495_v47 = vadd.f32 %v4494_v29, %v4493_v9  ;;  %v4408_v24 = vadd.f32 %v4407_v1, %v4406_v63  ;;  %v4614_v39 = vrot.slane %v4613_v26, 2  ;;  %v4415_v52 = vadd.f32 %v4414_v61, %v4413_v0 }
 0x4b0   : > { %v4701_v17 = vsel %vm637_vm4, %v4608_v48, 0.0  ;;  %v4619_v7 = vsel %vm637_vm4, %v4531_v19, 0.0  ;;  %v4245_v21 = vrot.slane %v7851_v43, 2  ;;  %v4241_v4 = vrot.slane %v7856_v36, 2  ;;  %v7903_v5 = vpop.f32.mrb[132].mxu1 }
 0x4b1   : > { %v4702_v49 = vadd.f32 %v4701_v17, %v4700_v3  ;;  %v4409_v60 = vrot.slane %v4408_v24, 1  ;;  %v4615_v22 = vadd.f32 %v4614_v39, %v4613_v26  ;;  %v4416_v53 = vrot.slane %v4415_v52, 2  ;;  %v7905_v55 = vpop.f32.mrb[133].mxu1 }
 0x4b2   : > { %v4620_v9 = vadd.f32 %v4619_v7, %v4618_v31  ;;  %v8345_v63 = vrot.slane %v7826_v41, 2  ;;  %v4246_v59 = vrot.slane %v7858_v16, 2  ;;  %v4243_v1 = vrot.slane %v7864_v18, 2  ;;  %v7912_v43 = vpop.f32.mrb[134].mxu1 }
 0x4b3   : > { %v4410_v36 = vadd.f32 %v4409_v60, %v4408_v24  ;;  %v4616_v61 = vrot.slane %v4615_v22, 1  ;;  %v4417_v29 = vadd.f32 %v4416_v53, %v4415_v52  ;;  %v7917_v26 = vpop.f32.mrb[135].mxu1  ;;  %v4251_v31 = vrot.slane %v7879_v33, 2 }
 0x4b4   : > { %v4242_v0 = vsel %vm964_vm3, %v8345_v63, %v4241_v4  ;;  %v4621_v48 = vrot.slane %v4620_v9, 4  ;;  %v4247_v19 = vsel %vm964_vm3, %v4245_v21, %v4246_v59  ;;  %v4244_v41 = vsel %vm964_vm3, %v4241_v4, %v4243_v1 }
 0x4b5   : > { %v7915_v3 = vadd.f32 %v4242_v0, %v7650_v40  ;;  %v4496_v16 = vsel %vm637_vm4, %v4410_v36, 0.0  ;;  %v4617_v18 = vadd.f32 %v4616_v61, %v4615_v22  ;;  %v4418_v39 = vrot.slane %v4417_v29, 1 }
 0x4b6   : > { %v4497_v52 = vadd.f32 %v4496_v16, %v4495_v47  ;;  %v4622_v17 = vadd.f32 %v4621_v48, %v4620_v9  ;;  %v7928_v7 = vadd.f32 %v4247_v19, %v7653_v51  ;;  %v7932_v33 = vadd.f32 %v4244_v41, %v7656_v58 }
 0x4b7   : > { %v4420_v24 = vsel %vm637_vm4, %v7915_v3, 0.0  ;;  %v4532_v40 = vmul.f32 %v7915_v3, %v7915_v3  ;;  %v4703_v21 = vsel %vm637_vm4, %v4617_v18, 0.0  ;;  %v4419_v4 = vadd.f32 %v4418_v39, %v4417_v29 }
 0x4b8   : > { %v4248_v60 = vrot.slane %v7885_v27, 2  ;;  %v4704_v22 = vadd.f32 %v4703_v21, %v4702_v49  ;;  %v4623_v53 = vrot.slane %v4622_v17, 2  ;;  %v4429_v47 = vsel %vm637_vm4, %v7928_v7, 0.0  ;;  %v7938_v9 = vpop.f32.mrb[136].mxu1 }
 0x4b9   : > { %v4627_v63 = vsel %vm637_vm4, %v4532_v40, 0.0  ;;  %v4498_v51 = vsel %vm637_vm4, %v4419_v4, 0.0  ;;  %v4534_v0 = vmul.f32 %v7928_v7, %v7928_v7  ;;  %v4421_v58 = vsel %vm637_vm4, %v7932_v33, 0.0  ;;  %v7947_v49 = vpop.f32.mrb[137].mxu1 }
 0x4ba   : > { %v4533_v27 = vmul.f32 %v7932_v33, %v7932_v33  ;;  %v7949_v1 = vadd.f32 %v4498_v51, %v4497_v52  ;;  %v4624_v36 = vadd.f32 %v4623_v53, %v4622_v17  ;;  %v4422_v61 = vadd.f32 %v4421_v58, %v4420_v24  ;;  %v7952_v48 = vpop.f32.mrb[138].mxu1 }
 0x4bb   : > { %v4249_v29 = vsel %vm964_vm3, %v4246_v59, %v4248_v60  ;;  %v4636_v19 = vsel %vm637_vm4, %v4534_v0, 0.0  ;;  %v4253_v18 = vrot.slane %v7888_v15, 2  ;;  %v7960_v39 = vpop.f32.mrb[139].mxu1  ;;  %v4250_v24 = vrot.slane %v7890_v57, 2 }
 0x4bc   : > { %v4628_v41 = vsel %vm637_vm4, %v4533_v27, 0.0  ;;  %v7957_v16 = vadd.f32 %v4249_v29, %v7659_v25  ;;  %v4625_v40 = vrot.slane %v4624_v36, 1  ;;  %v4423_v52 = vrot.slane %v4422_v61, 4 }
 0x4bd   : > { %v4629_v21 = vadd.f32 %v4628_v41, %v4627_v63  ;;  %v4254_v4 = vsel %vm964_vm3, %v4251_v31, %v4253_v18  ;;  %v4258_v25 = vrot.slane %v7903_v5, 2  ;;  %v4252_v57 = vsel %vm964_vm3, %v4250_v24, %v4251_v31 }
 0x4be   : > { %v4430_v59 = vsel %vm637_vm4, %v7957_v16, 0.0  ;;  %v4535_v17 = vmul.f32 %v7957_v16, %v7957_v16  ;;  %v4626_v60 = vadd.f32 %v4625_v40, %v4624_v36  ;;  %v4424_v53 = vadd.f32 %v4423_v52, %v4422_v61 }
 0x4bf   : > { %v4630_v15 = vrot.slane %v4629_v21, 4  ;;  %v4431_v51 = vadd.f32 %v4430_v59, %v4429_v47  ;;  %v7971_v63 = vadd.f32 %v4254_v4, %v7662_v10  ;;  %v4255_v58 = vrot.slane %v7905_v55, 2 }
 0x4c0   : > { %v4637_v0 = vsel %vm637_vm4, %v4535_v17, 0.0  ;;  %v4705_v27 = vsel %vm637_vm4, %v4626_v60, 0.0  ;;  %v4425_v29 = vrot.slane %v4424_v53, 2  ;;  %v7976_v50 = vpop.f32.mrb[140].mxu1  ;;  %v7985_v52 = vadd.f32 %v4252_v57, %v7665_v32 }
 0x4c1   : > { %8346 = vst [vmem:[#allocation8_spill] sm:$0xff] %v7971_v63  ;;  %v4631_v41 = vadd.f32 %v4630_v15, %v4629_v21  ;;  %v4432_v18 = vrot.slane %v4431_v51, 4  ;;  %v4706_v5 = vadd.f32 %v4705_v27, %v4704_v22  ;;  %v4638_v36 = vadd.f32 %v4637_v0, %v4636_v19  ;;  %v7982_v61 = vpop.f32.mrb[141].mxu1 }
 0x4c2   : > { %v4439_v47 = vsel %vm637_vm4, %v7971_v63, 0.0  ;;  %v4537_v10 = vmul.f32 %v7971_v63, %v7971_v63  ;;  %v4426_v31 = vadd.f32 %v4425_v29, %v4424_v53  ;;  %v7987_v21 = vpop.f32.mrb[142].mxu1  ;;  %v4260_v19 = vrot.slane %v7912_v43, 2 }
 0x4c3   : > { %v4632_v40 = vrot.slane %v4631_v41, 2  ;;  %v4433_v55 = vadd.f32 %v4432_v18, %v4431_v51  ;;  %v4639_v24 = vrot.slane %v4638_v36, 4  ;;  %v4256_v59 = vrot.slane %v7917_v26, 2  ;;  %v7992_v17 = vpop.f32.mrb[143].mxu1 }
 0x4c4   : > { %v4646_v22 = vsel %vm637_vm4, %v4537_v10, 0.0  ;;  %v4427_v4 = vrot.slane %v4426_v31, 1  ;;  %v4438_v53 = vsel %vm637_vm4, %v7985_v52, 0.0  ;;  %v4536_v0 = vmul.f32 %v7985_v52, %v7985_v52 }
 0x4c5   : > { %v4633_v60 = vadd.f32 %v4632_v40, %v4631_v41  ;;  %v4434_v15 = vrot.slane %v4433_v55, 2  ;;  %v4640_v51 = vadd.f32 %v4639_v24, %v4638_v36  ;;  %v4440_v32 = vadd.f32 %v4439_v47, %v4438_v53 }
 0x4c6   : > { %v4257_v57 = vsel %vm964_vm3, %v4255_v58, %v4256_v59  ;;  %v4428_v27 = vadd.f32 %v4427_v4, %v4426_v31  ;;  %v4259_v26 = vsel %vm964_vm3, %v4256_v59, %v4258_v25  ;;  %v4645_v41 = vsel %vm637_vm4, %v4536_v0, 0.0 }
 0x4c7   : > { %v4634_v29 = vrot.slane %v4633_v60, 1  ;;  %v4435_v43 = vadd.f32 %v4434_v15, %v4433_v55  ;;  %v4641_v18 = vrot.slane %v4640_v51, 2  ;;  %v4441_v10 = vrot.slane %v4440_v32, 4 }
 0x4c8   : > { %v8002_v40 = vadd.f32 %v4257_v57, %v7669_v44  ;;  %v4500_v36 = vsel %vm637_vm4, %v4428_v27, 0.0  ;;  %v4647_v53 = vadd.f32 %v4646_v22, %v4645_v41  ;;  %v8007_v55 = vadd.f32 %v4259_v26, %v7671_v12 }
 0x4c9   : > { %v4635_v47 = vadd.f32 %v4634_v29, %v4633_v60  ;;  %v4436_v24 = vrot.slane %v4435_v43, 1  ;;  %v4501_v63 = vadd.f32 %v4500_v36, %v7949_v1  ;;  %v4642_v58 = vadd.f32 %v4641_v18, %v4640_v51 }
 0x4ca   : > { %v4442_v31 = vadd.f32 %v4441_v10, %v4440_v32  ;;  %v4648_v4 = vrot.slane %v4647_v53, 4  ;;  %v4447_v44 = vsel %vm637_vm4, %v8002_v40, 0.0  ;;  %v4448_v22 = vsel %vm637_vm4, %v8007_v55, 0.0 }
 0x4cb   : > { %v4707_v25 = vsel %vm637_vm4, %v4635_v47, 0.0  ;;  %v4437_v59 = vadd.f32 %v4436_v24, %v4435_v43  ;;  %v4643_v0 = vrot.slane %v4642_v58, 1  ;;  %v4449_v51 = vadd.f32 %v4448_v22, %v4447_v44 }
 0x4cc   : > { %v4708_v15 = vadd.f32 %v4707_v25, %v4706_v5  ;;  %v4443_v57 = vrot.slane %v4442_v31, 2  ;;  %v4649_v60 = vadd.f32 %v4648_v4, %v4647_v53  ;;  %v4538_v12 = vmul.f32 %v8002_v40, %v8002_v40 }
 0x4cd   : > { %v4502_v1 = vsel %vm637_vm4, %v4437_v59, 0.0  ;;  %v4644_v27 = vadd.f32 %v4643_v0, %v4642_v58  ;;  %v4539_v43 = vmul.f32 %v8007_v55, %v8007_v55  ;;  %v4450_v5 = vrot.slane %v4449_v51, 4 }
 0x4ce   : > { %v4503_v32 = vadd.f32 %v4502_v1, %v4501_v63  ;;  %v4444_v29 = vadd.f32 %v4443_v57, %v4442_v31  ;;  %v4650_v26 = vrot.slane %v4649_v60, 2  ;;  %v4654_v18 = vsel %vm637_vm4, %v4538_v12, 0.0 }
 0x4cf   : > { %v4265_v10 = vrot.slane %v7938_v9, 2  ;;  %v4709_v41 = vsel %vm637_vm4, %v4644_v27, 0.0  ;;  %v4655_v47 = vsel %vm637_vm4, %v4539_v43, 0.0  ;;  %v4261_v24 = vrot.slane %v7947_v49, 2 }
 0x4d0   : > { %v4445_v36 = vrot.slane %v4444_v29, 1  ;;  %v4710_v53 = vadd.f32 %v4709_v41, %v4708_v15  ;;  %v4651_v63 = vadd.f32 %v4650_v26, %v4649_v60  ;;  %v4451_v58 = vadd.f32 %v4450_v5, %v4449_v51 }
 0x4d1   : > { %v4656_v31 = vadd.f32 %v4655_v47, %v4654_v18  ;;  %v4262_v59 = vsel %vm964_vm3, %v4260_v19, %v4261_v24  ;;  %v4266_v4 = vrot.slane %v7952_v48, 2  ;;  %v4263_v44 = vrot.slane %v7960_v39, 2 }
 0x4d2   : > { %v4446_v25 = vadd.f32 %v4445_v36, %v4444_v29  ;;  %v4652_v0 = vrot.slane %v4651_v63, 1  ;;  %v4452_v9 = vrot.slane %v4451_v58, 2  ;;  %v8028_v22 = vadd.f32 %v4262_v59, %v7674_v45 }
 0x4d3   : > { %v4657_v57 = vrot.slane %v4656_v31, 4  ;;  %v4267_v49 = vsel %vm964_vm3, %v4265_v10, %v4266_v4  ;;  %v4264_v15 = vsel %vm964_vm3, %v4261_v24, %v4263_v44  ;;  %v4271_v45 = vrot.slane %v7976_v50, 2 }
 0x4d4   : > { %v4504_v1 = vsel %vm637_vm4, %v4446_v25, 0.0  ;;  %v4653_v51 = vadd.f32 %v4652_v0, %v4651_v63  ;;  %v4453_v12 = vadd.f32 %v4452_v9, %v4451_v58  ;;  %v4540_v48 = vmul.f32 %v8028_v22, %v8028_v22 }
 0x4d5   : > { %v4505_v60 = vadd.f32 %v4504_v1, %v4503_v32  ;;  %v4658_v19 = vadd.f32 %v4657_v57, %v4656_v31  ;;  %v8036_v39 = vadd.f32 %v4267_v49, %v7677_v2  ;;  %v8039_v27 = vadd.f32 %v4264_v15, %v7680_v37 }
 0x4d6   : > { %v4711_v29 = vsel %vm637_vm4, %v4653_v51, 0.0  ;;  %v4454_v43 = vrot.slane %v4453_v12, 1  ;;  %v4268_v32 = vrot.slane %v7982_v61, 2  ;;  %v4456_v18 = vsel %vm637_vm4, %v8028_v22, 0.0 }
 0x4d7   : > { %v4659_v26 = vrot.slane %v4658_v19, 2  ;;  %v4712_v5 = vadd.f32 %v4711_v29, %v4710_v53  ;;  %v4663_v10 = vsel %vm637_vm4, %v4540_v48, 0.0  ;;  %v4465_v2 = vsel %vm637_vm4, %v8036_v39, 0.0 }
 0x4d8   : > { %v4455_v41 = vadd.f32 %v4454_v43, %v4453_v12  ;;  %v4457_v50 = vsel %vm637_vm4, %v8039_v27, 0.0  ;;  %v4541_v36 = vmul.f32 %v8039_v27, %v8039_v27  ;;  %v4542_v61 = vmul.f32 %v8036_v39, %v8036_v39 }
 0x4d9   : > { %v4660_v37 = vadd.f32 %v4659_v26, %v4658_v19  ;;  %v4458_v47 = vadd.f32 %v4457_v50, %v4456_v18  ;;  %v4269_v24 = vsel %vm964_vm3, %v4266_v4, %v4268_v32  ;;  %v4273_v53 = vrot.slane %v7987_v21, 2 }
 0x4da   : > { %v4506_v63 = vsel %vm637_vm4, %v4455_v41, 0.0  ;;  %v4664_v31 = vsel %vm637_vm4, %v4541_v36, 0.0  ;;  %v8060_v25 = vadd.f32 %v4269_v24, %v7683_v20  ;;  %v4270_v20 = vrot.slane %v7992_v17, 2 }
 0x4db   : > { %v4661_v58 = vrot.slane %v4660_v37, 1  ;;  %v4507_v59 = vadd.f32 %v4506_v63, %v4505_v60  ;;  %v4459_v44 = vrot.slane %v4458_v47, 4  ;;  %v4665_v0 = vadd.f32 %v4664_v31, %v4663_v10 }
 0x4dc   : > { %v4274_v9 = vsel %vm964_vm3, %v4271_v45, %v4273_v53  ;;  %v4466_v1 = vsel %vm637_vm4, %v8060_v25, 0.0  ;;  %v4543_v21 = vmul.f32 %v8060_v25, %v8060_v25  ;;  %v4672_v12 = vsel %vm637_vm4, %v4542_v61, 0.0 }
 0x4dd   : > { %v4662_v57 = vadd.f32 %v4661_v58, %v4660_v37  ;;  %v8068_v4 = vadd.f32 %v4274_v9, %v7686_v28  ;;  %v4460_v49 = vadd.f32 %v4459_v44, %v4458_v47  ;;  %v4666_v15 = vrot.slane %v4665_v0, 4 }
 0x4de   : > { %v4467_v51 = vadd.f32 %v4466_v1, %v4465_v2  ;;  %v4673_v19 = vsel %vm637_vm4, %v4543_v21, 0.0  ;;  %v4272_v10 = vsel %vm964_vm3, %v4270_v20, %v4271_v45 }
 0x4df   : > { %v4713_v60 = vsel %vm637_vm4, %v4662_v57, 0.0  ;;  %v4461_v29 = vrot.slane %v4460_v49, 2  ;;  %v4667_v43 = vadd.f32 %v4666_v15, %v4665_v0  ;;  %v4674_v32 = vadd.f32 %v4673_v19, %v4672_v12 }
 0x4e0   : > { %v4714_v48 = vadd.f32 %v4713_v60, %v4712_v5  ;;  %v4468_v26 = vrot.slane %v4467_v51, 4  ;;  %v4475_v28 = vsel %vm637_vm4, %v8068_v4, 0.0  ;;  %v4545_v18 = vmul.f32 %v8068_v4, %v8068_v4 }
 0x4e1   : > { %v4462_v17 = vadd.f32 %v4461_v29, %v4460_v49  ;;  %v4668_v2 = vrot.slane %v4667_v43, 2  ;;  %v8080_v37 = vadd.f32 %v4272_v10, %v7689_v34  ;;  %v4675_v50 = vrot.slane %v4674_v32, 4 }
 0x4e2   : > { %v4469_v41 = vadd.f32 %v4468_v26, %v4467_v51  ;;  %v4682_v53 = vsel %vm637_vm4, %v4545_v18, 0.0 }
 0x4e3   : > { %v4463_v5 = vrot.slane %v4462_v17, 1  ;;  %v4669_v36 = vadd.f32 %v4668_v2, %v4667_v43  ;;  %v4474_v47 = vsel %vm637_vm4, %v8080_v37, 0.0  ;;  %v4676_v24 = vadd.f32 %v4675_v50, %v4674_v32 }
 0x4e4   : > { %v4470_v61 = vrot.slane %v4469_v41, 2  ;;  %v4476_v63 = vadd.f32 %v4475_v28, %v4474_v47  ;;  %v4544_v45 = vmul.f32 %v8080_v37, %v8080_v37 }
 0x4e5   : > { %v4464_v58 = vadd.f32 %v4463_v5, %v4462_v17  ;;  %v4670_v31 = vrot.slane %v4669_v36, 1  ;;  %v4677_v0 = vrot.slane %v4676_v24, 2 }
 0x4e6   : > { %v4471_v44 = vadd.f32 %v4470_v61, %v4469_v41  ;;  %v4477_v34 = vrot.slane %v4476_v63, 4  ;;  %v4681_v9 = vsel %vm637_vm4, %v4544_v45, 0.0 }
 0x4e7   : > { %v4508_v57 = vsel %vm637_vm4, %v4464_v58, 0.0  ;;  %v4671_v1 = vadd.f32 %v4670_v31, %v4669_v36  ;;  %v4683_v49 = vadd.f32 %v4682_v53, %v4681_v9  ;;  %v4678_v51 = vadd.f32 %v4677_v0, %v4676_v24 }
 0x4e8   : > { %v4472_v21 = vrot.slane %v4471_v44, 1  ;;  %v4509_v15 = vadd.f32 %v4508_v57, %v4507_v59  ;;  %v4478_v20 = vadd.f32 %v4477_v34, %v4476_v63 }
 0x4e9   : > { %v4715_v60 = vsel %vm637_vm4, %v4671_v1, 0.0  ;;  %v4684_v19 = vrot.slane %v4683_v49, 4  ;;  %v4679_v43 = vrot.slane %v4678_v51, 1 }
 0x4ea   : > { %v4473_v12 = vadd.f32 %v4472_v21, %v4471_v44  ;;  %v4716_v29 = vadd.f32 %v4715_v60, %v4714_v48  ;;  %v4479_v26 = vrot.slane %v4478_v20, 2 }
 0x4eb   : > { %v4685_v28 = vadd.f32 %v4684_v19, %v4683_v49  ;;  %v4680_v10 = vadd.f32 %v4679_v43, %v4678_v51  ;;  %v8350_v19 = vld [vmem:[#allocation5_spill] sm:$0xff] }
 0x4ec   : > { %v4510_v32 = vsel %vm637_vm4, %v4473_v12, 0.0  ;;  %v4480_v17 = vadd.f32 %v4479_v26, %v4478_v20  ;;  %v8349_v12 = vld [vmem:[#allocation4_spill] sm:$0xff] }
 0x4ed   : > { %v4511_v18 = vadd.f32 %v4510_v32, %v4509_v15  ;;  %v4686_v2 = vrot.slane %v4685_v28, 2  ;;  %v4717_v41 = vsel %vm637_vm4, %v4680_v10, 0.0 }
 0x4ee   : > { %v4481_v50 = vrot.slane %v4480_v17, 1  ;;  %v4718_v59 = vadd.f32 %v4717_v41, %v4716_v29  ;;  %v8351_v29 = vld [vmem:[#allocation6_spill] sm:$0xff] }
 0x4ef   : > { %v4687_v5 = vadd.f32 %v4686_v2, %v4685_v28 }
 0x4f0   : > { %v4482_v36 = vadd.f32 %v4481_v50, %v4480_v17 }
 0x4f1   : > { %v4688_v61 = vrot.slane %v4687_v5, 1 }
 0x4f2   : > { %v4512_v47 = vsel %vm637_vm4, %v4482_v36, 0.0 }
 0x4f3   : > { %v4513_v24 = vadd.f32 %v4512_v47, %v4511_v18  ;;  %v4689_v48 = vadd.f32 %v4688_v61, %v4687_v5 }
 0x4f5   : > { %v4719_v53 = vsel %vm637_vm4, %v4689_v48, 0.0  ;;  %v8094_v63 = vmul.f32 0.00390625, %v4513_v24 }
 0x4f6   : > { %v4720_v45 = vadd.f32 %v4719_v53, %v4718_v59 }
 0x4f7   : > { %v4723_v58 = vmul.f32 %v8094_v63, %v8094_v63  ;;  %v4730_v44 = vsub.f32 %v7715_v46, %v8094_v63  ;;  %v4731_v0 = vsub.f32 %v7738_v13, %v8094_v63  ;;  %v4732_v34 = vsub.f32 %v7760_v23, %v8094_v63 }
 0x4f8   : > { %v4722_v31 = vmul.f32 0.00390625, %v4720_v45  ;;  %v4733_v9 = vsub.f32 %v7741_v42, %v8094_v63  ;;  %v4734_v57 = vsub.f32 %v7777_v38, %v8094_v63  ;;  %v4735_v1 = vsub.f32 %v7780_v11, %v8094_v63 }
 0x4f9   : > { %v4736_v49 = vsub.f32 %v7802_v35, %v8094_v63  ;;  %v4737_v46 = vsub.f32 %v7822_v6, %v8094_v63  ;;  %v4738_v13 = vsub.f32 %v7807_v14, %v8094_v63  ;;  %v4739_v23 = vsub.f32 %v7837_v54, %v8094_v63 }
 0x4fa   : > { %v4724_v21 = vsub.f32 %v4722_v31, %v4723_v58  ;;  %v4740_v42 = vsub.f32 %v7861_v62, %v8094_v63  ;;  %v4741_v38 = vsub.f32 %v7840_v30, %v8094_v63  ;;  %v4742_v11 = vsub.f32 %v7874_v8, %v8094_v63  ;;  %v8347_v8 = vld [vmem:[#allocation8_spill] sm:$0xff] }
 0x4fb   : > { %v4743_v35 = vsub.f32 %v7877_v56, %v8094_v63  ;;  %v4744_v6 = vsub.f32 %v7915_v3, %v8094_v63  ;;  %v4745_v14 = vsub.f32 %v7932_v33, %v8094_v63  ;;  %v4746_v54 = vsub.f32 %v7928_v7, %v8094_v63 }
 0x4fc   : > { %v4725_v15 = vmax.f32 %v4724_v21, 0.0  ;;  %v4747_v62 = vsub.f32 %v7957_v16, %v8094_v63  ;;  %v4748_v30 = vsub.f32 %v7985_v52, %v8094_v63  ;;  %v4749_v51 = vsub.f32 %v8347_v8, %v8094_v63  ;;  %v5580_v8 = vld [vmem:[%s5652_s17 + $0x30] sm:$0xff] }
 0x4fd   : > { %v4750_v56 = vsub.f32 %v8002_v40, %v8094_v63  ;;  %v4751_v3 = vsub.f32 %v8007_v55, %v8094_v63  ;;  %v4752_v33 = vsub.f32 %v8028_v22, %v8094_v63  ;;  %v4753_v7 = vsub.f32 %v8039_v27, %v8094_v63  ;;  %v8348_v55 = vld [vmem:[#allocation3_spill] sm:$0xff] }
 0x4fe   : > { %v4754_v16 = vsub.f32 %v8036_v39, %v8094_v63  ;;  %v4755_v52 = vsub.f32 %v8060_v25, %v8094_v63  ;;  %v4756_v20 = vsub.f32 %v8080_v37, %v8094_v63  ;;  %v4757_v40 = vsub.f32 %v8068_v4, %v8094_v63 }
 0x4ff   : > { %v4758_v60 = vadd.f32 1e-05, %v4725_v15  ;;  %v4726_v22 = vsub.f32 %v8348_v55, %v8094_v63  ;;  %v4727_v27 = vsub.f32 %v8349_v12, %v8094_v63  ;;  %v4728_v39 = vsub.f32 %v8350_v19, %v8094_v63 }
 0x500   : > { %v4729_v25 = vsub.f32 %v8351_v29, %v8094_v63 }
 0x501   : > { %5572 = vrsqrt.f32 %v4758_v60  ;;  %v5585_v60 = vld [vmem:[%s5652_s17 + $0x58] sm:$0xff] }
 0x50b   : > { %v5573_v43 = vpop.eup %5572 }
 0x50c   : > { %v4760_v26 = vmul.f32 %v5573_v43, %v4726_v22  ;;  %v4761_v37 = vmul.f32 %v5573_v43, %v4727_v27  ;;  %v4762_v32 = vmul.f32 %v5573_v43, %v4728_v39  ;;  %v4763_v28 = vmul.f32 %v5573_v43, %v4729_v25  ;;  %v5586_v22 = vld [vmem:[%s5652_s17 + $0x60] sm:$0xff]  ;;  %v5587_v27 = vld [vmem:[%s5652_s17 + $0x68] sm:$0xff]  ;;  %v5588_v39 = vld [vmem:[%s5652_s17 + $0x70] sm:$0xff] }
 0x50d   : > { %v4764_v4 = vmul.f32 %v5573_v43, %v4730_v44  ;;  %v4765_v18 = vmul.f32 %v5573_v43, %v4731_v0  ;;  %v4766_v10 = vmul.f32 %v5573_v43, %v4732_v34  ;;  %v4767_v17 = vmul.f32 %v5573_v43, %v4733_v9  ;;  %v5589_v25 = vld [vmem:[%s5652_s17 + $0x78] sm:$0xff] }
 0x50e   : > { %v4768_v2 = vmul.f32 %v5573_v43, %v4734_v57  ;;  %v4769_v41 = vmul.f32 %v5573_v43, %v4735_v1  ;;  %v4770_v50 = vmul.f32 %v5573_v43, %v4736_v49  ;;  %v4771_v59 = vmul.f32 %v5573_v43, %v4737_v46 }
 0x50f   : > { %v4772_v5 = vmul.f32 %v5573_v43, %v4738_v13  ;;  %v4773_v36 = vmul.f32 %v5573_v43, %v4739_v23  ;;  %v4774_v61 = vmul.f32 %v5573_v43, %v4740_v42  ;;  %v4775_v47 = vmul.f32 %v5573_v43, %v4741_v38  ;;  %v5574_v13 = vld [vmem:[%s5652_s17] sm:$0xff]  ;;  %v5575_v42 = vld [vmem:[%s5652_s17 + $0x8] sm:$0xff] }
 0x510   : > { %v4776_v24 = vmul.f32 %v5573_v43, %v4742_v11  ;;  %v4777_v48 = vmul.f32 %v5573_v43, %v4743_v35  ;;  %v4778_v53 = vmul.f32 %v5573_v43, %v4744_v6  ;;  %v4779_v63 = vmul.f32 %v5573_v43, %v4745_v14  ;;  %v5576_v11 = vld [vmem:[%s5652_s17 + $0x10] sm:$0xff]  ;;  %v5577_v35 = vld [vmem:[%s5652_s17 + $0x18] sm:$0xff]  ;;  %v5578_v14 = vld [vmem:[%s5652_s17 + $0x20] sm:$0xff] }
 0x511   : > { %v8162_v45 = vmul.f32 %v5573_v43, %v4746_v54  ;;  %v8164_v58 = vmul.f32 %v5573_v43, %v4747_v62  ;;  %v8166_v31 = vmul.f32 %v5573_v43, %v4748_v30  ;;  %v8168_v44 = vmul.f32 %v5573_v43, %v4749_v51  ;;  %v5579_v62 = vld [vmem:[%s5652_s17 + $0x28] sm:$0xff] }
 0x512   : > { %v8170_v0 = vmul.f32 %v5573_v43, %v4750_v56  ;;  %v8172_v34 = vmul.f32 %v5573_v43, %v4751_v3  ;;  %v8174_v9 = vmul.f32 %v5573_v43, %v4752_v33  ;;  %v8176_v57 = vmul.f32 %v5573_v43, %v4753_v7  ;;  %v5581_v56 = vld [vmem:[%s5652_s17 + $0x38] sm:$0xff]  ;;  %v5582_v33 = vld [vmem:[%s5652_s17 + $0x40] sm:$0xff] }
 0x513   : > { %v8185_v1 = vmul.f32 %v5573_v43, %v4754_v16  ;;  %v8187_v21 = vmul.f32 %v5573_v43, %v4755_v52  ;;  %v8189_v49 = vmul.f32 %v5573_v43, %v4756_v20  ;;  %v8191_v46 = vmul.f32 %v5573_v43, %v4757_v40  ;;  %v5583_v16 = vld [vmem:[%s5652_s17 + $0x48] sm:$0xff]  ;;  %v5584_v20 = vld [vmem:[%s5652_s17 + $0x50] sm:$0xff] }
 0x514   : > { %v4792_v23 = vadd.f32 %v5574_v13, %v4760_v26  ;;  %v4793_v38 = vadd.f32 %v5575_v42, %v4761_v37  ;;  %v4794_v15 = vadd.f32 %v5576_v11, %v4762_v32  ;;  %v4795_v6 = vadd.f32 %v5577_v35, %v4763_v28  ;;  %v5590_v26 = vld [vmem:[%s5652_s17 + $0x80] sm:$0xff]  ;;  %v5591_v32 = vld [vmem:[%s5652_s17 + $0x88] sm:$0xff]  ;;  %v5604_v13 = vld [vmem:[%s5652_s17 + $0xf0] sm:$0xff] }
 0x515   : > { %v4796_v54 = vadd.f32 %v5578_v14, %v4764_v4  ;;  %v4797_v30 = vadd.f32 %v5579_v62, %v4765_v18  ;;  %v4798_v51 = vadd.f32 %v5580_v8, %v4766_v10  ;;  %v4799_v3 = vadd.f32 %v5581_v56, %v4767_v17  ;;  %v5592_v4 = vld [vmem:[%s5652_s17 + $0x90] sm:$0xff]  ;;  %v5593_v10 = vld [vmem:[%s5652_s17 + $0x98] sm:$0xff] }
 0x516   : > { %v4800_v7 = vadd.f32 %v5582_v33, %v4768_v2  ;;  %v4801_v52 = vadd.f32 %v5583_v16, %v4769_v41  ;;  %v4802_v40 = vadd.f32 %v5584_v20, %v4770_v50  ;;  %v4803_v55 = vadd.f32 %v5585_v60, %v4771_v59  ;;  %4824 = vst.msk [vmem:[%s8183_s7] sm:$0xff] %vm637_vm4, %v4792_v23  ;;  %v5594_v2 = vld [vmem:[%s5652_s17 + $0xa0] sm:$0xff]  ;;  %v5595_v50 = vld [vmem:[%s5652_s17 + $0xa8] sm:$0xff]  ;;  %v5605_v42 = vld [vmem:[%s5652_s17 + $0xf8] sm:$0xff] }
 0x517   : > { %4825 = vst.msk [vmem:[%s8183_s7 + $0x8] sm:$0xff] %vm637_vm4, %v4793_v38  ;;  %4826 = vst.msk [vmem:[%s8183_s7 + $0x10] sm:$0xff] %vm637_vm4, %v4794_v15  ;;  %v4804_v12 = vadd.f32 %v5586_v22, %v4772_v5  ;;  %v4805_v19 = vadd.f32 %v5587_v27, %v4773_v36  ;;  %v4806_v29 = vadd.f32 %v5588_v39, %v4774_v61  ;;  %v5596_v5 = vld [vmem:[%s5652_s17 + $0xb0] sm:$0xff]  ;;  %v5597_v61 = vld [vmem:[%s5652_s17 + $0xb8] sm:$0xff] }
 0x518   : > { %4827 = vst.msk [vmem:[%s8183_s7 + $0x18] sm:$0xff] %vm637_vm4, %v4795_v6  ;;  %v4807_v43 = vadd.f32 %v5589_v25, %v4775_v47  ;;  %4828 = vst.msk [vmem:[%s8183_s7 + $0x20] sm:$0xff] %vm637_vm4, %v4796_v54  ;;  %v4808_v37 = vadd.f32 %v5590_v26, %v4776_v24  ;;  %v4809_v28 = vadd.f32 %v5591_v32, %v4777_v48  ;;  %v5598_v24 = vld [vmem:[%s5652_s17 + $0xc0] sm:$0xff] }
 0x519   : > { %4829 = vst.msk [vmem:[%s8183_s7 + $0x28] sm:$0xff] %vm637_vm4, %v4797_v30  ;;  %4830 = vst.msk [vmem:[%s8183_s7 + $0x30] sm:$0xff] %vm637_vm4, %v4798_v51  ;;  %v4810_v18 = vadd.f32 %v5592_v4, %v4778_v53  ;;  %v4811_v17 = vadd.f32 %v5593_v10, %v4779_v63  ;;  %v4812_v41 = vadd.f32 %v5594_v2, %v8162_v45  ;;  %v5599_v53 = vld [vmem:[%s5652_s17 + $0xc8] sm:$0xff]  ;;  %v5600_v45 = vld [vmem:[%s5652_s17 + $0xd0] sm:$0xff] }
 0x51a   : > { %4831 = vst.msk [vmem:[%s8183_s7 + $0x38] sm:$0xff] %vm637_vm4, %v4799_v3  ;;  %4832 = vst.msk [vmem:[%s8183_s7 + $0x40] sm:$0xff] %vm637_vm4, %v4800_v7  ;;  %v4813_v59 = vadd.f32 %v5595_v50, %v8164_v58  ;;  %v4814_v36 = vadd.f32 %v5596_v5, %v8166_v31  ;;  %v4815_v47 = vadd.f32 %v5597_v61, %v8168_v44  ;;  %v5601_v31 = vld [vmem:[%s5652_s17 + $0xd8] sm:$0xff] }
 0x51b   : > { %4833 = vst.msk [vmem:[%s8183_s7 + $0x48] sm:$0xff] %vm637_vm4, %v4801_v52  ;;  %4834 = vst.msk [vmem:[%s8183_s7 + $0x50] sm:$0xff] %vm637_vm4, %v4802_v40  ;;  %v4816_v48 = vadd.f32 %v5598_v24, %v8170_v0  ;;  %v4817_v63 = vadd.f32 %v5599_v53, %v8172_v34  ;;  %v4818_v58 = vadd.f32 %v5600_v45, %v8174_v9  ;;  %v5602_v0 = vld [vmem:[%s5652_s17 + $0xe0] sm:$0xff]  ;;  %v5603_v9 = vld [vmem:[%s5652_s17 + $0xe8] sm:$0xff] }
 0x51c   : > { %4835 = vst.msk [vmem:[%s8183_s7 + $0x58] sm:$0xff] %vm637_vm4, %v4803_v55  ;;  %4836 = vst.msk [vmem:[%s8183_s7 + $0x60] sm:$0xff] %vm637_vm4, %v4804_v12  ;;  %v4819_v44 = vadd.f32 %v5601_v31, %v8176_v57  ;;  %v4820_v34 = vadd.f32 %v5602_v0, %v8185_v1  ;;  %v4821_v57 = vadd.f32 %v5603_v9, %v8187_v21 }
 0x51d   : > { %4837 = vst.msk [vmem:[%s8183_s7 + $0x68] sm:$0xff] %vm637_vm4, %v4805_v19  ;;  %4838 = vst.msk [vmem:[%s8183_s7 + $0x70] sm:$0xff] %vm637_vm4, %v4806_v29  ;;  %v4822_v23 = vadd.f32 %v5604_v13, %v8189_v49  ;;  %v4823_v38 = vadd.f32 %v5605_v42, %v8191_v46 }
 0x51e   : > { %4839 = vst.msk [vmem:[%s8183_s7 + $0x78] sm:$0xff] %vm637_vm4, %v4807_v43  ;;  %4840 = vst.msk [vmem:[%s8183_s7 + $0x80] sm:$0xff] %vm637_vm4, %v4808_v37 }
 0x51f   : > { %4841 = vst.msk [vmem:[%s8183_s7 + $0x88] sm:$0xff] %vm637_vm4, %v4809_v28  ;;  %4842 = vst.msk [vmem:[%s8183_s7 + $0x90] sm:$0xff] %vm637_vm4, %v4810_v18 }
 0x520   : > { %4843 = vst.msk [vmem:[%s8183_s7 + $0x98] sm:$0xff] %vm637_vm4, %v4811_v17  ;;  %4844 = vst.msk [vmem:[%s8183_s7 + $0xa0] sm:$0xff] %vm637_vm4, %v4812_v41 }
 0x521   : > { %4845 = vst.msk [vmem:[%s8183_s7 + $0xa8] sm:$0xff] %vm637_vm4, %v4813_v59  ;;  %4846 = vst.msk [vmem:[%s8183_s7 + $0xb0] sm:$0xff] %vm637_vm4, %v4814_v36 }
 0x522   : > { %4847 = vst.msk [vmem:[%s8183_s7 + $0xb8] sm:$0xff] %vm637_vm4, %v4815_v47  ;;  %4848 = vst.msk [vmem:[%s8183_s7 + $0xc0] sm:$0xff] %vm637_vm4, %v4816_v48 }
 0x523   : > { %4849 = vst.msk [vmem:[%s8183_s7 + $0xc8] sm:$0xff] %vm637_vm4, %v4817_v63  ;;  %4850 = vst.msk [vmem:[%s8183_s7 + $0xd0] sm:$0xff] %vm637_vm4, %v4818_v58 }
 0x524   : > { %4851 = vst.msk [vmem:[%s8183_s7 + $0xd8] sm:$0xff] %vm637_vm4, %v4819_v44  ;;  %4852 = vst.msk [vmem:[%s8183_s7 + $0xe0] sm:$0xff] %vm637_vm4, %v4820_v34 }
 0x525   : > { %4853 = vst.msk [vmem:[%s8183_s7 + $0xe8] sm:$0xff] %vm637_vm4, %v4821_v57  ;;  %4854 = vst.msk [vmem:[%s8183_s7 + $0xf0] sm:$0xff] %vm637_vm4, %v4822_v23 }
 0x526   : > { %4855 = vst.msk [vmem:[%s8183_s7 + $0xf8] sm:$0xff] %vm637_vm4, %v4823_v38 }
 0x527 PF: > { %s13_s12 = sadd.s32 1, %s5612_s12  }
 0x528   : > { %p10_p4 = scmp.ge.s32.totalorder %s13_s12, 4  }
 0x52a   :  { %12 = sbr.rel (!%p10_p4) target bundleno = 1 (0x1), region = 66 }

</bundles_post_ra>
